<compile_context>
chip_gen: v6e
topology: v6e:2x2x1
jax: 0.10.0
libtpu: 0.0.40
codegen_flags: <defaults>
</compile_context>

<pallas_src>
import functools

import jax
import jax.numpy as jnp
from jax.experimental import pallas as pl
from jax.experimental.pallas import tpu as pltpu


def _round_up(x, m):
    return ((x + m - 1) // m) * m


def _full_spec(shape):
    """Whole-array block for a trivial grid=(1,)."""
    zeros = (0,) * len(shape)
    return pl.BlockSpec(shape, lambda i, _z=zeros: _z)


# ------------------------------------------------------------------
# Fused kernel factory: both LSTM stacks (all layers, interleaved) +
# the final Linear (cross-stack sum + bias) in ONE grid step.
# ------------------------------------------------------------------
def _make_fused_kernel(T, BP, H, n_extra):
    G3 = 3 * H

    def cell(g, c):
        # Gate columns pre-permuted to (i, f, o, g):
        # one tanh over [:, :3H] (sigmoid identity) + one tanh over [:, 3H:].
        sig = 0.5 * jnp.tanh(0.5 * g[:, :G3]) + 0.5
        i_g = sig[:, :H]
        f_g = sig[:, H:2 * H]
        o_g = sig[:, 2 * H:G3]
        g_g = jnp.tanh(g[:, G3:])
        c = f_g * c + i_g * g_g
        h = o_g * jnp.tanh(c)
        return h, c

    def layer_pair(gx0, gx1, whh0, whh1, store_seq):
        # One LSTM layer for BOTH stacks; the two independent recurrences are
        # interleaved per time step so their latency chains overlap on one TC.
        # gx already holds x_t @ W_ih + b for every step, so the serial chain
        # per step is one MXU op (h @ W_hh) + pointwise gates, per stack.
        z = jnp.zeros((BP, H), jnp.float32)
        h0, c0, h1, c1 = z, z, z, z
        ys0, ys1 = [], []
        for t in range(T):                         # static T -> fully unrolled
            lo, hi = t * BP, (t + 1) * BP          # sublane-tile aligned slice
            g0 = jnp.dot(h0, whh0, preferred_element_type=jnp.float32) + gx0[lo:hi]
            g1 = jnp.dot(h1, whh1, preferred_element_type=jnp.float32) + gx1[lo:hi]
            h0, c0 = cell(g0, c0)
            h1, c1 = cell(g1, c1)
            if store_seq:
                ys0.append(h0)
                ys1.append(h1)
        if store_seq:
            return h0, h1, jnp.concatenate(ys0, 0), jnp.concatenate(ys1, 0)
        return h0, h1, None, None

    def kernel(x_ref, wih0_ref, whh0_ref, b0_ref,
               wihR_ref, whhR_ref, bR_ref,
               wfc_ref, bfc_ref, out_ref):
        # Layer 0: hoisted input projections (bias folded), kept as values.
        gx0 = jnp.dot(x_ref[0], wih0_ref[0],
                      preferred_element_type=jnp.float32) + b0_ref[0]
        gx1 = jnp.dot(x_ref[1], wih0_ref[1],
                      preferred_element_type=jnp.float32) + b0_ref[1]
        h0, h1, y0, y1 = layer_pair(gx0, gx1, whh0_ref[0], whh0_ref[1],
                                    store_seq=n_extra > 0)

        # Remaining stacked layers (static loop over layer index).
        for l in range(n_extra):
            gx0 = jnp.dot(y0, wihR_ref[0, l],
                          preferred_element_type=jnp.float32) + bR_ref[0, l]
            gx1 = jnp.dot(y1, wihR_ref[1, l],
                          preferred_element_type=jnp.float32) + bR_ref[1, l]
            h0, h1, y0, y1 = layer_pair(gx0, gx1,
                                        whhR_ref[0, l], whhR_ref[1, l],
                                        store_seq=l < n_extra - 1)

        # Fused Linear: cross-stack sum + bias, one lane-dense (BP, 128) store.
        out_ref[...] = (jnp.dot(h0, wfc_ref[0], preferred_element_type=jnp.float32)
                        + jnp.dot(h1, wfc_ref[1], preferred_element_type=jnp.float32)
                        + bfc_ref[...])

    return kernel


def fused_forward_pallas(xs, wih0, whh0, b0, wihR, whhR, bR, wfc, bfc,
                         *, T, BP, H, KP, n_extra):
    kernel = _make_fused_kernel(T, BP, H, n_extra)
    D = xs.shape[-1]
    nE = wihR.shape[1]
    H4 = 4 * H
    return pl.pallas_call(
        kernel,
        out_shape=jax.ShapeDtypeStruct((BP, KP), jnp.float32),
        grid_spec=pltpu.PrefetchScalarGridSpec(
            num_scalar_prefetch=0,
            grid=(1,),
            in_specs=[
                _full_spec((2, T * BP, D)),     # x, both stacks (time-major, padded)
                _full_spec((2, D, H4)),         # W_ih layer 0
                _full_spec((2, H, H4)),         # W_hh layer 0
                _full_spec((2, 1, H4)),         # bias layer 0
                _full_spec((2, nE, H, H4)),     # W_ih layers 1..
                _full_spec((2, nE, H, H4)),     # W_hh layers 1..
                _full_spec((2, nE, 1, H4)),     # bias layers 1..
                _full_spec((2, H, KP)),         # FC half-weights
                _full_spec((1, KP)),            # FC bias (padded to 128 lanes)
            ],
            out_specs=_full_spec((BP, KP)),
        ),
        compiler_params=pltpu.CompilerParams(
            dimension_semantics=("arbitrary",)),
    )(xs, wih0, whh0, b0, wihR, whhR, bR, wfc, bfc)


# ------------------------------------------------------------------
# Parameters: PyTorch-layout init + one-time packing for the kernel.
# ------------------------------------------------------------------
def init_params(key, input_size, hidden_size, num_layers, num_keys):
    # Deterministic uniform(-1/sqrt(H), 1/sqrt(H)) like PyTorch defaults.
    bound = 1.0 / jnp.sqrt(jnp.float32(hidden_size))

    def u(k, shape):
        return jax.random.uniform(k, shape, jnp.float32, -bound, bound)

    params = {"lstm0": [], "lstm1": []}
    for name in ("lstm0", "lstm1"):
        for layer in range(num_layers):
            d_in = input_size if layer == 0 else hidden_size
            key, k1, k2, k3, k4 = jax.random.split(key, 5)
            params[name].append((u(k1, (4 * hidden_size, d_in)),      # weight_ih_l{layer}
                                 u(k2, (4 * hidden_size, hidden_size)),
                                 u(k3, (4 * hidden_size,)),
                                 u(k4, (4 * hidden_size,))))
    key, k1, k2 = jax.random.split(key, 3)
    params["fc_w"] = u(k1, (num_keys, 2 * hidden_size))
    params["fc_b"] = u(k2, (num_keys,))
    return params


def pack_params(params, hidden_size, num_keys):
    """One-time weight prep: gate reorder (i,f,g,o)->(i,f,o,g), transpose,
    combine biases, split/pad FC weight + bias, stack the two LSTM stacks."""
    H = hidden_size
    perm = jnp.concatenate([jnp.arange(0, 2 * H),
                            jnp.arange(3 * H, 4 * H),
                            jnp.arange(2 * H, 3 * H)])

    def prep(wih, whh, bih, bhh):
        return (jnp.transpose(wih[perm]),           # (D_in, 4H)
                jnp.transpose(whh[perm]),           # (H, 4H)
                (bih + bhh)[perm][None, :])          # (1, 4H)

    wih0_s, whh0_s, b0_s = [], [], []
    wihR_s, whhR_s, bR_s = [], [], []
    for name in ("lstm0", "lstm1"):
        layers = params[name]
        w_i0, w_h0, b0 = prep(*layers[0])
        wih0_s.append(w_i0); whh0_s.append(w_h0); b0_s.append(b0)
        if len(layers) > 1:
            w_i, w_h, bb = zip(*(prep(*lp) for lp in layers[1:]))
            wihR_s.append(jnp.stack(w_i))
            whhR_s.append(jnp.stack(w_h))
            bR_s.append(jnp.stack(bb))
        else:  # dummies (unused) so the kernel signature stays fixed
            wihR_s.append(jnp.zeros((1, H, 4 * H), jnp.float32))
            whhR_s.append(jnp.zeros((1, H, 4 * H), jnp.float32))
            bR_s.append(jnp.zeros((1, 1, 4 * H), jnp.float32))

    KP = _round_up(num_keys, 128)
    w_fc = params["fc_w"]                            # (K, 2H)
    pad = ((0, 0), (0, KP - num_keys))
    w0 = jnp.pad(jnp.transpose(w_fc[:, :H]), pad)    # (H, KP)
    w1 = jnp.pad(jnp.transpose(w_fc[:, H:]), pad)
    b_fc = jnp.pad(params["fc_b"], (0, KP - num_keys))[None, :]   # (1, KP)

    return {
        "wih0": jnp.stack(wih0_s),   # (2, D, 4H)
        "whh0": jnp.stack(whh0_s),   # (2, H, 4H)
        "b0":   jnp.stack(b0_s),     # (2, 1, 4H)
        "wihR": jnp.stack(wihR_s),   # (2, nE, H, 4H)
        "whhR": jnp.stack(whhR_s),   # (2, nE, H, 4H)
        "bR":   jnp.stack(bR_s),     # (2, nE, 1, 4H)
        "wfc":  jnp.stack([w0, w1]), # (2, H, KP)
        "bfc":  b_fc,                # (1, KP)
        "fc_b": params["fc_b"],      # (K,)  (for shape bookkeeping only)
    }


# ------------------------------------------------------------------
# Forward wrapper (input layout prep is plain JAX; everything else in-kernel).
# ------------------------------------------------------------------
@functools.partial(jax.jit, static_argnames=("num_layers",))
def loganomaly_forward(input0, input1, packed, *, num_layers):
    B, T, D = input0.shape
    H = packed["whh0"].shape[1]
    K = packed["fc_b"].shape[0]
    KP = packed["wfc"].shape[-1]
    BP = _round_up(B, 8)                    # pad batch to sublane width
    n_extra = num_layers - 1

    def prep_x(x):
        x = jnp.transpose(x, (1, 0, 2)).astype(jnp.float32)    # (T, B, D)
        x = jnp.pad(x, ((0, 0), (0, BP - B), (0, 0)))          # (T, BP, D)
        return x.reshape(T * BP, D)

    xs = jnp.stack([prep_x(input0), prep_x(input1)])           # (2, T*BP, D)

    out = fused_forward_pallas(
        xs, packed["wih0"], packed["whh0"], packed["b0"],
        packed["wihR"], packed["whhR"], packed["bR"],
        packed["wfc"], packed["bfc"],
        T=T, BP=BP, H=H, KP=KP, n_extra=n_extra)               # (BP, KP)

    return out[:B, :K]


# ------------------------------------------------------------------
# Pure-JAX reference (mirrors PyTorch LSTM / Linear math) for checking.
# ------------------------------------------------------------------
def lstm_stack_ref(x_btd, layer_params):
    B = x_btd.shape[0]
    h_all = x_btd.astype(jnp.float32)
    for (wih, whh, bih, bhh) in layer_params:
        H = whh.shape[1]

        def step(carry, xt):
            h, c = carry
            g = xt @ wih.T + bih + h @ whh.T + bhh
            i_g, f_g, g_g, o_g = jnp.split(g, 4, axis=-1)
            c = jax.nn.sigmoid(f_g) * c + jax.nn.sigmoid(i_g) * jnp.tanh(g_g)
            h = jax.nn.sigmoid(o_g) * jnp.tanh(c)
            return (h, c), h

        init = (jnp.zeros((B, H), jnp.float32), jnp.zeros((B, H), jnp.float32))
        _, ys = jax.lax.scan(step, init, jnp.swapaxes(h_all, 0, 1))
        h_all = jnp.swapaxes(ys, 0, 1)
    return h_all


def loganomaly_ref(input0, input1, params):
    out0 = lstm_stack_ref(input0, params["lstm0"])
    out1 = lstm_stack_ref(input1, params["lstm1"])
    multi = jnp.concatenate([out0[:, -1, :], out1[:, -1, :]], axis=-1)
    return multi @ params["fc_w"].T + params["fc_b"]


if __name__ == "__main__":
    # Small shapes consistent with the module's forward:
    #   features[0], features[1] : [batch, seq, input_size]
    B, T, D = 2, 8, 4
    H, L, K = 32, 2, 28   # hidden_size, num_layers, num_keys

    key = jax.random.PRNGKey(0)
    key, k0, k1 = jax.random.split(key, 3)
    input0 = jax.random.normal(k0, (B, T, D), jnp.float32)
    input1 = jax.random.normal(k1, (B, T, D), jnp.float32)

    params = init_params(key, D, H, L, K)
    packed = pack_params(params, H, K)

    # TODO(synk): attention_net / w_omega / u_omega are defined in the module
    # but never used in forward(), so they are intentionally not implemented.

    out = loganomaly_forward(input0, input1, packed, num_layers=L)
    out = jax.block_until_ready(out)

    ref = loganomaly_ref(input0, input1, params)
    assert out.shape == (B, K)
    assert jnp.allclose(out, ref, atol=1e-4, rtol=1e-4), "mismatch vs reference"

    print("KERNEL_OK")
</pallas_src>

<mosaic_0001>
module attributes {stable_mosaic.version = 11 : i64} {
  func.func @kernel(%arg0: i32, %arg1: memref<2x64x4xf32, #tpu.memory_space<vmem>>, %arg2: memref<2x4x128xf32, #tpu.memory_space<vmem>>, %arg3: memref<2x32x128xf32, #tpu.memory_space<vmem>>, %arg4: memref<2x1x128xf32, #tpu.memory_space<vmem>>, %arg5: memref<2x1x32x128xf32, #tpu.memory_space<vmem>>, %arg6: memref<2x1x32x128xf32, #tpu.memory_space<vmem>>, %arg7: memref<2x1x1x128xf32, #tpu.memory_space<vmem>>, %arg8: memref<2x32x128xf32, #tpu.memory_space<vmem>>, %arg9: memref<1x128xf32, #tpu.memory_space<vmem>>, %arg10: memref<8x128xf32, #tpu.memory_space<vmem>>) attributes {dimension_semantics = [#tpu.dimension_semantics<arbitrary>], iteration_bounds = array<i64: 1>, scalar_prefetch = 0 : i64, scratch_operands = 0 : i64, tpu.core_type = #tpu.core_type<tc>, window_params = [{pipeline_mode = #tpu.pipeline_mode<synchronous>, transform_indices = @transform_0, window_bounds = array<i64: 2, 64, 4>}, {pipeline_mode = #tpu.pipeline_mode<synchronous>, transform_indices = @transform_1, window_bounds = array<i64: 2, 4, 128>}, {pipeline_mode = #tpu.pipeline_mode<synchronous>, transform_indices = @transform_2, window_bounds = array<i64: 2, 32, 128>}, {pipeline_mode = #tpu.pipeline_mode<synchronous>, transform_indices = @transform_3, window_bounds = array<i64: 2, 1, 128>}, {pipeline_mode = #tpu.pipeline_mode<synchronous>, transform_indices = @transform_4, window_bounds = array<i64: 2, 1, 32, 128>}, {pipeline_mode = #tpu.pipeline_mode<synchronous>, transform_indices = @transform_5, window_bounds = array<i64: 2, 1, 32, 128>}, {pipeline_mode = #tpu.pipeline_mode<synchronous>, transform_indices = @transform_6, window_bounds = array<i64: 2, 1, 1, 128>}, {pipeline_mode = #tpu.pipeline_mode<synchronous>, transform_indices = @transform_7, window_bounds = array<i64: 2, 32, 128>}, {pipeline_mode = #tpu.pipeline_mode<synchronous>, transform_indices = @transform_8, window_bounds = array<i64: 1, 128>}, {pipeline_mode = #tpu.pipeline_mode<synchronous>, transform_indices = @transform_9, window_bounds = array<i64: 8, 128>}]} {
    %c0 = arith.constant 0 : index
    %c0_0 = arith.constant 0 : index
    %c0_1 = arith.constant 0 : index
    %0 = vector.load %arg1[%c0, %c0_0, %c0_1] : memref<2x64x4xf32, #tpu.memory_space<vmem>>, vector<1x64x4xf32>
    %1 = vector.shape_cast %0 : vector<1x64x4xf32> to vector<64x4xf32>
    %c0_2 = arith.constant 0 : index
    %c0_3 = arith.constant 0 : index
    %c0_4 = arith.constant 0 : index
    %2 = vector.load %arg2[%c0_2, %c0_3, %c0_4] : memref<2x4x128xf32, #tpu.memory_space<vmem>>, vector<1x4x128xf32>
    %3 = vector.shape_cast %2 : vector<1x4x128xf32> to vector<4x128xf32>
    %cst = arith.constant dense<0.000000e+00> : vector<64x128xf32>
    %4 = tpu.matmul %1, %3, %cst {dimension_numbers = #tpu.dot_dimension_numbers<[1], [0], [0], [1], [0, 0, 1, 1], [], []>} : vector<64x4xf32>, vector<4x128xf32>, vector<64x128xf32> -> vector<64x128xf32>
    %c0_5 = arith.constant 0 : index
    %c0_6 = arith.constant 0 : index
    %c0_7 = arith.constant 0 : index
    %5 = vector.load %arg4[%c0_5, %c0_6, %c0_7] : memref<2x1x128xf32, #tpu.memory_space<vmem>>, vector<1x1x128xf32>
    %6 = vector.shape_cast %5 : vector<1x1x128xf32> to vector<1x128xf32>
    %7 = vector.broadcast %6 : vector<1x128xf32> to vector<64x128xf32>
    %8 = arith.addf %4, %7 : vector<64x128xf32>
    %c1 = arith.constant 1 : index
    %c0_8 = arith.constant 0 : index
    %c0_9 = arith.constant 0 : index
    %9 = vector.load %arg1[%c1, %c0_8, %c0_9] : memref<2x64x4xf32, #tpu.memory_space<vmem>>, vector<1x64x4xf32>
    %10 = vector.shape_cast %9 : vector<1x64x4xf32> to vector<64x4xf32>
    %c1_10 = arith.constant 1 : index
    %c0_11 = arith.constant 0 : index
    %c0_12 = arith.constant 0 : index
    %11 = vector.load %arg2[%c1_10, %c0_11, %c0_12] : memref<2x4x128xf32, #tpu.memory_space<vmem>>, vector<1x4x128xf32>
    %12 = vector.shape_cast %11 : vector<1x4x128xf32> to vector<4x128xf32>
    %cst_13 = arith.constant dense<0.000000e+00> : vector<64x128xf32>
    %13 = tpu.matmul %10, %12, %cst_13 {dimension_numbers = #tpu.dot_dimension_numbers<[1], [0], [0], [1], [0, 0, 1, 1], [], []>} : vector<64x4xf32>, vector<4x128xf32>, vector<64x128xf32> -> vector<64x128xf32>
    %c1_14 = arith.constant 1 : index
    %c0_15 = arith.constant 0 : index
    %c0_16 = arith.constant 0 : index
    %14 = vector.load %arg4[%c1_14, %c0_15, %c0_16] : memref<2x1x128xf32, #tpu.memory_space<vmem>>, vector<1x1x128xf32>
    %15 = vector.shape_cast %14 : vector<1x1x128xf32> to vector<1x128xf32>
    %16 = vector.broadcast %15 : vector<1x128xf32> to vector<64x128xf32>
    %17 = arith.addf %13, %16 : vector<64x128xf32>
    %c0_17 = arith.constant 0 : index
    %c0_18 = arith.constant 0 : index
    %c0_19 = arith.constant 0 : index
    %18 = vector.load %arg3[%c0_17, %c0_18, %c0_19] : memref<2x32x128xf32, #tpu.memory_space<vmem>>, vector<1x32x128xf32>
    %19 = vector.shape_cast %18 : vector<1x32x128xf32> to vector<32x128xf32>
    %c1_20 = arith.constant 1 : index
    %c0_21 = arith.constant 0 : index
    %c0_22 = arith.constant 0 : index
    %20 = vector.load %arg3[%c1_20, %c0_21, %c0_22] : memref<2x32x128xf32, #tpu.memory_space<vmem>>, vector<1x32x128xf32>
    %21 = vector.shape_cast %20 : vector<1x32x128xf32> to vector<32x128xf32>
    %cst_23 = arith.constant 0.000000e+00 : f32
    %22 = vector.broadcast %cst_23 : f32 to vector<8x32xf32>
    %cst_24 = arith.constant dense<0.000000e+00> : vector<8x128xf32>
    %23 = tpu.matmul %22, %19, %cst_24 {dimension_numbers = #tpu.dot_dimension_numbers<[1], [0], [0], [1], [0, 0, 1, 1], [], []>} : vector<8x32xf32>, vector<32x128xf32>, vector<8x128xf32> -> vector<8x128xf32>
    %24 = vector.extract_strided_slice %8 {offsets = [0, 0], sizes = [8, 128], strides = [1, 1]} : vector<64x128xf32> to vector<8x128xf32>
    %25 = arith.addf %23, %24 : vector<8x128xf32>
    %cst_25 = arith.constant dense<0.000000e+00> : vector<8x128xf32>
    %26 = tpu.matmul %22, %21, %cst_25 {dimension_numbers = #tpu.dot_dimension_numbers<[1], [0], [0], [1], [0, 0, 1, 1], [], []>} : vector<8x32xf32>, vector<32x128xf32>, vector<8x128xf32> -> vector<8x128xf32>
    %27 = vector.extract_strided_slice %17 {offsets = [0, 0], sizes = [8, 128], strides = [1, 1]} : vector<64x128xf32> to vector<8x128xf32>
    %28 = arith.addf %26, %27 : vector<8x128xf32>
    %29 = vector.extract_strided_slice %25 {offsets = [0, 0], sizes = [8, 96], strides = [1, 1]} : vector<8x128xf32> to vector<8x96xf32>
    %cst_26 = arith.constant 5.000000e-01 : f32
    %30 = vector.broadcast %cst_26 : f32 to vector<8x96xf32>
    %31 = arith.mulf %30, %29 : vector<8x96xf32>
    %32 = math.tanh %31 : vector<8x96xf32>
    %cst_27 = arith.constant 5.000000e-01 : f32
    %33 = vector.broadcast %cst_27 : f32 to vector<8x96xf32>
    %34 = arith.mulf %33, %32 : vector<8x96xf32>
    %cst_28 = arith.constant 5.000000e-01 : f32
    %35 = vector.broadcast %cst_28 : f32 to vector<8x96xf32>
    %36 = arith.addf %34, %35 : vector<8x96xf32>
    %37 = vector.extract_strided_slice %36 {offsets = [0, 0], sizes = [8, 32], strides = [1, 1]} : vector<8x96xf32> to vector<8x32xf32>
    %38 = vector.extract_strided_slice %36 {offsets = [0, 32], sizes = [8, 32], strides = [1, 1]} : vector<8x96xf32> to vector<8x32xf32>
    %39 = vector.extract_strided_slice %36 {offsets = [0, 64], sizes = [8, 32], strides = [1, 1]} : vector<8x96xf32> to vector<8x32xf32>
    %40 = vector.extract_strided_slice %25 {offsets = [0, 96], sizes = [8, 32], strides = [1, 1]} : vector<8x128xf32> to vector<8x32xf32>
    %41 = math.tanh %40 : vector<8x32xf32>
    %42 = arith.mulf %38, %22 : vector<8x32xf32>
    %43 = arith.mulf %37, %41 : vector<8x32xf32>
    %44 = arith.addf %42, %43 : vector<8x32xf32>
    %45 = math.tanh %44 : vector<8x32xf32>
    %46 = arith.mulf %39, %45 : vector<8x32xf32>
    %47 = vector.extract_strided_slice %28 {offsets = [0, 0], sizes = [8, 96], strides = [1, 1]} : vector<8x128xf32> to vector<8x96xf32>
    %cst_29 = arith.constant 5.000000e-01 : f32
    %48 = vector.broadcast %cst_29 : f32 to vector<8x96xf32>
    %49 = arith.mulf %48, %47 : vector<8x96xf32>
    %50 = math.tanh %49 : vector<8x96xf32>
    %cst_30 = arith.constant 5.000000e-01 : f32
    %51 = vector.broadcast %cst_30 : f32 to vector<8x96xf32>
    %52 = arith.mulf %51, %50 : vector<8x96xf32>
    %cst_31 = arith.constant 5.000000e-01 : f32
    %53 = vector.broadcast %cst_31 : f32 to vector<8x96xf32>
    %54 = arith.addf %52, %53 : vector<8x96xf32>
    %55 = vector.extract_strided_slice %54 {offsets = [0, 0], sizes = [8, 32], strides = [1, 1]} : vector<8x96xf32> to vector<8x32xf32>
    %56 = vector.extract_strided_slice %54 {offsets = [0, 32], sizes = [8, 32], strides = [1, 1]} : vector<8x96xf32> to vector<8x32xf32>
    %57 = vector.extract_strided_slice %54 {offsets = [0, 64], sizes = [8, 32], strides = [1, 1]} : vector<8x96xf32> to vector<8x32xf32>
    %58 = vector.extract_strided_slice %28 {offsets = [0, 96], sizes = [8, 32], strides = [1, 1]} : vector<8x128xf32> to vector<8x32xf32>
    %59 = math.tanh %58 : vector<8x32xf32>
    %60 = arith.mulf %56, %22 : vector<8x32xf32>
    %61 = arith.mulf %55, %59 : vector<8x32xf32>
    %62 = arith.addf %60, %61 : vector<8x32xf32>
    %63 = math.tanh %62 : vector<8x32xf32>
    %64 = arith.mulf %57, %63 : vector<8x32xf32>
    %cst_32 = arith.constant dense<0.000000e+00> : vector<8x128xf32>
    %65 = tpu.matmul %46, %19, %cst_32 {dimension_numbers = #tpu.dot_dimension_numbers<[1], [0], [0], [1], [0, 0, 1, 1], [], []>} : vector<8x32xf32>, vector<32x128xf32>, vector<8x128xf32> -> vector<8x128xf32>
    %66 = vector.extract_strided_slice %8 {offsets = [8, 0], sizes = [8, 128], strides = [1, 1]} : vector<64x128xf32> to vector<8x128xf32>
    %67 = arith.addf %65, %66 : vector<8x128xf32>
    %cst_33 = arith.constant dense<0.000000e+00> : vector<8x128xf32>
    %68 = tpu.matmul %64, %21, %cst_33 {dimension_numbers = #tpu.dot_dimension_numbers<[1], [0], [0], [1], [0, 0, 1, 1], [], []>} : vector<8x32xf32>, vector<32x128xf32>, vector<8x128xf32> -> vector<8x128xf32>
    %69 = vector.extract_strided_slice %17 {offsets = [8, 0], sizes = [8, 128], strides = [1, 1]} : vector<64x128xf32> to vector<8x128xf32>
    %70 = arith.addf %68, %69 : vector<8x128xf32>
    %71 = vector.extract_strided_slice %67 {offsets = [0, 0], sizes = [8, 96], strides = [1, 1]} : vector<8x128xf32> to vector<8x96xf32>
    %cst_34 = arith.constant 5.000000e-01 : f32
    %72 = vector.broadcast %cst_34 : f32 to vector<8x96xf32>
    %73 = arith.mulf %72, %71 : vector<8x96xf32>
    %74 = math.tanh %73 : vector<8x96xf32>
    %cst_35 = arith.constant 5.000000e-01 : f32
    %75 = vector.broadcast %cst_35 : f32 to vector<8x96xf32>
    %76 = arith.mulf %75, %74 : vector<8x96xf32>
    %cst_36 = arith.constant 5.000000e-01 : f32
    %77 = vector.broadcast %cst_36 : f32 to vector<8x96xf32>
    %78 = arith.addf %76, %77 : vector<8x96xf32>
    %79 = vector.extract_strided_slice %78 {offsets = [0, 0], sizes = [8, 32], strides = [1, 1]} : vector<8x96xf32> to vector<8x32xf32>
    %80 = vector.extract_strided_slice %78 {offsets = [0, 32], sizes = [8, 32], strides = [1, 1]} : vector<8x96xf32> to vector<8x32xf32>
    %81 = vector.extract_strided_slice %78 {offsets = [0, 64], sizes = [8, 32], strides = [1, 1]} : vector<8x96xf32> to vector<8x32xf32>
    %82 = vector.extract_strided_slice %67 {offsets = [0, 96], sizes = [8, 32], strides = [1, 1]} : vector<8x128xf32> to vector<8x32xf32>
    %83 = math.tanh %82 : vector<8x32xf32>
    %84 = arith.mulf %80, %44 : vector<8x32xf32>
    %85 = arith.mulf %79, %83 : vector<8x32xf32>
    %86 = arith.addf %84, %85 : vector<8x32xf32>
    %87 = math.tanh %86 : vector<8x32xf32>
    %88 = arith.mulf %81, %87 : vector<8x32xf32>
    %89 = vector.extract_strided_slice %70 {offsets = [0, 0], sizes = [8, 96], strides = [1, 1]} : vector<8x128xf32> to vector<8x96xf32>
    %cst_37 = arith.constant 5.000000e-01 : f32
    %90 = vector.broadcast %cst_37 : f32 to vector<8x96xf32>
    %91 = arith.mulf %90, %89 : vector<8x96xf32>
    %92 = math.tanh %91 : vector<8x96xf32>
    %cst_38 = arith.constant 5.000000e-01 : f32
    %93 = vector.broadcast %cst_38 : f32 to vector<8x96xf32>
    %94 = arith.mulf %93, %92 : vector<8x96xf32>
    %cst_39 = arith.constant 5.000000e-01 : f32
    %95 = vector.broadcast %cst_39 : f32 to vector<8x96xf32>
    %96 = arith.addf %94, %95 : vector<8x96xf32>
    %97 = vector.extract_strided_slice %96 {offsets = [0, 0], sizes = [8, 32], strides = [1, 1]} : vector<8x96xf32> to vector<8x32xf32>
    %98 = vector.extract_strided_slice %96 {offsets = [0, 32], sizes = [8, 32], strides = [1, 1]} : vector<8x96xf32> to vector<8x32xf32>
    %99 = vector.extract_strided_slice %96 {offsets = [0, 64], sizes = [8, 32], strides = [1, 1]} : vector<8x96xf32> to vector<8x32xf32>
    %100 = vector.extract_strided_slice %70 {offsets = [0, 96], sizes = [8, 32], strides = [1, 1]} : vector<8x128xf32> to vector<8x32xf32>
    %101 = math.tanh %100 : vector<8x32xf32>
    %102 = arith.mulf %98, %62 : vector<8x32xf32>
    %103 = arith.mulf %97, %101 : vector<8x32xf32>
    %104 = arith.addf %102, %103 : vector<8x32xf32>
    %105 = math.tanh %104 : vector<8x32xf32>
    %106 = arith.mulf %99, %105 : vector<8x32xf32>
    %cst_40 = arith.constant dense<0.000000e+00> : vector<8x128xf32>
    %107 = tpu.matmul %88, %19, %cst_40 {dimension_numbers = #tpu.dot_dimension_numbers<[1], [0], [0], [1], [0, 0, 1, 1], [], []>} : vector<8x32xf32>, vector<32x128xf32>, vector<8x128xf32> -> vector<8x128xf32>
    %108 = vector.extract_strided_slice %8 {offsets = [16, 0], sizes = [8, 128], strides = [1, 1]} : vector<64x128xf32> to vector<8x128xf32>
    %109 = arith.addf %107, %108 : vector<8x128xf32>
    %cst_41 = arith.constant dense<0.000000e+00> : vector<8x128xf32>
    %110 = tpu.matmul %106, %21, %cst_41 {dimension_numbers = #tpu.dot_dimension_numbers<[1], [0], [0], [1], [0, 0, 1, 1], [], []>} : vector<8x32xf32>, vector<32x128xf32>, vector<8x128xf32> -> vector<8x128xf32>
    %111 = vector.extract_strided_slice %17 {offsets = [16, 0], sizes = [8, 128], strides = [1, 1]} : vector<64x128xf32> to vector<8x128xf32>
    %112 = arith.addf %110, %111 : vector<8x128xf32>
    %113 = vector.extract_strided_slice %109 {offsets = [0, 0], sizes = [8, 96], strides = [1, 1]} : vector<8x128xf32> to vector<8x96xf32>
    %cst_42 = arith.constant 5.000000e-01 : f32
    %114 = vector.broadcast %cst_42 : f32 to vector<8x96xf32>
    %115 = arith.mulf %114, %113 : vector<8x96xf32>
    %116 = math.tanh %115 : vector<8x96xf32>
    %cst_43 = arith.constant 5.000000e-01 : f32
    %117 = vector.broadcast %cst_43 : f32 to vector<8x96xf32>
    %118 = arith.mulf %117, %116 : vector<8x96xf32>
    %cst_44 = arith.constant 5.000000e-01 : f32
    %119 = vector.broadcast %cst_44 : f32 to vector<8x96xf32>
    %120 = arith.addf %118, %119 : vector<8x96xf32>
    %121 = vector.extract_strided_slice %120 {offsets = [0, 0], sizes = [8, 32], strides = [1, 1]} : vector<8x96xf32> to vector<8x32xf32>
    %122 = vector.extract_strided_slice %120 {offsets = [0, 32], sizes = [8, 32], strides = [1, 1]} : vector<8x96xf32> to vector<8x32xf32>
    %123 = vector.extract_strided_slice %120 {offsets = [0, 64], sizes = [8, 32], strides = [1, 1]} : vector<8x96xf32> to vector<8x32xf32>
    %124 = vector.extract_strided_slice %109 {offsets = [0, 96], sizes = [8, 32], strides = [1, 1]} : vector<8x128xf32> to vector<8x32xf32>
    %125 = math.tanh %124 : vector<8x32xf32>
    %126 = arith.mulf %122, %86 : vector<8x32xf32>
    %127 = arith.mulf %121, %125 : vector<8x32xf32>
    %128 = arith.addf %126, %127 : vector<8x32xf32>
    %129 = math.tanh %128 : vector<8x32xf32>
    %130 = arith.mulf %123, %129 : vector<8x32xf32>
    %131 = vector.extract_strided_slice %112 {offsets = [0, 0], sizes = [8, 96], strides = [1, 1]} : vector<8x128xf32> to vector<8x96xf32>
    %cst_45 = arith.constant 5.000000e-01 : f32
    %132 = vector.broadcast %cst_45 : f32 to vector<8x96xf32>
    %133 = arith.mulf %132, %131 : vector<8x96xf32>
    %134 = math.tanh %133 : vector<8x96xf32>
    %cst_46 = arith.constant 5.000000e-01 : f32
    %135 = vector.broadcast %cst_46 : f32 to vector<8x96xf32>
    %136 = arith.mulf %135, %134 : vector<8x96xf32>
    %cst_47 = arith.constant 5.000000e-01 : f32
    %137 = vector.broadcast %cst_47 : f32 to vector<8x96xf32>
    %138 = arith.addf %136, %137 : vector<8x96xf32>
    %139 = vector.extract_strided_slice %138 {offsets = [0, 0], sizes = [8, 32], strides = [1, 1]} : vector<8x96xf32> to vector<8x32xf32>
    %140 = vector.extract_strided_slice %138 {offsets = [0, 32], sizes = [8, 32], strides = [1, 1]} : vector<8x96xf32> to vector<8x32xf32>
    %141 = vector.extract_strided_slice %138 {offsets = [0, 64], sizes = [8, 32], strides = [1, 1]} : vector<8x96xf32> to vector<8x32xf32>
    %142 = vector.extract_strided_slice %112 {offsets = [0, 96], sizes = [8, 32], strides = [1, 1]} : vector<8x128xf32> to vector<8x32xf32>
    %143 = math.tanh %142 : vector<8x32xf32>
    %144 = arith.mulf %140, %104 : vector<8x32xf32>
    %145 = arith.mulf %139, %143 : vector<8x32xf32>
    %146 = arith.addf %144, %145 : vector<8x32xf32>
    %147 = math.tanh %146 : vector<8x32xf32>
    %148 = arith.mulf %141, %147 : vector<8x32xf32>
    %cst_48 = arith.constant dense<0.000000e+00> : vector<8x128xf32>
    %149 = tpu.matmul %130, %19, %cst_48 {dimension_numbers = #tpu.dot_dimension_numbers<[1], [0], [0], [1], [0, 0, 1, 1], [], []>} : vector<8x32xf32>, vector<32x128xf32>, vector<8x128xf32> -> vector<8x128xf32>
    %150 = vector.extract_strided_slice %8 {offsets = [24, 0], sizes = [8, 128], strides = [1, 1]} : vector<64x128xf32> to vector<8x128xf32>
    %151 = arith.addf %149, %150 : vector<8x128xf32>
    %cst_49 = arith.constant dense<0.000000e+00> : vector<8x128xf32>
    %152 = tpu.matmul %148, %21, %cst_49 {dimension_numbers = #tpu.dot_dimension_numbers<[1], [0], [0], [1], [0, 0, 1, 1], [], []>} : vector<8x32xf32>, vector<32x128xf32>, vector<8x128xf32> -> vector<8x128xf32>
    %153 = vector.extract_strided_slice %17 {offsets = [24, 0], sizes = [8, 128], strides = [1, 1]} : vector<64x128xf32> to vector<8x128xf32>
    %154 = arith.addf %152, %153 : vector<8x128xf32>
    %155 = vector.extract_strided_slice %151 {offsets = [0, 0], sizes = [8, 96], strides = [1, 1]} : vector<8x128xf32> to vector<8x96xf32>
    %cst_50 = arith.constant 5.000000e-01 : f32
    %156 = vector.broadcast %cst_50 : f32 to vector<8x96xf32>
    %157 = arith.mulf %156, %155 : vector<8x96xf32>
    %158 = math.tanh %157 : vector<8x96xf32>
    %cst_51 = arith.constant 5.000000e-01 : f32
    %159 = vector.broadcast %cst_51 : f32 to vector<8x96xf32>
    %160 = arith.mulf %159, %158 : vector<8x96xf32>
    %cst_52 = arith.constant 5.000000e-01 : f32
    %161 = vector.broadcast %cst_52 : f32 to vector<8x96xf32>
    %162 = arith.addf %160, %161 : vector<8x96xf32>
    %163 = vector.extract_strided_slice %162 {offsets = [0, 0], sizes = [8, 32], strides = [1, 1]} : vector<8x96xf32> to vector<8x32xf32>
    %164 = vector.extract_strided_slice %162 {offsets = [0, 32], sizes = [8, 32], strides = [1, 1]} : vector<8x96xf32> to vector<8x32xf32>
    %165 = vector.extract_strided_slice %162 {offsets = [0, 64], sizes = [8, 32], strides = [1, 1]} : vector<8x96xf32> to vector<8x32xf32>
    %166 = vector.extract_strided_slice %151 {offsets = [0, 96], sizes = [8, 32], strides = [1, 1]} : vector<8x128xf32> to vector<8x32xf32>
    %167 = math.tanh %166 : vector<8x32xf32>
    %168 = arith.mulf %164, %128 : vector<8x32xf32>
    %169 = arith.mulf %163, %167 : vector<8x32xf32>
    %170 = arith.addf %168, %169 : vector<8x32xf32>
    %171 = math.tanh %170 : vector<8x32xf32>
    %172 = arith.mulf %165, %171 : vector<8x32xf32>
    %173 = vector.extract_strided_slice %154 {offsets = [0, 0], sizes = [8, 96], strides = [1, 1]} : vector<8x128xf32> to vector<8x96xf32>
    %cst_53 = arith.constant 5.000000e-01 : f32
    %174 = vector.broadcast %cst_53 : f32 to vector<8x96xf32>
    %175 = arith.mulf %174, %173 : vector<8x96xf32>
    %176 = math.tanh %175 : vector<8x96xf32>
    %cst_54 = arith.constant 5.000000e-01 : f32
    %177 = vector.broadcast %cst_54 : f32 to vector<8x96xf32>
    %178 = arith.mulf %177, %176 : vector<8x96xf32>
    %cst_55 = arith.constant 5.000000e-01 : f32
    %179 = vector.broadcast %cst_55 : f32 to vector<8x96xf32>
    %180 = arith.addf %178, %179 : vector<8x96xf32>
    %181 = vector.extract_strided_slice %180 {offsets = [0, 0], sizes = [8, 32], strides = [1, 1]} : vector<8x96xf32> to vector<8x32xf32>
    %182 = vector.extract_strided_slice %180 {offsets = [0, 32], sizes = [8, 32], strides = [1, 1]} : vector<8x96xf32> to vector<8x32xf32>
    %183 = vector.extract_strided_slice %180 {offsets = [0, 64], sizes = [8, 32], strides = [1, 1]} : vector<8x96xf32> to vector<8x32xf32>
    %184 = vector.extract_strided_slice %154 {offsets = [0, 96], sizes = [8, 32], strides = [1, 1]} : vector<8x128xf32> to vector<8x32xf32>
    %185 = math.tanh %184 : vector<8x32xf32>
    %186 = arith.mulf %182, %146 : vector<8x32xf32>
    %187 = arith.mulf %181, %185 : vector<8x32xf32>
    %188 = arith.addf %186, %187 : vector<8x32xf32>
    %189 = math.tanh %188 : vector<8x32xf32>
    %190 = arith.mulf %183, %189 : vector<8x32xf32>
    %cst_56 = arith.constant dense<0.000000e+00> : vector<8x128xf32>
    %191 = tpu.matmul %172, %19, %cst_56 {dimension_numbers = #tpu.dot_dimension_numbers<[1], [0], [0], [1], [0, 0, 1, 1], [], []>} : vector<8x32xf32>, vector<32x128xf32>, vector<8x128xf32> -> vector<8x128xf32>
    %192 = vector.extract_strided_slice %8 {offsets = [32, 0], sizes = [8, 128], strides = [1, 1]} : vector<64x128xf32> to vector<8x128xf32>
    %193 = arith.addf %191, %192 : vector<8x128xf32>
    %cst_57 = arith.constant dense<0.000000e+00> : vector<8x128xf32>
    %194 = tpu.matmul %190, %21, %cst_57 {dimension_numbers = #tpu.dot_dimension_numbers<[1], [0], [0], [1], [0, 0, 1, 1], [], []>} : vector<8x32xf32>, vector<32x128xf32>, vector<8x128xf32> -> vector<8x128xf32>
    %195 = vector.extract_strided_slice %17 {offsets = [32, 0], sizes = [8, 128], strides = [1, 1]} : vector<64x128xf32> to vector<8x128xf32>
    %196 = arith.addf %194, %195 : vector<8x128xf32>
    %197 = vector.extract_strided_slice %193 {offsets = [0, 0], sizes = [8, 96], strides = [1, 1]} : vector<8x128xf32> to vector<8x96xf32>
    %cst_58 = arith.constant 5.000000e-01 : f32
    %198 = vector.broadcast %cst_58 : f32 to vector<8x96xf32>
    %199 = arith.mulf %198, %197 : vector<8x96xf32>
    %200 = math.tanh %199 : vector<8x96xf32>
    %cst_59 = arith.constant 5.000000e-01 : f32
    %201 = vector.broadcast %cst_59 : f32 to vector<8x96xf32>
    %202 = arith.mulf %201, %200 : vector<8x96xf32>
    %cst_60 = arith.constant 5.000000e-01 : f32
    %203 = vector.broadcast %cst_60 : f32 to vector<8x96xf32>
    %204 = arith.addf %202, %203 : vector<8x96xf32>
    %205 = vector.extract_strided_slice %204 {offsets = [0, 0], sizes = [8, 32], strides = [1, 1]} : vector<8x96xf32> to vector<8x32xf32>
    %206 = vector.extract_strided_slice %204 {offsets = [0, 32], sizes = [8, 32], strides = [1, 1]} : vector<8x96xf32> to vector<8x32xf32>
    %207 = vector.extract_strided_slice %204 {offsets = [0, 64], sizes = [8, 32], strides = [1, 1]} : vector<8x96xf32> to vector<8x32xf32>
    %208 = vector.extract_strided_slice %193 {offsets = [0, 96], sizes = [8, 32], strides = [1, 1]} : vector<8x128xf32> to vector<8x32xf32>
    %209 = math.tanh %208 : vector<8x32xf32>
    %210 = arith.mulf %206, %170 : vector<8x32xf32>
    %211 = arith.mulf %205, %209 : vector<8x32xf32>
    %212 = arith.addf %210, %211 : vector<8x32xf32>
    %213 = math.tanh %212 : vector<8x32xf32>
    %214 = arith.mulf %207, %213 : vector<8x32xf32>
    %215 = vector.extract_strided_slice %196 {offsets = [0, 0], sizes = [8, 96], strides = [1, 1]} : vector<8x128xf32> to vector<8x96xf32>
    %cst_61 = arith.constant 5.000000e-01 : f32
    %216 = vector.broadcast %cst_61 : f32 to vector<8x96xf32>
    %217 = arith.mulf %216, %215 : vector<8x96xf32>
    %218 = math.tanh %217 : vector<8x96xf32>
    %cst_62 = arith.constant 5.000000e-01 : f32
    %219 = vector.broadcast %cst_62 : f32 to vector<8x96xf32>
    %220 = arith.mulf %219, %218 : vector<8x96xf32>
    %cst_63 = arith.constant 5.000000e-01 : f32
    %221 = vector.broadcast %cst_63 : f32 to vector<8x96xf32>
    %222 = arith.addf %220, %221 : vector<8x96xf32>
    %223 = vector.extract_strided_slice %222 {offsets = [0, 0], sizes = [8, 32], strides = [1, 1]} : vector<8x96xf32> to vector<8x32xf32>
    %224 = vector.extract_strided_slice %222 {offsets = [0, 32], sizes = [8, 32], strides = [1, 1]} : vector<8x96xf32> to vector<8x32xf32>
    %225 = vector.extract_strided_slice %222 {offsets = [0, 64], sizes = [8, 32], strides = [1, 1]} : vector<8x96xf32> to vector<8x32xf32>
    %226 = vector.extract_strided_slice %196 {offsets = [0, 96], sizes = [8, 32], strides = [1, 1]} : vector<8x128xf32> to vector<8x32xf32>
    %227 = math.tanh %226 : vector<8x32xf32>
    %228 = arith.mulf %224, %188 : vector<8x32xf32>
    %229 = arith.mulf %223, %227 : vector<8x32xf32>
    %230 = arith.addf %228, %229 : vector<8x32xf32>
    %231 = math.tanh %230 : vector<8x32xf32>
    %232 = arith.mulf %225, %231 : vector<8x32xf32>
    %cst_64 = arith.constant dense<0.000000e+00> : vector<8x128xf32>
    %233 = tpu.matmul %214, %19, %cst_64 {dimension_numbers = #tpu.dot_dimension_numbers<[1], [0], [0], [1], [0, 0, 1, 1], [], []>} : vector<8x32xf32>, vector<32x128xf32>, vector<8x128xf32> -> vector<8x128xf32>
    %234 = vector.extract_strided_slice %8 {offsets = [40, 0], sizes = [8, 128], strides = [1, 1]} : vector<64x128xf32> to vector<8x128xf32>
    %235 = arith.addf %233, %234 : vector<8x128xf32>
    %cst_65 = arith.constant dense<0.000000e+00> : vector<8x128xf32>
    %236 = tpu.matmul %232, %21, %cst_65 {dimension_numbers = #tpu.dot_dimension_numbers<[1], [0], [0], [1], [0, 0, 1, 1], [], []>} : vector<8x32xf32>, vector<32x128xf32>, vector<8x128xf32> -> vector<8x128xf32>
    %237 = vector.extract_strided_slice %17 {offsets = [40, 0], sizes = [8, 128], strides = [1, 1]} : vector<64x128xf32> to vector<8x128xf32>
    %238 = arith.addf %236, %237 : vector<8x128xf32>
    %239 = vector.extract_strided_slice %235 {offsets = [0, 0], sizes = [8, 96], strides = [1, 1]} : vector<8x128xf32> to vector<8x96xf32>
    %cst_66 = arith.constant 5.000000e-01 : f32
    %240 = vector.broadcast %cst_66 : f32 to vector<8x96xf32>
    %241 = arith.mulf %240, %239 : vector<8x96xf32>
    %242 = math.tanh %241 : vector<8x96xf32>
    %cst_67 = arith.constant 5.000000e-01 : f32
    %243 = vector.broadcast %cst_67 : f32 to vector<8x96xf32>
    %244 = arith.mulf %243, %242 : vector<8x96xf32>
    %cst_68 = arith.constant 5.000000e-01 : f32
    %245 = vector.broadcast %cst_68 : f32 to vector<8x96xf32>
    %246 = arith.addf %244, %245 : vector<8x96xf32>
    %247 = vector.extract_strided_slice %246 {offsets = [0, 0], sizes = [8, 32], strides = [1, 1]} : vector<8x96xf32> to vector<8x32xf32>
    %248 = vector.extract_strided_slice %246 {offsets = [0, 32], sizes = [8, 32], strides = [1, 1]} : vector<8x96xf32> to vector<8x32xf32>
    %249 = vector.extract_strided_slice %246 {offsets = [0, 64], sizes = [8, 32], strides = [1, 1]} : vector<8x96xf32> to vector<8x32xf32>
    %250 = vector.extract_strided_slice %235 {offsets = [0, 96], sizes = [8, 32], strides = [1, 1]} : vector<8x128xf32> to vector<8x32xf32>
    %251 = math.tanh %250 : vector<8x32xf32>
    %252 = arith.mulf %248, %212 : vector<8x32xf32>
    %253 = arith.mulf %247, %251 : vector<8x32xf32>
    %254 = arith.addf %252, %253 : vector<8x32xf32>
    %255 = math.tanh %254 : vector<8x32xf32>
    %256 = arith.mulf %249, %255 : vector<8x32xf32>
    %257 = vector.extract_strided_slice %238 {offsets = [0, 0], sizes = [8, 96], strides = [1, 1]} : vector<8x128xf32> to vector<8x96xf32>
    %cst_69 = arith.constant 5.000000e-01 : f32
    %258 = vector.broadcast %cst_69 : f32 to vector<8x96xf32>
    %259 = arith.mulf %258, %257 : vector<8x96xf32>
    %260 = math.tanh %259 : vector<8x96xf32>
    %cst_70 = arith.constant 5.000000e-01 : f32
    %261 = vector.broadcast %cst_70 : f32 to vector<8x96xf32>
    %262 = arith.mulf %261, %260 : vector<8x96xf32>
    %cst_71 = arith.constant 5.000000e-01 : f32
    %263 = vector.broadcast %cst_71 : f32 to vector<8x96xf32>
    %264 = arith.addf %262, %263 : vector<8x96xf32>
    %265 = vector.extract_strided_slice %264 {offsets = [0, 0], sizes = [8, 32], strides = [1, 1]} : vector<8x96xf32> to vector<8x32xf32>
    %266 = vector.extract_strided_slice %264 {offsets = [0, 32], sizes = [8, 32], strides = [1, 1]} : vector<8x96xf32> to vector<8x32xf32>
    %267 = vector.extract_strided_slice %264 {offsets = [0, 64], sizes = [8, 32], strides = [1, 1]} : vector<8x96xf32> to vector<8x32xf32>
    %268 = vector.extract_strided_slice %238 {offsets = [0, 96], sizes = [8, 32], strides = [1, 1]} : vector<8x128xf32> to vector<8x32xf32>
    %269 = math.tanh %268 : vector<8x32xf32>
    %270 = arith.mulf %266, %230 : vector<8x32xf32>
    %271 = arith.mulf %265, %269 : vector<8x32xf32>
    %272 = arith.addf %270, %271 : vector<8x32xf32>
    %273 = math.tanh %272 : vector<8x32xf32>
    %274 = arith.mulf %267, %273 : vector<8x32xf32>
    %cst_72 = arith.constant dense<0.000000e+00> : vector<8x128xf32>
    %275 = tpu.matmul %256, %19, %cst_72 {dimension_numbers = #tpu.dot_dimension_numbers<[1], [0], [0], [1], [0, 0, 1, 1], [], []>} : vector<8x32xf32>, vector<32x128xf32>, vector<8x128xf32> -> vector<8x128xf32>
    %276 = vector.extract_strided_slice %8 {offsets = [48, 0], sizes = [8, 128], strides = [1, 1]} : vector<64x128xf32> to vector<8x128xf32>
    %277 = arith.addf %275, %276 : vector<8x128xf32>
    %cst_73 = arith.constant dense<0.000000e+00> : vector<8x128xf32>
    %278 = tpu.matmul %274, %21, %cst_73 {dimension_numbers = #tpu.dot_dimension_numbers<[1], [0], [0], [1], [0, 0, 1, 1], [], []>} : vector<8x32xf32>, vector<32x128xf32>, vector<8x128xf32> -> vector<8x128xf32>
    %279 = vector.extract_strided_slice %17 {offsets = [48, 0], sizes = [8, 128], strides = [1, 1]} : vector<64x128xf32> to vector<8x128xf32>
    %280 = arith.addf %278, %279 : vector<8x128xf32>
    %281 = vector.extract_strided_slice %277 {offsets = [0, 0], sizes = [8, 96], strides = [1, 1]} : vector<8x128xf32> to vector<8x96xf32>
    %cst_74 = arith.constant 5.000000e-01 : f32
    %282 = vector.broadcast %cst_74 : f32 to vector<8x96xf32>
    %283 = arith.mulf %282, %281 : vector<8x96xf32>
    %284 = math.tanh %283 : vector<8x96xf32>
    %cst_75 = arith.constant 5.000000e-01 : f32
    %285 = vector.broadcast %cst_75 : f32 to vector<8x96xf32>
    %286 = arith.mulf %285, %284 : vector<8x96xf32>
    %cst_76 = arith.constant 5.000000e-01 : f32
    %287 = vector.broadcast %cst_76 : f32 to vector<8x96xf32>
    %288 = arith.addf %286, %287 : vector<8x96xf32>
    %289 = vector.extract_strided_slice %288 {offsets = [0, 0], sizes = [8, 32], strides = [1, 1]} : vector<8x96xf32> to vector<8x32xf32>
    %290 = vector.extract_strided_slice %288 {offsets = [0, 32], sizes = [8, 32], strides = [1, 1]} : vector<8x96xf32> to vector<8x32xf32>
    %291 = vector.extract_strided_slice %288 {offsets = [0, 64], sizes = [8, 32], strides = [1, 1]} : vector<8x96xf32> to vector<8x32xf32>
    %292 = vector.extract_strided_slice %277 {offsets = [0, 96], sizes = [8, 32], strides = [1, 1]} : vector<8x128xf32> to vector<8x32xf32>
    %293 = math.tanh %292 : vector<8x32xf32>
    %294 = arith.mulf %290, %254 : vector<8x32xf32>
    %295 = arith.mulf %289, %293 : vector<8x32xf32>
    %296 = arith.addf %294, %295 : vector<8x32xf32>
    %297 = math.tanh %296 : vector<8x32xf32>
    %298 = arith.mulf %291, %297 : vector<8x32xf32>
    %299 = vector.extract_strided_slice %280 {offsets = [0, 0], sizes = [8, 96], strides = [1, 1]} : vector<8x128xf32> to vector<8x96xf32>
    %cst_77 = arith.constant 5.000000e-01 : f32
    %300 = vector.broadcast %cst_77 : f32 to vector<8x96xf32>
    %301 = arith.mulf %300, %299 : vector<8x96xf32>
    %302 = math.tanh %301 : vector<8x96xf32>
    %cst_78 = arith.constant 5.000000e-01 : f32
    %303 = vector.broadcast %cst_78 : f32 to vector<8x96xf32>
    %304 = arith.mulf %303, %302 : vector<8x96xf32>
    %cst_79 = arith.constant 5.000000e-01 : f32
    %305 = vector.broadcast %cst_79 : f32 to vector<8x96xf32>
    %306 = arith.addf %304, %305 : vector<8x96xf32>
    %307 = vector.extract_strided_slice %306 {offsets = [0, 0], sizes = [8, 32], strides = [1, 1]} : vector<8x96xf32> to vector<8x32xf32>
    %308 = vector.extract_strided_slice %306 {offsets = [0, 32], sizes = [8, 32], strides = [1, 1]} : vector<8x96xf32> to vector<8x32xf32>
    %309 = vector.extract_strided_slice %306 {offsets = [0, 64], sizes = [8, 32], strides = [1, 1]} : vector<8x96xf32> to vector<8x32xf32>
    %310 = vector.extract_strided_slice %280 {offsets = [0, 96], sizes = [8, 32], strides = [1, 1]} : vector<8x128xf32> to vector<8x32xf32>
    %311 = math.tanh %310 : vector<8x32xf32>
    %312 = arith.mulf %308, %272 : vector<8x32xf32>
    %313 = arith.mulf %307, %311 : vector<8x32xf32>
    %314 = arith.addf %312, %313 : vector<8x32xf32>
    %315 = math.tanh %314 : vector<8x32xf32>
    %316 = arith.mulf %309, %315 : vector<8x32xf32>
    %cst_80 = arith.constant dense<0.000000e+00> : vector<8x128xf32>
    %317 = tpu.matmul %298, %19, %cst_80 {dimension_numbers = #tpu.dot_dimension_numbers<[1], [0], [0], [1], [0, 0, 1, 1], [], []>} : vector<8x32xf32>, vector<32x128xf32>, vector<8x128xf32> -> vector<8x128xf32>
    %318 = vector.extract_strided_slice %8 {offsets = [56, 0], sizes = [8, 128], strides = [1, 1]} : vector<64x128xf32> to vector<8x128xf32>
    %319 = arith.addf %317, %318 : vector<8x128xf32>
    %cst_81 = arith.constant dense<0.000000e+00> : vector<8x128xf32>
    %320 = tpu.matmul %316, %21, %cst_81 {dimension_numbers = #tpu.dot_dimension_numbers<[1], [0], [0], [1], [0, 0, 1, 1], [], []>} : vector<8x32xf32>, vector<32x128xf32>, vector<8x128xf32> -> vector<8x128xf32>
    %321 = vector.extract_strided_slice %17 {offsets = [56, 0], sizes = [8, 128], strides = [1, 1]} : vector<64x128xf32> to vector<8x128xf32>
    %322 = arith.addf %320, %321 : vector<8x128xf32>
    %323 = vector.extract_strided_slice %319 {offsets = [0, 0], sizes = [8, 96], strides = [1, 1]} : vector<8x128xf32> to vector<8x96xf32>
    %cst_82 = arith.constant 5.000000e-01 : f32
    %324 = vector.broadcast %cst_82 : f32 to vector<8x96xf32>
    %325 = arith.mulf %324, %323 : vector<8x96xf32>
    %326 = math.tanh %325 : vector<8x96xf32>
    %cst_83 = arith.constant 5.000000e-01 : f32
    %327 = vector.broadcast %cst_83 : f32 to vector<8x96xf32>
    %328 = arith.mulf %327, %326 : vector<8x96xf32>
    %cst_84 = arith.constant 5.000000e-01 : f32
    %329 = vector.broadcast %cst_84 : f32 to vector<8x96xf32>
    %330 = arith.addf %328, %329 : vector<8x96xf32>
    %331 = vector.extract_strided_slice %330 {offsets = [0, 0], sizes = [8, 32], strides = [1, 1]} : vector<8x96xf32> to vector<8x32xf32>
    %332 = vector.extract_strided_slice %330 {offsets = [0, 32], sizes = [8, 32], strides = [1, 1]} : vector<8x96xf32> to vector<8x32xf32>
    %333 = vector.extract_strided_slice %330 {offsets = [0, 64], sizes = [8, 32], strides = [1, 1]} : vector<8x96xf32> to vector<8x32xf32>
    %334 = vector.extract_strided_slice %319 {offsets = [0, 96], sizes = [8, 32], strides = [1, 1]} : vector<8x128xf32> to vector<8x32xf32>
    %335 = math.tanh %334 : vector<8x32xf32>
    %336 = arith.mulf %332, %296 : vector<8x32xf32>
    %337 = arith.mulf %331, %335 : vector<8x32xf32>
    %338 = arith.addf %336, %337 : vector<8x32xf32>
    %339 = math.tanh %338 : vector<8x32xf32>
    %340 = arith.mulf %333, %339 : vector<8x32xf32>
    %341 = vector.extract_strided_slice %322 {offsets = [0, 0], sizes = [8, 96], strides = [1, 1]} : vector<8x128xf32> to vector<8x96xf32>
    %cst_85 = arith.constant 5.000000e-01 : f32
    %342 = vector.broadcast %cst_85 : f32 to vector<8x96xf32>
    %343 = arith.mulf %342, %341 : vector<8x96xf32>
    %344 = math.tanh %343 : vector<8x96xf32>
    %cst_86 = arith.constant 5.000000e-01 : f32
    %345 = vector.broadcast %cst_86 : f32 to vector<8x96xf32>
    %346 = arith.mulf %345, %344 : vector<8x96xf32>
    %cst_87 = arith.constant 5.000000e-01 : f32
    %347 = vector.broadcast %cst_87 : f32 to vector<8x96xf32>
    %348 = arith.addf %346, %347 : vector<8x96xf32>
    %349 = vector.extract_strided_slice %348 {offsets = [0, 0], sizes = [8, 32], strides = [1, 1]} : vector<8x96xf32> to vector<8x32xf32>
    %350 = vector.extract_strided_slice %348 {offsets = [0, 32], sizes = [8, 32], strides = [1, 1]} : vector<8x96xf32> to vector<8x32xf32>
    %351 = vector.extract_strided_slice %348 {offsets = [0, 64], sizes = [8, 32], strides = [1, 1]} : vector<8x96xf32> to vector<8x32xf32>
    %352 = vector.extract_strided_slice %322 {offsets = [0, 96], sizes = [8, 32], strides = [1, 1]} : vector<8x128xf32> to vector<8x32xf32>
    %353 = math.tanh %352 : vector<8x32xf32>
    %354 = arith.mulf %350, %314 : vector<8x32xf32>
    %355 = arith.mulf %349, %353 : vector<8x32xf32>
    %356 = arith.addf %354, %355 : vector<8x32xf32>
    %357 = math.tanh %356 : vector<8x32xf32>
    %358 = arith.mulf %351, %357 : vector<8x32xf32>
    %359 = tpu.concatenate %46, %88, %130, %172, %214, %256, %298, %340 in 0 : vector<8x32xf32>, vector<8x32xf32>, vector<8x32xf32>, vector<8x32xf32>, vector<8x32xf32>, vector<8x32xf32>, vector<8x32xf32>, vector<8x32xf32> -> vector<64x32xf32>
    %360 = tpu.concatenate %64, %106, %148, %190, %232, %274, %316, %358 in 0 : vector<8x32xf32>, vector<8x32xf32>, vector<8x32xf32>, vector<8x32xf32>, vector<8x32xf32>, vector<8x32xf32>, vector<8x32xf32>, vector<8x32xf32> -> vector<64x32xf32>
    %c0_88 = arith.constant 0 : index
    %c0_89 = arith.constant 0 : index
    %c0_90 = arith.constant 0 : index
    %c0_91 = arith.constant 0 : index
    %361 = vector.load %arg5[%c0_88, %c0_89, %c0_90, %c0_91] : memref<2x1x32x128xf32, #tpu.memory_space<vmem>>, vector<1x1x32x128xf32>
    %362 = vector.shape_cast %361 : vector<1x1x32x128xf32> to vector<32x128xf32>
    %cst_92 = arith.constant dense<0.000000e+00> : vector<64x128xf32>
    %363 = tpu.matmul %359, %362, %cst_92 {dimension_numbers = #tpu.dot_dimension_numbers<[1], [0], [0], [1], [0, 0, 1, 1], [], []>} : vector<64x32xf32>, vector<32x128xf32>, vector<64x128xf32> -> vector<64x128xf32>
    %c0_93 = arith.constant 0 : index
    %c0_94 = arith.constant 0 : index
    %c0_95 = arith.constant 0 : index
    %c0_96 = arith.constant 0 : index
    %364 = vector.load %arg7[%c0_93, %c0_94, %c0_95, %c0_96] : memref<2x1x1x128xf32, #tpu.memory_space<vmem>>, vector<1x1x1x128xf32>
    %365 = vector.shape_cast %364 : vector<1x1x1x128xf32> to vector<1x128xf32>
    %366 = vector.broadcast %365 : vector<1x128xf32> to vector<64x128xf32>
    %367 = arith.addf %363, %366 : vector<64x128xf32>
    %c1_97 = arith.constant 1 : index
    %c0_98 = arith.constant 0 : index
    %c0_99 = arith.constant 0 : index
    %c0_100 = arith.constant 0 : index
    %368 = vector.load %arg5[%c1_97, %c0_98, %c0_99, %c0_100] : memref<2x1x32x128xf32, #tpu.memory_space<vmem>>, vector<1x1x32x128xf32>
    %369 = vector.shape_cast %368 : vector<1x1x32x128xf32> to vector<32x128xf32>
    %cst_101 = arith.constant dense<0.000000e+00> : vector<64x128xf32>
    %370 = tpu.matmul %360, %369, %cst_101 {dimension_numbers = #tpu.dot_dimension_numbers<[1], [0], [0], [1], [0, 0, 1, 1], [], []>} : vector<64x32xf32>, vector<32x128xf32>, vector<64x128xf32> -> vector<64x128xf32>
    %c1_102 = arith.constant 1 : index
    %c0_103 = arith.constant 0 : index
    %c0_104 = arith.constant 0 : index
    %c0_105 = arith.constant 0 : index
    %371 = vector.load %arg7[%c1_102, %c0_103, %c0_104, %c0_105] : memref<2x1x1x128xf32, #tpu.memory_space<vmem>>, vector<1x1x1x128xf32>
    %372 = vector.shape_cast %371 : vector<1x1x1x128xf32> to vector<1x128xf32>
    %373 = vector.broadcast %372 : vector<1x128xf32> to vector<64x128xf32>
    %374 = arith.addf %370, %373 : vector<64x128xf32>
    %c0_106 = arith.constant 0 : index
    %c0_107 = arith.constant 0 : index
    %c0_108 = arith.constant 0 : index
    %c0_109 = arith.constant 0 : index
    %375 = vector.load %arg6[%c0_106, %c0_107, %c0_108, %c0_109] : memref<2x1x32x128xf32, #tpu.memory_space<vmem>>, vector<1x1x32x128xf32>
    %376 = vector.shape_cast %375 : vector<1x1x32x128xf32> to vector<32x128xf32>
    %c1_110 = arith.constant 1 : index
    %c0_111 = arith.constant 0 : index
    %c0_112 = arith.constant 0 : index
    %c0_113 = arith.constant 0 : index
    %377 = vector.load %arg6[%c1_110, %c0_111, %c0_112, %c0_113] : memref<2x1x32x128xf32, #tpu.memory_space<vmem>>, vector<1x1x32x128xf32>
    %378 = vector.shape_cast %377 : vector<1x1x32x128xf32> to vector<32x128xf32>
    %cst_114 = arith.constant 0.000000e+00 : f32
    %379 = vector.broadcast %cst_114 : f32 to vector<8x32xf32>
    %cst_115 = arith.constant dense<0.000000e+00> : vector<8x128xf32>
    %380 = tpu.matmul %379, %376, %cst_115 {dimension_numbers = #tpu.dot_dimension_numbers<[1], [0], [0], [1], [0, 0, 1, 1], [], []>} : vector<8x32xf32>, vector<32x128xf32>, vector<8x128xf32> -> vector<8x128xf32>
    %381 = vector.extract_strided_slice %367 {offsets = [0, 0], sizes = [8, 128], strides = [1, 1]} : vector<64x128xf32> to vector<8x128xf32>
    %382 = arith.addf %380, %381 : vector<8x128xf32>
    %cst_116 = arith.constant dense<0.000000e+00> : vector<8x128xf32>
    %383 = tpu.matmul %379, %378, %cst_116 {dimension_numbers = #tpu.dot_dimension_numbers<[1], [0], [0], [1], [0, 0, 1, 1], [], []>} : vector<8x32xf32>, vector<32x128xf32>, vector<8x128xf32> -> vector<8x128xf32>
    %384 = vector.extract_strided_slice %374 {offsets = [0, 0], sizes = [8, 128], strides = [1, 1]} : vector<64x128xf32> to vector<8x128xf32>
    %385 = arith.addf %383, %384 : vector<8x128xf32>
    %386 = vector.extract_strided_slice %382 {offsets = [0, 0], sizes = [8, 96], strides = [1, 1]} : vector<8x128xf32> to vector<8x96xf32>
    %cst_117 = arith.constant 5.000000e-01 : f32
    %387 = vector.broadcast %cst_117 : f32 to vector<8x96xf32>
    %388 = arith.mulf %387, %386 : vector<8x96xf32>
    %389 = math.tanh %388 : vector<8x96xf32>
    %cst_118 = arith.constant 5.000000e-01 : f32
    %390 = vector.broadcast %cst_118 : f32 to vector<8x96xf32>
    %391 = arith.mulf %390, %389 : vector<8x96xf32>
    %cst_119 = arith.constant 5.000000e-01 : f32
    %392 = vector.broadcast %cst_119 : f32 to vector<8x96xf32>
    %393 = arith.addf %391, %392 : vector<8x96xf32>
    %394 = vector.extract_strided_slice %393 {offsets = [0, 0], sizes = [8, 32], strides = [1, 1]} : vector<8x96xf32> to vector<8x32xf32>
    %395 = vector.extract_strided_slice %393 {offsets = [0, 32], sizes = [8, 32], strides = [1, 1]} : vector<8x96xf32> to vector<8x32xf32>
    %396 = vector.extract_strided_slice %393 {offsets = [0, 64], sizes = [8, 32], strides = [1, 1]} : vector<8x96xf32> to vector<8x32xf32>
    %397 = vector.extract_strided_slice %382 {offsets = [0, 96], sizes = [8, 32], strides = [1, 1]} : vector<8x128xf32> to vector<8x32xf32>
    %398 = math.tanh %397 : vector<8x32xf32>
    %399 = arith.mulf %395, %379 : vector<8x32xf32>
    %400 = arith.mulf %394, %398 : vector<8x32xf32>
    %401 = arith.addf %399, %400 : vector<8x32xf32>
    %402 = math.tanh %401 : vector<8x32xf32>
    %403 = arith.mulf %396, %402 : vector<8x32xf32>
    %404 = vector.extract_strided_slice %385 {offsets = [0, 0], sizes = [8, 96], strides = [1, 1]} : vector<8x128xf32> to vector<8x96xf32>
    %cst_120 = arith.constant 5.000000e-01 : f32
    %405 = vector.broadcast %cst_120 : f32 to vector<8x96xf32>
    %406 = arith.mulf %405, %404 : vector<8x96xf32>
    %407 = math.tanh %406 : vector<8x96xf32>
    %cst_121 = arith.constant 5.000000e-01 : f32
    %408 = vector.broadcast %cst_121 : f32 to vector<8x96xf32>
    %409 = arith.mulf %408, %407 : vector<8x96xf32>
    %cst_122 = arith.constant 5.000000e-01 : f32
    %410 = vector.broadcast %cst_122 : f32 to vector<8x96xf32>
    %411 = arith.addf %409, %410 : vector<8x96xf32>
    %412 = vector.extract_strided_slice %411 {offsets = [0, 0], sizes = [8, 32], strides = [1, 1]} : vector<8x96xf32> to vector<8x32xf32>
    %413 = vector.extract_strided_slice %411 {offsets = [0, 32], sizes = [8, 32], strides = [1, 1]} : vector<8x96xf32> to vector<8x32xf32>
    %414 = vector.extract_strided_slice %411 {offsets = [0, 64], sizes = [8, 32], strides = [1, 1]} : vector<8x96xf32> to vector<8x32xf32>
    %415 = vector.extract_strided_slice %385 {offsets = [0, 96], sizes = [8, 32], strides = [1, 1]} : vector<8x128xf32> to vector<8x32xf32>
    %416 = math.tanh %415 : vector<8x32xf32>
    %417 = arith.mulf %413, %379 : vector<8x32xf32>
    %418 = arith.mulf %412, %416 : vector<8x32xf32>
    %419 = arith.addf %417, %418 : vector<8x32xf32>
    %420 = math.tanh %419 : vector<8x32xf32>
    %421 = arith.mulf %414, %420 : vector<8x32xf32>
    %cst_123 = arith.constant dense<0.000000e+00> : vector<8x128xf32>
    %422 = tpu.matmul %403, %376, %cst_123 {dimension_numbers = #tpu.dot_dimension_numbers<[1], [0], [0], [1], [0, 0, 1, 1], [], []>} : vector<8x32xf32>, vector<32x128xf32>, vector<8x128xf32> -> vector<8x128xf32>
    %423 = vector.extract_strided_slice %367 {offsets = [8, 0], sizes = [8, 128], strides = [1, 1]} : vector<64x128xf32> to vector<8x128xf32>
    %424 = arith.addf %422, %423 : vector<8x128xf32>
    %cst_124 = arith.constant dense<0.000000e+00> : vector<8x128xf32>
    %425 = tpu.matmul %421, %378, %cst_124 {dimension_numbers = #tpu.dot_dimension_numbers<[1], [0], [0], [1], [0, 0, 1, 1], [], []>} : vector<8x32xf32>, vector<32x128xf32>, vector<8x128xf32> -> vector<8x128xf32>
    %426 = vector.extract_strided_slice %374 {offsets = [8, 0], sizes = [8, 128], strides = [1, 1]} : vector<64x128xf32> to vector<8x128xf32>
    %427 = arith.addf %425, %426 : vector<8x128xf32>
    %428 = vector.extract_strided_slice %424 {offsets = [0, 0], sizes = [8, 96], strides = [1, 1]} : vector<8x128xf32> to vector<8x96xf32>
    %cst_125 = arith.constant 5.000000e-01 : f32
    %429 = vector.broadcast %cst_125 : f32 to vector<8x96xf32>
    %430 = arith.mulf %429, %428 : vector<8x96xf32>
    %431 = math.tanh %430 : vector<8x96xf32>
    %cst_126 = arith.constant 5.000000e-01 : f32
    %432 = vector.broadcast %cst_126 : f32 to vector<8x96xf32>
    %433 = arith.mulf %432, %431 : vector<8x96xf32>
    %cst_127 = arith.constant 5.000000e-01 : f32
    %434 = vector.broadcast %cst_127 : f32 to vector<8x96xf32>
    %435 = arith.addf %433, %434 : vector<8x96xf32>
    %436 = vector.extract_strided_slice %435 {offsets = [0, 0], sizes = [8, 32], strides = [1, 1]} : vector<8x96xf32> to vector<8x32xf32>
    %437 = vector.extract_strided_slice %435 {offsets = [0, 32], sizes = [8, 32], strides = [1, 1]} : vector<8x96xf32> to vector<8x32xf32>
    %438 = vector.extract_strided_slice %435 {offsets = [0, 64], sizes = [8, 32], strides = [1, 1]} : vector<8x96xf32> to vector<8x32xf32>
    %439 = vector.extract_strided_slice %424 {offsets = [0, 96], sizes = [8, 32], strides = [1, 1]} : vector<8x128xf32> to vector<8x32xf32>
    %440 = math.tanh %439 : vector<8x32xf32>
    %441 = arith.mulf %437, %401 : vector<8x32xf32>
    %442 = arith.mulf %436, %440 : vector<8x32xf32>
    %443 = arith.addf %441, %442 : vector<8x32xf32>
    %444 = math.tanh %443 : vector<8x32xf32>
    %445 = arith.mulf %438, %444 : vector<8x32xf32>
    %446 = vector.extract_strided_slice %427 {offsets = [0, 0], sizes = [8, 96], strides = [1, 1]} : vector<8x128xf32> to vector<8x96xf32>
    %cst_128 = arith.constant 5.000000e-01 : f32
    %447 = vector.broadcast %cst_128 : f32 to vector<8x96xf32>
    %448 = arith.mulf %447, %446 : vector<8x96xf32>
    %449 = math.tanh %448 : vector<8x96xf32>
    %cst_129 = arith.constant 5.000000e-01 : f32
    %450 = vector.broadcast %cst_129 : f32 to vector<8x96xf32>
    %451 = arith.mulf %450, %449 : vector<8x96xf32>
    %cst_130 = arith.constant 5.000000e-01 : f32
    %452 = vector.broadcast %cst_130 : f32 to vector<8x96xf32>
    %453 = arith.addf %451, %452 : vector<8x96xf32>
    %454 = vector.extract_strided_slice %453 {offsets = [0, 0], sizes = [8, 32], strides = [1, 1]} : vector<8x96xf32> to vector<8x32xf32>
    %455 = vector.extract_strided_slice %453 {offsets = [0, 32], sizes = [8, 32], strides = [1, 1]} : vector<8x96xf32> to vector<8x32xf32>
    %456 = vector.extract_strided_slice %453 {offsets = [0, 64], sizes = [8, 32], strides = [1, 1]} : vector<8x96xf32> to vector<8x32xf32>
    %457 = vector.extract_strided_slice %427 {offsets = [0, 96], sizes = [8, 32], strides = [1, 1]} : vector<8x128xf32> to vector<8x32xf32>
    %458 = math.tanh %457 : vector<8x32xf32>
    %459 = arith.mulf %455, %419 : vector<8x32xf32>
    %460 = arith.mulf %454, %458 : vector<8x32xf32>
    %461 = arith.addf %459, %460 : vector<8x32xf32>
    %462 = math.tanh %461 : vector<8x32xf32>
    %463 = arith.mulf %456, %462 : vector<8x32xf32>
    %cst_131 = arith.constant dense<0.000000e+00> : vector<8x128xf32>
    %464 = tpu.matmul %445, %376, %cst_131 {dimension_numbers = #tpu.dot_dimension_numbers<[1], [0], [0], [1], [0, 0, 1, 1], [], []>} : vector<8x32xf32>, vector<32x128xf32>, vector<8x128xf32> -> vector<8x128xf32>
    %465 = vector.extract_strided_slice %367 {offsets = [16, 0], sizes = [8, 128], strides = [1, 1]} : vector<64x128xf32> to vector<8x128xf32>
    %466 = arith.addf %464, %465 : vector<8x128xf32>
    %cst_132 = arith.constant dense<0.000000e+00> : vector<8x128xf32>
    %467 = tpu.matmul %463, %378, %cst_132 {dimension_numbers = #tpu.dot_dimension_numbers<[1], [0], [0], [1], [0, 0, 1, 1], [], []>} : vector<8x32xf32>, vector<32x128xf32>, vector<8x128xf32> -> vector<8x128xf32>
    %468 = vector.extract_strided_slice %374 {offsets = [16, 0], sizes = [8, 128], strides = [1, 1]} : vector<64x128xf32> to vector<8x128xf32>
    %469 = arith.addf %467, %468 : vector<8x128xf32>
    %470 = vector.extract_strided_slice %466 {offsets = [0, 0], sizes = [8, 96], strides = [1, 1]} : vector<8x128xf32> to vector<8x96xf32>
    %cst_133 = arith.constant 5.000000e-01 : f32
    %471 = vector.broadcast %cst_133 : f32 to vector<8x96xf32>
    %472 = arith.mulf %471, %470 : vector<8x96xf32>
    %473 = math.tanh %472 : vector<8x96xf32>
    %cst_134 = arith.constant 5.000000e-01 : f32
    %474 = vector.broadcast %cst_134 : f32 to vector<8x96xf32>
    %475 = arith.mulf %474, %473 : vector<8x96xf32>
    %cst_135 = arith.constant 5.000000e-01 : f32
    %476 = vector.broadcast %cst_135 : f32 to vector<8x96xf32>
    %477 = arith.addf %475, %476 : vector<8x96xf32>
    %478 = vector.extract_strided_slice %477 {offsets = [0, 0], sizes = [8, 32], strides = [1, 1]} : vector<8x96xf32> to vector<8x32xf32>
    %479 = vector.extract_strided_slice %477 {offsets = [0, 32], sizes = [8, 32], strides = [1, 1]} : vector<8x96xf32> to vector<8x32xf32>
    %480 = vector.extract_strided_slice %477 {offsets = [0, 64], sizes = [8, 32], strides = [1, 1]} : vector<8x96xf32> to vector<8x32xf32>
    %481 = vector.extract_strided_slice %466 {offsets = [0, 96], sizes = [8, 32], strides = [1, 1]} : vector<8x128xf32> to vector<8x32xf32>
    %482 = math.tanh %481 : vector<8x32xf32>
    %483 = arith.mulf %479, %443 : vector<8x32xf32>
    %484 = arith.mulf %478, %482 : vector<8x32xf32>
    %485 = arith.addf %483, %484 : vector<8x32xf32>
    %486 = math.tanh %485 : vector<8x32xf32>
    %487 = arith.mulf %480, %486 : vector<8x32xf32>
    %488 = vector.extract_strided_slice %469 {offsets = [0, 0], sizes = [8, 96], strides = [1, 1]} : vector<8x128xf32> to vector<8x96xf32>
    %cst_136 = arith.constant 5.000000e-01 : f32
    %489 = vector.broadcast %cst_136 : f32 to vector<8x96xf32>
    %490 = arith.mulf %489, %488 : vector<8x96xf32>
    %491 = math.tanh %490 : vector<8x96xf32>
    %cst_137 = arith.constant 5.000000e-01 : f32
    %492 = vector.broadcast %cst_137 : f32 to vector<8x96xf32>
    %493 = arith.mulf %492, %491 : vector<8x96xf32>
    %cst_138 = arith.constant 5.000000e-01 : f32
    %494 = vector.broadcast %cst_138 : f32 to vector<8x96xf32>
    %495 = arith.addf %493, %494 : vector<8x96xf32>
    %496 = vector.extract_strided_slice %495 {offsets = [0, 0], sizes = [8, 32], strides = [1, 1]} : vector<8x96xf32> to vector<8x32xf32>
    %497 = vector.extract_strided_slice %495 {offsets = [0, 32], sizes = [8, 32], strides = [1, 1]} : vector<8x96xf32> to vector<8x32xf32>
    %498 = vector.extract_strided_slice %495 {offsets = [0, 64], sizes = [8, 32], strides = [1, 1]} : vector<8x96xf32> to vector<8x32xf32>
    %499 = vector.extract_strided_slice %469 {offsets = [0, 96], sizes = [8, 32], strides = [1, 1]} : vector<8x128xf32> to vector<8x32xf32>
    %500 = math.tanh %499 : vector<8x32xf32>
    %501 = arith.mulf %497, %461 : vector<8x32xf32>
    %502 = arith.mulf %496, %500 : vector<8x32xf32>
    %503 = arith.addf %501, %502 : vector<8x32xf32>
    %504 = math.tanh %503 : vector<8x32xf32>
    %505 = arith.mulf %498, %504 : vector<8x32xf32>
    %cst_139 = arith.constant dense<0.000000e+00> : vector<8x128xf32>
    %506 = tpu.matmul %487, %376, %cst_139 {dimension_numbers = #tpu.dot_dimension_numbers<[1], [0], [0], [1], [0, 0, 1, 1], [], []>} : vector<8x32xf32>, vector<32x128xf32>, vector<8x128xf32> -> vector<8x128xf32>
    %507 = vector.extract_strided_slice %367 {offsets = [24, 0], sizes = [8, 128], strides = [1, 1]} : vector<64x128xf32> to vector<8x128xf32>
    %508 = arith.addf %506, %507 : vector<8x128xf32>
    %cst_140 = arith.constant dense<0.000000e+00> : vector<8x128xf32>
    %509 = tpu.matmul %505, %378, %cst_140 {dimension_numbers = #tpu.dot_dimension_numbers<[1], [0], [0], [1], [0, 0, 1, 1], [], []>} : vector<8x32xf32>, vector<32x128xf32>, vector<8x128xf32> -> vector<8x128xf32>
    %510 = vector.extract_strided_slice %374 {offsets = [24, 0], sizes = [8, 128], strides = [1, 1]} : vector<64x128xf32> to vector<8x128xf32>
    %511 = arith.addf %509, %510 : vector<8x128xf32>
    %512 = vector.extract_strided_slice %508 {offsets = [0, 0], sizes = [8, 96], strides = [1, 1]} : vector<8x128xf32> to vector<8x96xf32>
    %cst_141 = arith.constant 5.000000e-01 : f32
    %513 = vector.broadcast %cst_141 : f32 to vector<8x96xf32>
    %514 = arith.mulf %513, %512 : vector<8x96xf32>
    %515 = math.tanh %514 : vector<8x96xf32>
    %cst_142 = arith.constant 5.000000e-01 : f32
    %516 = vector.broadcast %cst_142 : f32 to vector<8x96xf32>
    %517 = arith.mulf %516, %515 : vector<8x96xf32>
    %cst_143 = arith.constant 5.000000e-01 : f32
    %518 = vector.broadcast %cst_143 : f32 to vector<8x96xf32>
    %519 = arith.addf %517, %518 : vector<8x96xf32>
    %520 = vector.extract_strided_slice %519 {offsets = [0, 0], sizes = [8, 32], strides = [1, 1]} : vector<8x96xf32> to vector<8x32xf32>
    %521 = vector.extract_strided_slice %519 {offsets = [0, 32], sizes = [8, 32], strides = [1, 1]} : vector<8x96xf32> to vector<8x32xf32>
    %522 = vector.extract_strided_slice %519 {offsets = [0, 64], sizes = [8, 32], strides = [1, 1]} : vector<8x96xf32> to vector<8x32xf32>
    %523 = vector.extract_strided_slice %508 {offsets = [0, 96], sizes = [8, 32], strides = [1, 1]} : vector<8x128xf32> to vector<8x32xf32>
    %524 = math.tanh %523 : vector<8x32xf32>
    %525 = arith.mulf %521, %485 : vector<8x32xf32>
    %526 = arith.mulf %520, %524 : vector<8x32xf32>
    %527 = arith.addf %525, %526 : vector<8x32xf32>
    %528 = math.tanh %527 : vector<8x32xf32>
    %529 = arith.mulf %522, %528 : vector<8x32xf32>
    %530 = vector.extract_strided_slice %511 {offsets = [0, 0], sizes = [8, 96], strides = [1, 1]} : vector<8x128xf32> to vector<8x96xf32>
    %cst_144 = arith.constant 5.000000e-01 : f32
    %531 = vector.broadcast %cst_144 : f32 to vector<8x96xf32>
    %532 = arith.mulf %531, %530 : vector<8x96xf32>
    %533 = math.tanh %532 : vector<8x96xf32>
    %cst_145 = arith.constant 5.000000e-01 : f32
    %534 = vector.broadcast %cst_145 : f32 to vector<8x96xf32>
    %535 = arith.mulf %534, %533 : vector<8x96xf32>
    %cst_146 = arith.constant 5.000000e-01 : f32
    %536 = vector.broadcast %cst_146 : f32 to vector<8x96xf32>
    %537 = arith.addf %535, %536 : vector<8x96xf32>
    %538 = vector.extract_strided_slice %537 {offsets = [0, 0], sizes = [8, 32], strides = [1, 1]} : vector<8x96xf32> to vector<8x32xf32>
    %539 = vector.extract_strided_slice %537 {offsets = [0, 32], sizes = [8, 32], strides = [1, 1]} : vector<8x96xf32> to vector<8x32xf32>
    %540 = vector.extract_strided_slice %537 {offsets = [0, 64], sizes = [8, 32], strides = [1, 1]} : vector<8x96xf32> to vector<8x32xf32>
    %541 = vector.extract_strided_slice %511 {offsets = [0, 96], sizes = [8, 32], strides = [1, 1]} : vector<8x128xf32> to vector<8x32xf32>
    %542 = math.tanh %541 : vector<8x32xf32>
    %543 = arith.mulf %539, %503 : vector<8x32xf32>
    %544 = arith.mulf %538, %542 : vector<8x32xf32>
    %545 = arith.addf %543, %544 : vector<8x32xf32>
    %546 = math.tanh %545 : vector<8x32xf32>
    %547 = arith.mulf %540, %546 : vector<8x32xf32>
    %cst_147 = arith.constant dense<0.000000e+00> : vector<8x128xf32>
    %548 = tpu.matmul %529, %376, %cst_147 {dimension_numbers = #tpu.dot_dimension_numbers<[1], [0], [0], [1], [0, 0, 1, 1], [], []>} : vector<8x32xf32>, vector<32x128xf32>, vector<8x128xf32> -> vector<8x128xf32>
    %549 = vector.extract_strided_slice %367 {offsets = [32, 0], sizes = [8, 128], strides = [1, 1]} : vector<64x128xf32> to vector<8x128xf32>
    %550 = arith.addf %548, %549 : vector<8x128xf32>
    %cst_148 = arith.constant dense<0.000000e+00> : vector<8x128xf32>
    %551 = tpu.matmul %547, %378, %cst_148 {dimension_numbers = #tpu.dot_dimension_numbers<[1], [0], [0], [1], [0, 0, 1, 1], [], []>} : vector<8x32xf32>, vector<32x128xf32>, vector<8x128xf32> -> vector<8x128xf32>
    %552 = vector.extract_strided_slice %374 {offsets = [32, 0], sizes = [8, 128], strides = [1, 1]} : vector<64x128xf32> to vector<8x128xf32>
    %553 = arith.addf %551, %552 : vector<8x128xf32>
    %554 = vector.extract_strided_slice %550 {offsets = [0, 0], sizes = [8, 96], strides = [1, 1]} : vector<8x128xf32> to vector<8x96xf32>
    %cst_149 = arith.constant 5.000000e-01 : f32
    %555 = vector.broadcast %cst_149 : f32 to vector<8x96xf32>
    %556 = arith.mulf %555, %554 : vector<8x96xf32>
    %557 = math.tanh %556 : vector<8x96xf32>
    %cst_150 = arith.constant 5.000000e-01 : f32
    %558 = vector.broadcast %cst_150 : f32 to vector<8x96xf32>
    %559 = arith.mulf %558, %557 : vector<8x96xf32>
    %cst_151 = arith.constant 5.000000e-01 : f32
    %560 = vector.broadcast %cst_151 : f32 to vector<8x96xf32>
    %561 = arith.addf %559, %560 : vector<8x96xf32>
    %562 = vector.extract_strided_slice %561 {offsets = [0, 0], sizes = [8, 32], strides = [1, 1]} : vector<8x96xf32> to vector<8x32xf32>
    %563 = vector.extract_strided_slice %561 {offsets = [0, 32], sizes = [8, 32], strides = [1, 1]} : vector<8x96xf32> to vector<8x32xf32>
    %564 = vector.extract_strided_slice %561 {offsets = [0, 64], sizes = [8, 32], strides = [1, 1]} : vector<8x96xf32> to vector<8x32xf32>
    %565 = vector.extract_strided_slice %550 {offsets = [0, 96], sizes = [8, 32], strides = [1, 1]} : vector<8x128xf32> to vector<8x32xf32>
    %566 = math.tanh %565 : vector<8x32xf32>
    %567 = arith.mulf %563, %527 : vector<8x32xf32>
    %568 = arith.mulf %562, %566 : vector<8x32xf32>
    %569 = arith.addf %567, %568 : vector<8x32xf32>
    %570 = math.tanh %569 : vector<8x32xf32>
    %571 = arith.mulf %564, %570 : vector<8x32xf32>
    %572 = vector.extract_strided_slice %553 {offsets = [0, 0], sizes = [8, 96], strides = [1, 1]} : vector<8x128xf32> to vector<8x96xf32>
    %cst_152 = arith.constant 5.000000e-01 : f32
    %573 = vector.broadcast %cst_152 : f32 to vector<8x96xf32>
    %574 = arith.mulf %573, %572 : vector<8x96xf32>
    %575 = math.tanh %574 : vector<8x96xf32>
    %cst_153 = arith.constant 5.000000e-01 : f32
    %576 = vector.broadcast %cst_153 : f32 to vector<8x96xf32>
    %577 = arith.mulf %576, %575 : vector<8x96xf32>
    %cst_154 = arith.constant 5.000000e-01 : f32
    %578 = vector.broadcast %cst_154 : f32 to vector<8x96xf32>
    %579 = arith.addf %577, %578 : vector<8x96xf32>
    %580 = vector.extract_strided_slice %579 {offsets = [0, 0], sizes = [8, 32], strides = [1, 1]} : vector<8x96xf32> to vector<8x32xf32>
    %581 = vector.extract_strided_slice %579 {offsets = [0, 32], sizes = [8, 32], strides = [1, 1]} : vector<8x96xf32> to vector<8x32xf32>
    %582 = vector.extract_strided_slice %579 {offsets = [0, 64], sizes = [8, 32], strides = [1, 1]} : vector<8x96xf32> to vector<8x32xf32>
    %583 = vector.extract_strided_slice %553 {offsets = [0, 96], sizes = [8, 32], strides = [1, 1]} : vector<8x128xf32> to vector<8x32xf32>
    %584 = math.tanh %583 : vector<8x32xf32>
    %585 = arith.mulf %581, %545 : vector<8x32xf32>
    %586 = arith.mulf %580, %584 : vector<8x32xf32>
    %587 = arith.addf %585, %586 : vector<8x32xf32>
    %588 = math.tanh %587 : vector<8x32xf32>
    %589 = arith.mulf %582, %588 : vector<8x32xf32>
    %cst_155 = arith.constant dense<0.000000e+00> : vector<8x128xf32>
    %590 = tpu.matmul %571, %376, %cst_155 {dimension_numbers = #tpu.dot_dimension_numbers<[1], [0], [0], [1], [0, 0, 1, 1], [], []>} : vector<8x32xf32>, vector<32x128xf32>, vector<8x128xf32> -> vector<8x128xf32>
    %591 = vector.extract_strided_slice %367 {offsets = [40, 0], sizes = [8, 128], strides = [1, 1]} : vector<64x128xf32> to vector<8x128xf32>
    %592 = arith.addf %590, %591 : vector<8x128xf32>
    %cst_156 = arith.constant dense<0.000000e+00> : vector<8x128xf32>
    %593 = tpu.matmul %589, %378, %cst_156 {dimension_numbers = #tpu.dot_dimension_numbers<[1], [0], [0], [1], [0, 0, 1, 1], [], []>} : vector<8x32xf32>, vector<32x128xf32>, vector<8x128xf32> -> vector<8x128xf32>
    %594 = vector.extract_strided_slice %374 {offsets = [40, 0], sizes = [8, 128], strides = [1, 1]} : vector<64x128xf32> to vector<8x128xf32>
    %595 = arith.addf %593, %594 : vector<8x128xf32>
    %596 = vector.extract_strided_slice %592 {offsets = [0, 0], sizes = [8, 96], strides = [1, 1]} : vector<8x128xf32> to vector<8x96xf32>
    %cst_157 = arith.constant 5.000000e-01 : f32
    %597 = vector.broadcast %cst_157 : f32 to vector<8x96xf32>
    %598 = arith.mulf %597, %596 : vector<8x96xf32>
    %599 = math.tanh %598 : vector<8x96xf32>
    %cst_158 = arith.constant 5.000000e-01 : f32
    %600 = vector.broadcast %cst_158 : f32 to vector<8x96xf32>
    %601 = arith.mulf %600, %599 : vector<8x96xf32>
    %cst_159 = arith.constant 5.000000e-01 : f32
    %602 = vector.broadcast %cst_159 : f32 to vector<8x96xf32>
    %603 = arith.addf %601, %602 : vector<8x96xf32>
    %604 = vector.extract_strided_slice %603 {offsets = [0, 0], sizes = [8, 32], strides = [1, 1]} : vector<8x96xf32> to vector<8x32xf32>
    %605 = vector.extract_strided_slice %603 {offsets = [0, 32], sizes = [8, 32], strides = [1, 1]} : vector<8x96xf32> to vector<8x32xf32>
    %606 = vector.extract_strided_slice %603 {offsets = [0, 64], sizes = [8, 32], strides = [1, 1]} : vector<8x96xf32> to vector<8x32xf32>
    %607 = vector.extract_strided_slice %592 {offsets = [0, 96], sizes = [8, 32], strides = [1, 1]} : vector<8x128xf32> to vector<8x32xf32>
    %608 = math.tanh %607 : vector<8x32xf32>
    %609 = arith.mulf %605, %569 : vector<8x32xf32>
    %610 = arith.mulf %604, %608 : vector<8x32xf32>
    %611 = arith.addf %609, %610 : vector<8x32xf32>
    %612 = math.tanh %611 : vector<8x32xf32>
    %613 = arith.mulf %606, %612 : vector<8x32xf32>
    %614 = vector.extract_strided_slice %595 {offsets = [0, 0], sizes = [8, 96], strides = [1, 1]} : vector<8x128xf32> to vector<8x96xf32>
    %cst_160 = arith.constant 5.000000e-01 : f32
    %615 = vector.broadcast %cst_160 : f32 to vector<8x96xf32>
    %616 = arith.mulf %615, %614 : vector<8x96xf32>
    %617 = math.tanh %616 : vector<8x96xf32>
    %cst_161 = arith.constant 5.000000e-01 : f32
    %618 = vector.broadcast %cst_161 : f32 to vector<8x96xf32>
    %619 = arith.mulf %618, %617 : vector<8x96xf32>
    %cst_162 = arith.constant 5.000000e-01 : f32
    %620 = vector.broadcast %cst_162 : f32 to vector<8x96xf32>
    %621 = arith.addf %619, %620 : vector<8x96xf32>
    %622 = vector.extract_strided_slice %621 {offsets = [0, 0], sizes = [8, 32], strides = [1, 1]} : vector<8x96xf32> to vector<8x32xf32>
    %623 = vector.extract_strided_slice %621 {offsets = [0, 32], sizes = [8, 32], strides = [1, 1]} : vector<8x96xf32> to vector<8x32xf32>
    %624 = vector.extract_strided_slice %621 {offsets = [0, 64], sizes = [8, 32], strides = [1, 1]} : vector<8x96xf32> to vector<8x32xf32>
    %625 = vector.extract_strided_slice %595 {offsets = [0, 96], sizes = [8, 32], strides = [1, 1]} : vector<8x128xf32> to vector<8x32xf32>
    %626 = math.tanh %625 : vector<8x32xf32>
    %627 = arith.mulf %623, %587 : vector<8x32xf32>
    %628 = arith.mulf %622, %626 : vector<8x32xf32>
    %629 = arith.addf %627, %628 : vector<8x32xf32>
    %630 = math.tanh %629 : vector<8x32xf32>
    %631 = arith.mulf %624, %630 : vector<8x32xf32>
    %cst_163 = arith.constant dense<0.000000e+00> : vector<8x128xf32>
    %632 = tpu.matmul %613, %376, %cst_163 {dimension_numbers = #tpu.dot_dimension_numbers<[1], [0], [0], [1], [0, 0, 1, 1], [], []>} : vector<8x32xf32>, vector<32x128xf32>, vector<8x128xf32> -> vector<8x128xf32>
    %633 = vector.extract_strided_slice %367 {offsets = [48, 0], sizes = [8, 128], strides = [1, 1]} : vector<64x128xf32> to vector<8x128xf32>
    %634 = arith.addf %632, %633 : vector<8x128xf32>
    %cst_164 = arith.constant dense<0.000000e+00> : vector<8x128xf32>
    %635 = tpu.matmul %631, %378, %cst_164 {dimension_numbers = #tpu.dot_dimension_numbers<[1], [0], [0], [1], [0, 0, 1, 1], [], []>} : vector<8x32xf32>, vector<32x128xf32>, vector<8x128xf32> -> vector<8x128xf32>
    %636 = vector.extract_strided_slice %374 {offsets = [48, 0], sizes = [8, 128], strides = [1, 1]} : vector<64x128xf32> to vector<8x128xf32>
    %637 = arith.addf %635, %636 : vector<8x128xf32>
    %638 = vector.extract_strided_slice %634 {offsets = [0, 0], sizes = [8, 96], strides = [1, 1]} : vector<8x128xf32> to vector<8x96xf32>
    %cst_165 = arith.constant 5.000000e-01 : f32
    %639 = vector.broadcast %cst_165 : f32 to vector<8x96xf32>
    %640 = arith.mulf %639, %638 : vector<8x96xf32>
    %641 = math.tanh %640 : vector<8x96xf32>
    %cst_166 = arith.constant 5.000000e-01 : f32
    %642 = vector.broadcast %cst_166 : f32 to vector<8x96xf32>
    %643 = arith.mulf %642, %641 : vector<8x96xf32>
    %cst_167 = arith.constant 5.000000e-01 : f32
    %644 = vector.broadcast %cst_167 : f32 to vector<8x96xf32>
    %645 = arith.addf %643, %644 : vector<8x96xf32>
    %646 = vector.extract_strided_slice %645 {offsets = [0, 0], sizes = [8, 32], strides = [1, 1]} : vector<8x96xf32> to vector<8x32xf32>
    %647 = vector.extract_strided_slice %645 {offsets = [0, 32], sizes = [8, 32], strides = [1, 1]} : vector<8x96xf32> to vector<8x32xf32>
    %648 = vector.extract_strided_slice %645 {offsets = [0, 64], sizes = [8, 32], strides = [1, 1]} : vector<8x96xf32> to vector<8x32xf32>
    %649 = vector.extract_strided_slice %634 {offsets = [0, 96], sizes = [8, 32], strides = [1, 1]} : vector<8x128xf32> to vector<8x32xf32>
    %650 = math.tanh %649 : vector<8x32xf32>
    %651 = arith.mulf %647, %611 : vector<8x32xf32>
    %652 = arith.mulf %646, %650 : vector<8x32xf32>
    %653 = arith.addf %651, %652 : vector<8x32xf32>
    %654 = math.tanh %653 : vector<8x32xf32>
    %655 = arith.mulf %648, %654 : vector<8x32xf32>
    %656 = vector.extract_strided_slice %637 {offsets = [0, 0], sizes = [8, 96], strides = [1, 1]} : vector<8x128xf32> to vector<8x96xf32>
    %cst_168 = arith.constant 5.000000e-01 : f32
    %657 = vector.broadcast %cst_168 : f32 to vector<8x96xf32>
    %658 = arith.mulf %657, %656 : vector<8x96xf32>
    %659 = math.tanh %658 : vector<8x96xf32>
    %cst_169 = arith.constant 5.000000e-01 : f32
    %660 = vector.broadcast %cst_169 : f32 to vector<8x96xf32>
    %661 = arith.mulf %660, %659 : vector<8x96xf32>
    %cst_170 = arith.constant 5.000000e-01 : f32
    %662 = vector.broadcast %cst_170 : f32 to vector<8x96xf32>
    %663 = arith.addf %661, %662 : vector<8x96xf32>
    %664 = vector.extract_strided_slice %663 {offsets = [0, 0], sizes = [8, 32], strides = [1, 1]} : vector<8x96xf32> to vector<8x32xf32>
    %665 = vector.extract_strided_slice %663 {offsets = [0, 32], sizes = [8, 32], strides = [1, 1]} : vector<8x96xf32> to vector<8x32xf32>
    %666 = vector.extract_strided_slice %663 {offsets = [0, 64], sizes = [8, 32], strides = [1, 1]} : vector<8x96xf32> to vector<8x32xf32>
    %667 = vector.extract_strided_slice %637 {offsets = [0, 96], sizes = [8, 32], strides = [1, 1]} : vector<8x128xf32> to vector<8x32xf32>
    %668 = math.tanh %667 : vector<8x32xf32>
    %669 = arith.mulf %665, %629 : vector<8x32xf32>
    %670 = arith.mulf %664, %668 : vector<8x32xf32>
    %671 = arith.addf %669, %670 : vector<8x32xf32>
    %672 = math.tanh %671 : vector<8x32xf32>
    %673 = arith.mulf %666, %672 : vector<8x32xf32>
    %cst_171 = arith.constant dense<0.000000e+00> : vector<8x128xf32>
    %674 = tpu.matmul %655, %376, %cst_171 {dimension_numbers = #tpu.dot_dimension_numbers<[1], [0], [0], [1], [0, 0, 1, 1], [], []>} : vector<8x32xf32>, vector<32x128xf32>, vector<8x128xf32> -> vector<8x128xf32>
    %675 = vector.extract_strided_slice %367 {offsets = [56, 0], sizes = [8, 128], strides = [1, 1]} : vector<64x128xf32> to vector<8x128xf32>
    %676 = arith.addf %674, %675 : vector<8x128xf32>
    %cst_172 = arith.constant dense<0.000000e+00> : vector<8x128xf32>
    %677 = tpu.matmul %673, %378, %cst_172 {dimension_numbers = #tpu.dot_dimension_numbers<[1], [0], [0], [1], [0, 0, 1, 1], [], []>} : vector<8x32xf32>, vector<32x128xf32>, vector<8x128xf32> -> vector<8x128xf32>
    %678 = vector.extract_strided_slice %374 {offsets = [56, 0], sizes = [8, 128], strides = [1, 1]} : vector<64x128xf32> to vector<8x128xf32>
    %679 = arith.addf %677, %678 : vector<8x128xf32>
    %680 = vector.extract_strided_slice %676 {offsets = [0, 0], sizes = [8, 96], strides = [1, 1]} : vector<8x128xf32> to vector<8x96xf32>
    %cst_173 = arith.constant 5.000000e-01 : f32
    %681 = vector.broadcast %cst_173 : f32 to vector<8x96xf32>
    %682 = arith.mulf %681, %680 : vector<8x96xf32>
    %683 = math.tanh %682 : vector<8x96xf32>
    %cst_174 = arith.constant 5.000000e-01 : f32
    %684 = vector.broadcast %cst_174 : f32 to vector<8x96xf32>
    %685 = arith.mulf %684, %683 : vector<8x96xf32>
    %cst_175 = arith.constant 5.000000e-01 : f32
    %686 = vector.broadcast %cst_175 : f32 to vector<8x96xf32>
    %687 = arith.addf %685, %686 : vector<8x96xf32>
    %688 = vector.extract_strided_slice %687 {offsets = [0, 0], sizes = [8, 32], strides = [1, 1]} : vector<8x96xf32> to vector<8x32xf32>
    %689 = vector.extract_strided_slice %687 {offsets = [0, 32], sizes = [8, 32], strides = [1, 1]} : vector<8x96xf32> to vector<8x32xf32>
    %690 = vector.extract_strided_slice %687 {offsets = [0, 64], sizes = [8, 32], strides = [1, 1]} : vector<8x96xf32> to vector<8x32xf32>
    %691 = vector.extract_strided_slice %676 {offsets = [0, 96], sizes = [8, 32], strides = [1, 1]} : vector<8x128xf32> to vector<8x32xf32>
    %692 = math.tanh %691 : vector<8x32xf32>
    %693 = arith.mulf %689, %653 : vector<8x32xf32>
    %694 = arith.mulf %688, %692 : vector<8x32xf32>
    %695 = arith.addf %693, %694 : vector<8x32xf32>
    %696 = math.tanh %695 : vector<8x32xf32>
    %697 = arith.mulf %690, %696 : vector<8x32xf32>
    %698 = vector.extract_strided_slice %679 {offsets = [0, 0], sizes = [8, 96], strides = [1, 1]} : vector<8x128xf32> to vector<8x96xf32>
    %cst_176 = arith.constant 5.000000e-01 : f32
    %699 = vector.broadcast %cst_176 : f32 to vector<8x96xf32>
    %700 = arith.mulf %699, %698 : vector<8x96xf32>
    %701 = math.tanh %700 : vector<8x96xf32>
    %cst_177 = arith.constant 5.000000e-01 : f32
    %702 = vector.broadcast %cst_177 : f32 to vector<8x96xf32>
    %703 = arith.mulf %702, %701 : vector<8x96xf32>
    %cst_178 = arith.constant 5.000000e-01 : f32
    %704 = vector.broadcast %cst_178 : f32 to vector<8x96xf32>
    %705 = arith.addf %703, %704 : vector<8x96xf32>
    %706 = vector.extract_strided_slice %705 {offsets = [0, 0], sizes = [8, 32], strides = [1, 1]} : vector<8x96xf32> to vector<8x32xf32>
    %707 = vector.extract_strided_slice %705 {offsets = [0, 32], sizes = [8, 32], strides = [1, 1]} : vector<8x96xf32> to vector<8x32xf32>
    %708 = vector.extract_strided_slice %705 {offsets = [0, 64], sizes = [8, 32], strides = [1, 1]} : vector<8x96xf32> to vector<8x32xf32>
    %709 = vector.extract_strided_slice %679 {offsets = [0, 96], sizes = [8, 32], strides = [1, 1]} : vector<8x128xf32> to vector<8x32xf32>
    %710 = math.tanh %709 : vector<8x32xf32>
    %711 = arith.mulf %707, %671 : vector<8x32xf32>
    %712 = arith.mulf %706, %710 : vector<8x32xf32>
    %713 = arith.addf %711, %712 : vector<8x32xf32>
    %714 = math.tanh %713 : vector<8x32xf32>
    %715 = arith.mulf %708, %714 : vector<8x32xf32>
    %c0_179 = arith.constant 0 : index
    %c0_180 = arith.constant 0 : index
    %c0_181 = arith.constant 0 : index
    %716 = vector.load %arg8[%c0_179, %c0_180, %c0_181] : memref<2x32x128xf32, #tpu.memory_space<vmem>>, vector<1x32x128xf32>
    %717 = vector.shape_cast %716 : vector<1x32x128xf32> to vector<32x128xf32>
    %cst_182 = arith.constant dense<0.000000e+00> : vector<8x128xf32>
    %718 = tpu.matmul %697, %717, %cst_182 {dimension_numbers = #tpu.dot_dimension_numbers<[1], [0], [0], [1], [0, 0, 1, 1], [], []>} : vector<8x32xf32>, vector<32x128xf32>, vector<8x128xf32> -> vector<8x128xf32>
    %c1_183 = arith.constant 1 : index
    %c0_184 = arith.constant 0 : index
    %c0_185 = arith.constant 0 : index
    %719 = vector.load %arg8[%c1_183, %c0_184, %c0_185] : memref<2x32x128xf32, #tpu.memory_space<vmem>>, vector<1x32x128xf32>
    %720 = vector.shape_cast %719 : vector<1x32x128xf32> to vector<32x128xf32>
    %cst_186 = arith.constant dense<0.000000e+00> : vector<8x128xf32>
    %721 = tpu.matmul %715, %720, %cst_186 {dimension_numbers = #tpu.dot_dimension_numbers<[1], [0], [0], [1], [0, 0, 1, 1], [], []>} : vector<8x32xf32>, vector<32x128xf32>, vector<8x128xf32> -> vector<8x128xf32>
    %722 = arith.addf %718, %721 : vector<8x128xf32>
    %c0_187 = arith.constant 0 : index
    %c0_188 = arith.constant 0 : index
    %723 = vector.load %arg9[%c0_187, %c0_188] : memref<1x128xf32, #tpu.memory_space<vmem>>, vector<1x128xf32>
    %724 = vector.broadcast %723 : vector<1x128xf32> to vector<8x128xf32>
    %725 = arith.addf %722, %724 : vector<8x128xf32>
    %c0_189 = arith.constant 0 : index
    %c0_190 = arith.constant 0 : index
    %726 = vector.load %arg10[%c0_189, %c0_190] : memref<8x128xf32, #tpu.memory_space<vmem>>, vector<8x128xf32>
    tpu.vector_store %arg10[%c0_189, %c0_190], %725 {strides = array<i32>} : memref<8x128xf32, #tpu.memory_space<vmem>>, vector<8x128xf32>,
    return
  }
  func.func @transform_0(%arg0: i32) -> (i32, i32, i32) {
    %c0_i32 = arith.constant 0 : i32
    %c0_i32_0 = arith.constant 0 : i32
    %c0_i32_1 = arith.constant 0 : i32
    %c0_i32_2 = arith.constant 0 : i32
    return %c0_i32, %c0_i32_0, %c0_i32_1 : i32, i32, i32
  }
  func.func @transform_1(%arg0: i32) -> (i32, i32, i32) {
    %c0_i32 = arith.constant 0 : i32
    %c0_i32_0 = arith.constant 0 : i32
    %c0_i32_1 = arith.constant 0 : i32
    %c0_i32_2 = arith.constant 0 : i32
    return %c0_i32, %c0_i32_0, %c0_i32_1 : i32, i32, i32
  }
  func.func @transform_2(%arg0: i32) -> (i32, i32, i32) {
    %c0_i32 = arith.constant 0 : i32
    %c0_i32_0 = arith.constant 0 : i32
    %c0_i32_1 = arith.constant 0 : i32
    %c0_i32_2 = arith.constant 0 : i32
    return %c0_i32, %c0_i32_0, %c0_i32_1 : i32, i32, i32
  }
  func.func @transform_3(%arg0: i32) -> (i32, i32, i32) {
    %c0_i32 = arith.constant 0 : i32
    %c0_i32_0 = arith.constant 0 : i32
    %c0_i32_1 = arith.constant 0 : i32
    %c0_i32_2 = arith.constant 0 : i32
    return %c0_i32, %c0_i32_0, %c0_i32_1 : i32, i32, i32
  }
  func.func @transform_4(%arg0: i32) -> (i32, i32, i32, i32) {
    %c0_i32 = arith.constant 0 : i32
    %c0_i32_0 = arith.constant 0 : i32
    %c0_i32_1 = arith.constant 0 : i32
    %c0_i32_2 = arith.constant 0 : i32
    %c0_i32_3 = arith.constant 0 : i32
    return %c0_i32, %c0_i32_0, %c0_i32_1, %c0_i32_2 : i32, i32, i32, i32
  }
  func.func @transform_5(%arg0: i32) -> (i32, i32, i32, i32) {
    %c0_i32 = arith.constant 0 : i32
    %c0_i32_0 = arith.constant 0 : i32
    %c0_i32_1 = arith.constant 0 : i32
    %c0_i32_2 = arith.constant 0 : i32
    %c0_i32_3 = arith.constant 0 : i32
    return %c0_i32, %c0_i32_0, %c0_i32_1, %c0_i32_2 : i32, i32, i32, i32
  }
  func.func @transform_6(%arg0: i32) -> (i32, i32, i32, i32) {
    %c0_i32 = arith.constant 0 : i32
    %c0_i32_0 = arith.constant 0 : i32
    %c0_i32_1 = arith.constant 0 : i32
    %c0_i32_2 = arith.constant 0 : i32
    %c0_i32_3 = arith.constant 0 : i32
    return %c0_i32, %c0_i32_0, %c0_i32_1, %c0_i32_2 : i32, i32, i32, i32
  }
  func.func @transform_7(%arg0: i32) -> (i32, i32, i32) {
    %c0_i32 = arith.constant 0 : i32
    %c0_i32_0 = arith.constant 0 : i32
    %c0_i32_1 = arith.constant 0 : i32
    %c0_i32_2 = arith.constant 0 : i32
    return %c0_i32, %c0_i32_0, %c0_i32_1 : i32, i32, i32
  }
  func.func @transform_8(%arg0: i32) -> (i32, i32) {
    %c0_i32 = arith.constant 0 : i32
    %c0_i32_0 = arith.constant 0 : i32
    %c0_i32_1 = arith.constant 0 : i32
    return %c0_i32, %c0_i32_0 : i32, i32
  }
  func.func @transform_9(%arg0: i32) -> (i32, i32) {
    %c0_i32 = arith.constant 0 : i32
    %c0_i32_0 = arith.constant 0 : i32
    %c0_i32_1 = arith.constant 0 : i32
    return %c0_i32, %c0_i32_0 : i32, i32
  }
}

</mosaic_0001>

<bundles_post_ra>
// kernel: loganomaly_forward.1
= control target key start
LH: loop header
LB: loop body
LE: loop exit
PB: predicated region body
PF: predicated region fallthrough
CT: control target
= control target key end

     0   :  { %vm73_vm0 = vcmask 1043456   ;;  %vm48_vm1 = vcmask 31744   ;;  %v4801_v9 = vmov 0.0   ;;  %vm4802_vm2 = vmmov 0   ;;  %s4804_s19 = smov 64   ;;  %s5837_s1 = inlined_call_operand.vmem [shape: f32[2,4,128], index: 1, kind: input, shape index: {}]   ;;  %s5838_s0 = inlined_call_operand.vmem [shape: f32[2,64,4], index: 0, kind: input, shape index: {}]   ;;  %s5839_s2 = inlined_call_operand.vmem [shape: f32[2,32,128], index: 2, kind: input, shape index: {}]   ;;  %s5840_s3 = inlined_call_operand.vmem [shape: f32[2,1,128], index: 3, kind: input, shape index: {}]   ;;  %s5841_s4 = inlined_call_operand.vmem [shape: f32[2,1,32,128], index: 4, kind: input, shape index: {}]   ;;  %s5842_s5 = inlined_call_operand.vmem [shape: f32[2,1,32,128], index: 5, kind: input, shape index: {}]   ;;  %s5843_s6 = inlined_call_operand.vmem [shape: f32[2,1,1,128], index: 6, kind: input, shape index: {}]   ;;  %s5844_s7 = inlined_call_operand.vmem [shape: f32[2,32,128], index: 7, kind: input, shape index: {}]   ;;  %s5845_s8 = inlined_call_operand.vmem [shape: f32[1,128], index: 8, kind: input, shape index: {}]   ;;  %s5846_s9 = inlined_call_operand.vmem [shape: f32[8,128], index: 9, kind: output, shape index: {}]  }
   0x1   :  { %v40_v0 = vld [vmem:[%s5837_s1] sm:$0xf]  ;;  %v3873_v1 = vld [vmem:[%s5837_s1 + $0x4] sm:$0xf]  ;;  %v33_v4 = vld [vmem:[%s5838_s0 + $0x8] sm:$0xff]  ;;  %vm342_vm3 = vcmask 261120  }
   0x2   :  { %v32_v2 = vld [vmem:[%s5838_s0] sm:$0xff]  ;;  %4163 = vmatprep.subr.msk.mxu0 %vm73_vm0, %v40_v0  ;;  %4177 = vmatprep.subr.msk.mxu1 %vm73_vm0, %v3873_v1  ;;  %v3866_v5 = vld [vmem:[%s5838_s0 + $0x48] sm:$0xff]  ;;  %v34_v6 = vld [vmem:[%s5838_s0 + $0x10] sm:$0xff] }
   0x3   :  { %v3865_v3 = vld [vmem:[%s5838_s0 + $0x40] sm:$0xff]  ;;  %4164 = vmatpush3.msk.msra.mxu0 %vm73_vm0, %v40_v0  ;;  %4165 = vmatprep.mubr.msk.f32.mxu0 %vm48_vm1, %v32_v2  ;;  %v4881_v7 = vld [vmem:[%s5839_s2 + $0x18] sm:$0xff]  ;;  %v3867_v8 = vld [vmem:[%s5838_s0 + $0x50] sm:$0xff] }
   0x4   :  { %4178 = vmatpush3.msk.msra.mxu1 %vm73_vm0, %v3873_v1  ;;  %4179 = vmatprep.mubr.msk.f32.mxu1 %vm48_vm1, %v3865_v3  ;;  %v35_v10 = vld [vmem:[%s5838_s0 + $0x18] sm:$0xff]  ;;  %v4901_v12 = vld [vmem:[%s5839_s2 + $0x10] sm:$0xff]  ;;  %v36_v14 = vld [vmem:[%s5838_s0 + $0x20] sm:$0xff] }
   0x5   :  { %4166 = vmatmul.mubr.msk.f32.vlgmr.msra.gmra.mxu0 %vm48_vm1, %v33_v4  ;;  %4180 = vmatmul.mubr.msk.f32.vlgmr.msra.gmra.mxu1 %vm48_vm1, %v3866_v5  ;;  %v3868_v11 = vld [vmem:[%s5838_s0 + $0x58] sm:$0xff]  ;;  %v3869_v15 = vld [vmem:[%s5838_s0 + $0x60] sm:$0xff]  ;;  %v37_v16 = vld [vmem:[%s5838_s0 + $0x28] sm:$0xff] }
   0x6   :  { %4191 = vmatprep.subr.mxu0 %v4801_v9  ;;  %4168 = vmatprep.mubr.msk.f32.mxu0 %vm48_vm1, %v34_v6  ;;  %v4906_v13 = vld [vmem:[%s5839_s2 + $0x38] sm:$0xff]  ;;  %v3870_v17 = vld [vmem:[%s5838_s0 + $0x68] sm:$0xff]  ;;  %v4936_v19 = vld [vmem:[%s5839_s2 + $0x30] sm:$0xff] }
   0x7   :  { %4192 = vmatpush3.msra.mxu0 %v4881_v7  ;;  %4182 = vmatprep.mubr.msk.f32.mxu1 %vm48_vm1, %v3867_v8  ;;  %v4931_v18 = vld [vmem:[%s5839_s2 + $0x8] sm:$0xff]  ;;  %v38_v20 = vld [vmem:[%s5838_s0 + $0x30] sm:$0xff]  ;;  %v39_v22 = vld [vmem:[%s5838_s0 + $0x38] sm:$0xff] }
   0x8   :  { %4193 = vmatprep.subr.mxu0 %v4801_v9  ;;  %4202 = vmatprep.subr.mxu1 %v4801_v9  ;;  %v3871_v21 = vld [vmem:[%s5838_s0 + $0x70] sm:$0xff]  ;;  %v3872_v23 = vld [vmem:[%s5838_s0 + $0x78] sm:$0xff]  ;;  %v4961_v24 = vld [vmem:[%s5839_s2] sm:$0xff] }
   0x9   :  { %4169 = vmatmul.mubr.msk.f32.gmra.mxu0 %vm48_vm1, %v35_v10  ;;  %4183 = vmatmul.mubr.msk.f32.gmra.mxu1 %vm48_vm1, %v3868_v11  ;;  %v4966_v25 = vld [vmem:[%s5839_s2 + $0x28] sm:$0xff]  ;;  %v4975_v26 = vld [vmem:[%s5839_s2 + $0x20] sm:$0xff] }
   0xa   :  { %4194 = vmatpush3.msra.mxu0 %v4901_v12  ;;  %4203 = vmatpush3.msra.mxu1 %v4906_v13  ;;  %v3855_v27 = vld [vmem:[%s5840_s3] ss:$0 sm:$0xff]  ;;  %v3875_v28 = vld [vmem:[%s5840_s3 + $0x1] ss:$0 sm:$0xff]  ;;  %s4803_s3 = smov 32  }
   0xb   :  { %4171 = vmatprep.mubr.msk.f32.mxu0 %vm48_vm1, %v36_v14  ;;  %4185 = vmatprep.mubr.msk.f32.mxu1 %vm48_vm1, %v3869_v15 }
   0xc   :  { %4195 = vmatprep.subr.mxu0 %v4801_v9  ;;  %4204 = vmatprep.subr.mxu1 %v4801_v9 }
   0xd   :  { %4172 = vmatmul.mubr.msk.f32.gmra.mxu0 %vm48_vm1, %v37_v16  ;;  %4186 = vmatmul.mubr.msk.f32.gmra.mxu1 %vm48_vm1, %v3870_v17 }
   0xe   :  { %4196 = vmatpush3.msra.mxu0 %v4931_v18  ;;  %4205 = vmatpush3.msra.mxu1 %v4936_v19 }
   0xf   :  { %4174 = vmatprep.mubr.msk.f32.mxu0 %vm48_vm1, %v38_v20  ;;  %4188 = vmatprep.mubr.msk.f32.mxu1 %vm48_vm1, %v3871_v21 }
  0x10   :  { %4197 = vmatprep.subr.mxu0 %v4801_v9  ;;  %4206 = vmatprep.subr.mxu1 %v4801_v9 }
  0x11   :  { %4175 = vmatmul.mubr.msk.f32.gmra.mxu0 %vm48_vm1, %v39_v22  ;;  %4189 = vmatmul.mubr.msk.f32.gmra.mxu1 %vm48_vm1, %v3872_v23 }
  0x12   :  { %4198 = vmatpush3.msra.mxu0 %v4961_v24  ;;  %4207 = vmatpush3.msra.mxu1 %v4966_v25 }
  0x13   :  { %4208 = vmatprep.subr.mxu1 %v4801_v9  ;;  %4199 = vmatprep.mubr.msk.f32.mxu0 %vm4802_vm2, %v4801_v9 }
  0x14   :  { %4209 = vmatpush3.msra.mxu1 %v4975_v26  ;;  %4210 = vmatprep.mubr.msk.f32.mxu1 %vm4802_vm2, %v4801_v9 }
  0x15   :  { %4200 = vmatmul.mubr.f32.vlgmr.msra.gmra.mxu0 %v4801_v9  ;;  %4211 = vmatmul.mubr.f32.vlgmr.msra.gmra.mxu1 %v4801_v9 }
  0x16   :  { %4213 = vmatprep.subr.mxu0 %v4801_v9  ;;  %4224 = vmatprep.subr.mxu1 %v4801_v9 }
  0x17   :  { %4214 = vmatpush3.msra.mxu0 %v4881_v7  ;;  %4225 = vmatpush3.msra.mxu1 %v4906_v13 }
  0x18   :  { %4215 = vmatprep.subr.mxu0 %v4801_v9  ;;  %4226 = vmatprep.subr.mxu1 %v4801_v9 }
  0x19   :  { %4216 = vmatpush3.msra.mxu0 %v4901_v12  ;;  %4221 = vmatprep.mubr.msk.f32.mxu0 %vm4802_vm2, %v4801_v9 }
  0x1a   :  { %4217 = vmatprep.subr.mxu0 %v4801_v9  ;;  %4227 = vmatpush3.msra.mxu1 %v4936_v19 }
  0x1b   :  { %4218 = vmatpush3.msra.mxu0 %v4931_v18  ;;  %4228 = vmatprep.subr.mxu1 %v4801_v9 }
  0x1c   :  { %4219 = vmatprep.subr.mxu0 %v4801_v9  ;;  %4229 = vmatpush3.msra.mxu1 %v4966_v25 }
  0x1d   :  { %4220 = vmatpush3.msra.mxu0 %v4961_v24  ;;  %4230 = vmatprep.subr.mxu1 %v4801_v9 }
  0x1e   :  { %4231 = vmatpush3.msra.mxu1 %v4975_v26  ;;  %4232 = vmatprep.mubr.msk.f32.mxu1 %vm4802_vm2, %v4801_v9 }
  0x1f   :  { %4235 = vmatprep.subr.mxu0 %v4801_v9  ;;  %4246 = vmatprep.subr.mxu1 %v4801_v9 }
  0xc5   :  { %v4167_v29 = vpop.f32.mrf.mxu0  ;;  %v4181_v30 = vpop.f32.mrf.mxu1 }
  0xc6   :  { %v5015_v31 = vadd.f32 %v4167_v29, %v3855_v27  ;;  %v5017_v32 = vadd.f32 %v4181_v30, %v3875_v28 }
  0xc7   :  { %v143_v33 = vpop.f32.mrf.mxu0  ;;  %v294_v34 = vpop.f32.mrf.mxu1 }
  0xc8   :  { %v144_v57 = vadd.f32 %v3855_v27, %v143_v33  ;;  %v295_v62 = vadd.f32 %v3875_v28, %v294_v34 }
  0xc9   :  { %v4170_v35 = vpop.f32.mrf.mxu0  ;;  %v4184_v36 = vpop.f32.mrf.mxu1 }
  0xca   :  { %v5019_v37 = vadd.f32 %v4170_v35, %v3855_v27  ;;  %v5021_v38 = vadd.f32 %v4184_v36, %v3875_v28 }
  0xcb   :  { %v153_v39 = vpop.f32.mrf.mxu0  ;;  %v304_v40 = vpop.f32.mrf.mxu1 }
  0xcc   :  { %v5023_v41 = vadd.f32 %v3855_v27, %v153_v39  ;;  %v5025_v42 = vadd.f32 %v3875_v28, %v304_v40 }
  0xcd   :  { %v4173_v43 = vpop.f32.mrf.mxu0  ;;  %v4187_v44 = vpop.f32.mrf.mxu1 }
  0xce   :  { %v5027_v45 = vadd.f32 %v4173_v43, %v3855_v27  ;;  %v5029_v46 = vadd.f32 %v4187_v44, %v3875_v28 }
  0xcf   :  { %v163_v47 = vpop.f32.mrf.mxu0  ;;  %v314_v48 = vpop.f32.mrf.mxu1 }
  0xd0   :  { %v5031_v49 = vadd.f32 %v3855_v27, %v163_v47  ;;  %v5033_v50 = vadd.f32 %v3875_v28, %v314_v48 }
  0xd1   :  { %v4176_v51 = vpop.f32.mrf.mxu0  ;;  %v4190_v52 = vpop.f32.mrf.mxu1 }
  0xd2   :  { %v5035_v53 = vadd.f32 %v4176_v51, %v3855_v27  ;;  %v5037_v54 = vadd.f32 %v4190_v52, %v3875_v28 }
  0xd3   :  { %v173_v55 = vpop.f32.mrf.mxu0  ;;  %v324_v56 = vpop.f32.mrf.mxu1 }
  0xd4   :  { %v5039_v58 = vadd.f32 %v3855_v27, %v173_v55  ;;  %v5041_v59 = vadd.f32 %v3875_v28, %v324_v56 }
  0xd5   :  { %v412_v60 = vpop.f32.mrf.mxu0  ;;  %v482_v61 = vpop.f32.mrf.mxu1 }
  0xd6   :  { %v413_v63 = vadd.f32 %v412_v60, %v144_v57  ;;  %v483_v2 = vadd.f32 %v482_v61, %v295_v62 }
  0xd7   :  { %v4201_v0 = vpop.f32.mrf.mxu0  ;;  %v4212_v1 = vpop.f32.mrf.mxu1 }
  0xd8   :  { %4609 = vtanh.f32 %v413_v63  ;;  %v486_v5 = vmul.f32 0.5, %v413_v63  ;;  %v508_v6 = vmul.f32 0.5, %v483_v2 }
  0xd9   :  { %4611 = vtanh.f32 %v483_v2 }
  0xda   :  { %4613 = vtanh.f32 %v486_v5 }
  0xdb   :  { %4615 = vtanh.f32 %v508_v6 }
  0xe5   :  { %v4610_v3 = vpop.eup %4609 }
  0xe6   :  { %493 = vrot.lane.b32.xlu0 %v4610_v3, %s4803_s3  ;;  %v4612_v4 = vpop.eup %4611 }
  0xe7   :  { %v4614_v8 = vpop.eup %4613 }
  0xe8   :  { %v488_v10 = vmul.f32 0.5, %v4614_v8  ;;  %v4616_v11 = vpop.eup %4615 }
  0xe9   :  { %v510_v14 = vmul.f32 0.5, %v4616_v11 }
  0xea   :  { %515 = vrot.lane.b32.xlu0 %v4612_v4, %s4803_s3  ;;  %v489_v15 = vadd.f32 0.5, %v488_v10 }
  0xeb   :  { %v511_v20 = vadd.f32 0.5, %v510_v14 }
  0xec   :  { %v491_v23 = vmul.f32 0.0, %v489_v15 }
  0xed   :  { %v513_v29 = vmul.f32 0.0, %v511_v20 }
 0x158   :  { %v494_v16 = vpop.permute.xlu0 %493 }
 0x159   :  { %v496_v17 = vmul.f32 %v494_v16, %v489_v15 }
 0x15b   :  { %498 = vrot.lane.b32.xlu1 %v496_v17, %s4803_s3 }
 0x15c   :  { %v516_v21 = vpop.permute.xlu0 %515 }
 0x15d   :  { %v518_v22 = vmul.f32 %v516_v21, %v511_v20 }
 0x15f   :  { %520 = vrot.lane.b32.xlu1 %v518_v22, %s4803_s3 }
 0x1cd   :  { %v499_v27 = vpop.permute.xlu1 %498 }
 0x1ce   :  { %v5047_v28 = vadd.f32 %v499_v27, %v491_v23 }
 0x1d0   :  { %4617 = vtanh.f32 %v5047_v28 }
 0x1d1   :  { %v521_v30 = vpop.permute.xlu1 %520 }
 0x1d2   :  { %v5050_v33 = vadd.f32 %v521_v30, %v513_v29 }
 0x1d4   :  { %4619 = vtanh.f32 %v5050_v33 }
 0x1dd   :  { %v4618_v34 = vpop.eup %4617 }
 0x1de   :  { %504 = vrot.lane.b32.xlu0 %v4618_v34, %s4803_s3 }
 0x1e1   :  { %v4620_v35 = vpop.eup %4619 }
 0x1e2   :  { %526 = vrot.lane.b32.xlu1 %v4620_v35, %s4803_s3 }
 0x250   :  { %v505_v36 = vpop.permute.xlu0 %504 }
 0x251   :  { %v507_v39 = vmul.f32 %v505_v36, %v489_v15 }
 0x253   :  { %531 = vrot.lane.b32.xlu0 %v507_v39, %s4804_s19 }
 0x254   :  { %v527_v40 = vpop.permute.xlu1 %526 }
 0x255   :  { %v529_v43 = vmul.f32 %v527_v40, %v511_v20 }
 0x257   :  { %606 = vrot.lane.b32.xlu1 %v529_v43, %s4804_s19 }
 0x2c5   :  { %v5057_v44 = vpop.permute.xlu0 %531 }
 0x2c6   :  { %4222 = vmatmul.mubr.msk.f32.vlgmr.msra.gmra.mxu0 %vm342_vm3, %v5057_v44 }
 0x2c7   :  { %4236 = vmatpush3.msra.mxu0 %v4881_v7  ;;  %4243 = vmatprep.mubr.msk.f32.mxu0 %vm4802_vm2, %v4801_v9 }
 0x2c8   :  { %4237 = vmatprep.subr.mxu0 %v4801_v9 }
 0x2c9   :  { %v5065_v47 = vpop.permute.xlu1 %606  ;;  %4238 = vmatpush3.msra.mxu0 %v4901_v12 }
 0x2ca   :  { %4233 = vmatmul.mubr.msk.f32.vlgmr.msra.gmra.mxu1 %vm342_vm3, %v5065_v47  ;;  %4239 = vmatprep.subr.mxu0 %v4801_v9 }
 0x2cb   :  { %4240 = vmatpush3.msra.mxu0 %v4931_v18  ;;  %4247 = vmatpush3.msra.mxu1 %v4906_v13 }
 0x2cc   :  { %4241 = vmatprep.subr.mxu0 %v4801_v9  ;;  %4248 = vmatprep.subr.mxu1 %v4801_v9 }
 0x2cd   :  { %4242 = vmatpush3.msra.mxu0 %v4961_v24  ;;  %4249 = vmatpush3.msra.mxu1 %v4936_v19 }
 0x2ce   :  { %4250 = vmatprep.subr.mxu1 %v4801_v9  ;;  %4254 = vmatprep.mubr.msk.f32.mxu1 %vm4802_vm2, %v4801_v9 }
 0x2cf   :  { %4251 = vmatpush3.msra.mxu1 %v4966_v25  ;;  %4257 = vmatprep.subr.mxu0 %v4801_v9 }
 0x2d0   :  { %4252 = vmatprep.subr.mxu1 %v4801_v9 }
 0x2d1   :  { %4253 = vmatpush3.msra.mxu1 %v4975_v26 }
 0x2d2   :  { %4268 = vmatprep.subr.mxu1 %v4801_v9 }
 0x386   :  { %v601_v48 = vpop.f32.mrf.mxu0 }
 0x387   :  { %v602_v51 = vadd.f32 %v601_v48, %v5015_v31 }
 0x388   :  { %v4223_v52 = vpop.f32.mrf.mxu0 }
 0x389   :  { %4621 = vtanh.f32 %v602_v51  ;;  %v680_v62 = vmul.f32 0.5, %v602_v51 }
 0x38a   :  { %v676_v55 = vpop.f32.mrf.mxu1 }
 0x38b   :  { %v677_v56 = vadd.f32 %v676_v55, %v5017_v32 }
 0x38c   :  { %v4234_v57 = vpop.f32.mrf.mxu1 }
 0x38d   :  { %4623 = vtanh.f32 %v677_v56  ;;  %v702_v63 = vmul.f32 0.5, %v677_v56 }
 0x38e   :  { %4625 = vtanh.f32 %v680_v62 }
 0x38f   :  { %4627 = vtanh.f32 %v702_v63 }
 0x396   :  { %v4622_v60 = vpop.eup %4621 }
 0x397   :  { %687 = vrot.lane.b32.xlu0 %v4622_v60, %s4803_s3 }
 0x39a   :  { %v4624_v61 = vpop.eup %4623 }
 0x39b   :  { %709 = vrot.lane.b32.xlu1 %v4624_v61, %s4803_s3  ;;  %v4626_v0 = vpop.eup %4625 }
 0x39c   :  { %v682_v1 = vmul.f32 0.5, %v4626_v0  ;;  %v4628_v31 = vpop.eup %4627 }
 0x39d   :  { %v704_v2 = vmul.f32 0.5, %v4628_v31 }
 0x39e   :  { %v683_v3 = vadd.f32 0.5, %v682_v1 }
 0x39f   :  { %v705_v32 = vadd.f32 0.5, %v704_v2 }
 0x3a0   :  { %v685_v10 = vmul.f32 %v683_v3, %v5047_v28 }
 0x3a1   :  { %v707_v15 = vmul.f32 %v705_v32, %v5050_v33 }
 0x409   :  { %v688_v4 = vpop.permute.xlu0 %687 }
 0x40a   :  { %v690_v5 = vmul.f32 %v688_v4, %v683_v3 }
 0x40c   :  { %692 = vrot.lane.b32.xlu0 %v690_v5, %s4803_s3 }
 0x40d   :  { %v710_v6 = vpop.permute.xlu1 %709 }
 0x40e   :  { %v712_v8 = vmul.f32 %v710_v6, %v705_v32 }
 0x410   :  { %714 = vrot.lane.b32.xlu1 %v712_v8, %s4803_s3 }
 0x47e   :  { %v693_v11 = vpop.permute.xlu0 %692 }
 0x47f   :  { %v5092_v14 = vadd.f32 %v693_v11, %v685_v10 }
 0x481   :  { %4629 = vtanh.f32 %v5092_v14 }
 0x482   :  { %v715_v16 = vpop.permute.xlu1 %714 }
 0x483   :  { %v5096_v17 = vadd.f32 %v715_v16, %v707_v15 }
 0x485   :  { %4631 = vtanh.f32 %v5096_v17 }
 0x48e   :  { %v4630_v20 = vpop.eup %4629 }
 0x48f   :  { %698 = vrot.lane.b32.xlu0 %v4630_v20, %s4803_s3 }
 0x492   :  { %v4632_v21 = vpop.eup %4631 }
 0x493   :  { %720 = vrot.lane.b32.xlu1 %v4632_v21, %s4803_s3 }
 0x501   :  { %v699_v22 = vpop.permute.xlu0 %698 }
 0x502   :  { %v701_v23 = vmul.f32 %v699_v22, %v683_v3 }
 0x504   :  { %725 = vrot.lane.b32.xlu0 %v701_v23, %s4804_s19 }
 0x505   :  { %v721_v27 = vpop.permute.xlu1 %720 }
 0x506   :  { %v723_v28 = vmul.f32 %v721_v27, %v705_v32 }
 0x508   :  { %800 = vrot.lane.b32.xlu1 %v723_v28, %s4804_s19 }
 0x576   :  { %v5103_v29 = vpop.permute.xlu0 %725 }
 0x577   :  { %4244 = vmatmul.mubr.msk.f32.vlgmr.msra.gmra.mxu0 %vm342_vm3, %v5103_v29 }
 0x578   :  { %4258 = vmatpush3.msra.mxu0 %v4881_v7  ;;  %4265 = vmatprep.mubr.msk.f32.mxu0 %vm4802_vm2, %v4801_v9 }
 0x579   :  { %4259 = vmatprep.subr.mxu0 %v4801_v9 }
 0x57a   :  { %v5111_v30 = vpop.permute.xlu1 %800  ;;  %4260 = vmatpush3.msra.mxu0 %v4901_v12 }
 0x57b   :  { %4255 = vmatmul.mubr.msk.f32.vlgmr.msra.gmra.mxu1 %vm342_vm3, %v5111_v30  ;;  %4261 = vmatprep.subr.mxu0 %v4801_v9 }
 0x57c   :  { %4262 = vmatpush3.msra.mxu0 %v4931_v18  ;;  %4269 = vmatpush3.msra.mxu1 %v4906_v13 }
 0x57d   :  { %4263 = vmatprep.subr.mxu0 %v4801_v9  ;;  %4270 = vmatprep.subr.mxu1 %v4801_v9 }
 0x57e   :  { %4264 = vmatpush3.msra.mxu0 %v4961_v24  ;;  %4271 = vmatpush3.msra.mxu1 %v4936_v19 }
 0x57f   :  { %4272 = vmatprep.subr.mxu1 %v4801_v9  ;;  %4276 = vmatprep.mubr.msk.f32.mxu1 %vm4802_vm2, %v4801_v9 }
 0x580   :  { %4273 = vmatpush3.msra.mxu1 %v4966_v25  ;;  %4279 = vmatprep.subr.mxu0 %v4801_v9 }
 0x581   :  { %4274 = vmatprep.subr.mxu1 %v4801_v9 }
 0x582   :  { %4275 = vmatpush3.msra.mxu1 %v4975_v26 }
 0x583   :  { %4290 = vmatprep.subr.mxu1 %v4801_v9 }
 0x637   :  { %v795_v33 = vpop.f32.mrf.mxu0 }
 0x638   :  { %v796_v34 = vadd.f32 %v795_v33, %v5023_v41 }
 0x639   :  { %v4245_v35 = vpop.f32.mrf.mxu0 }
 0x63a   :  { %4633 = vtanh.f32 %v796_v34  ;;  %v874_v51 = vmul.f32 0.5, %v796_v34 }
 0x63b   :  { %v870_v36 = vpop.f32.mrf.mxu1 }
 0x63c   :  { %v871_v39 = vadd.f32 %v870_v36, %v5025_v42 }
 0x63d   :  { %v4256_v40 = vpop.f32.mrf.mxu1 }
 0x63e   :  { %4635 = vtanh.f32 %v871_v39  ;;  %v896_v52 = vmul.f32 0.5, %v871_v39 }
 0x63f   :  { %4637 = vtanh.f32 %v874_v51 }
 0x640   :  { %4639 = vtanh.f32 %v896_v52 }
 0x647   :  { %v4634_v43 = vpop.eup %4633 }
 0x648   :  { %881 = vrot.lane.b32.xlu0 %v4634_v43, %s4803_s3 }
 0x64b   :  { %v4636_v48 = vpop.eup %4635 }
 0x64c   :  { %903 = vrot.lane.b32.xlu1 %v4636_v48, %s4803_s3  ;;  %v4638_v55 = vpop.eup %4637 }
 0x64d   :  { %v876_v56 = vmul.f32 0.5, %v4638_v55  ;;  %v4640_v41 = vpop.eup %4639 }
 0x64e   :  { %v898_v57 = vmul.f32 0.5, %v4640_v41 }
 0x64f   :  { %v877_v60 = vadd.f32 0.5, %v876_v56 }
 0x650   :  { %v899_v42 = vadd.f32 0.5, %v898_v57 }
 0x651   :  { %v879_v1 = vmul.f32 %v877_v60, %v5092_v14 }
 0x652   :  { %v901_v3 = vmul.f32 %v899_v42, %v5096_v17 }
 0x6ba   :  { %v882_v61 = vpop.permute.xlu0 %881 }
 0x6bb   :  { %v884_v62 = vmul.f32 %v882_v61, %v877_v60 }
 0x6bd   :  { %886 = vrot.lane.b32.xlu0 %v884_v62, %s4803_s3 }
 0x6be   :  { %v904_v63 = vpop.permute.xlu1 %903 }
 0x6bf   :  { %v906_v0 = vmul.f32 %v904_v63, %v899_v42 }
 0x6c1   :  { %908 = vrot.lane.b32.xlu1 %v906_v0, %s4803_s3 }
 0x72f   :  { %v887_v31 = vpop.permute.xlu0 %886 }
 0x730   :  { %v5138_v2 = vadd.f32 %v887_v31, %v879_v1 }
 0x732   :  { %4641 = vtanh.f32 %v5138_v2 }
 0x733   :  { %v909_v4 = vpop.permute.xlu1 %908 }
 0x734   :  { %v5142_v5 = vadd.f32 %v909_v4, %v901_v3 }
 0x736   :  { %4643 = vtanh.f32 %v5142_v5 }
 0x73f   :  { %v4642_v32 = vpop.eup %4641 }
 0x740   :  { %892 = vrot.lane.b32.xlu0 %v4642_v32, %s4803_s3 }
 0x743   :  { %v4644_v6 = vpop.eup %4643 }
 0x744   :  { %914 = vrot.lane.b32.xlu1 %v4644_v6, %s4803_s3 }
 0x7b2   :  { %v893_v8 = vpop.permute.xlu0 %892 }
 0x7b3   :  { %v895_v10 = vmul.f32 %v893_v8, %v877_v60 }
 0x7b5   :  { %919 = vrot.lane.b32.xlu0 %v895_v10, %s4804_s19 }
 0x7b6   :  { %v915_v11 = vpop.permute.xlu1 %914 }
 0x7b7   :  { %v917_v14 = vmul.f32 %v915_v11, %v899_v42 }
 0x7b9   :  { %994 = vrot.lane.b32.xlu1 %v917_v14, %s4804_s19 }
 0x827   :  { %v5149_v15 = vpop.permute.xlu0 %919 }
 0x828   :  { %4266 = vmatmul.mubr.msk.f32.vlgmr.msra.gmra.mxu0 %vm342_vm3, %v5149_v15 }
 0x829   :  { %4280 = vmatpush3.msra.mxu0 %v4881_v7  ;;  %4287 = vmatprep.mubr.msk.f32.mxu0 %vm4802_vm2, %v4801_v9 }
 0x82a   :  { %4281 = vmatprep.subr.mxu0 %v4801_v9 }
 0x82b   :  { %v5157_v16 = vpop.permute.xlu1 %994  ;;  %4282 = vmatpush3.msra.mxu0 %v4901_v12 }
 0x82c   :  { %4277 = vmatmul.mubr.msk.f32.vlgmr.msra.gmra.mxu1 %vm342_vm3, %v5157_v16  ;;  %4283 = vmatprep.subr.mxu0 %v4801_v9 }
 0x82d   :  { %4284 = vmatpush3.msra.mxu0 %v4931_v18  ;;  %4291 = vmatpush3.msra.mxu1 %v4906_v13 }
 0x82e   :  { %4285 = vmatprep.subr.mxu0 %v4801_v9  ;;  %4292 = vmatprep.subr.mxu1 %v4801_v9 }
 0x82f   :  { %4286 = vmatpush3.msra.mxu0 %v4961_v24  ;;  %4293 = vmatpush3.msra.mxu1 %v4936_v19 }
 0x830   :  { %4294 = vmatprep.subr.mxu1 %v4801_v9  ;;  %4298 = vmatprep.mubr.msk.f32.mxu1 %vm4802_vm2, %v4801_v9 }
 0x831   :  { %4295 = vmatpush3.msra.mxu1 %v4966_v25  ;;  %4301 = vmatprep.subr.mxu0 %v4801_v9 }
 0x832   :  { %4296 = vmatprep.subr.mxu1 %v4801_v9 }
 0x833   :  { %4297 = vmatpush3.msra.mxu1 %v4975_v26 }
 0x834   :  { %4312 = vmatprep.subr.mxu1 %v4801_v9 }
 0x8e8   :  { %v989_v17 = vpop.f32.mrf.mxu0 }
 0x8e9   :  { %v990_v20 = vadd.f32 %v989_v17, %v5019_v37 }
 0x8ea   :  { %v4267_v21 = vpop.f32.mrf.mxu0 }
 0x8eb   :  { %4645 = vtanh.f32 %v990_v20  ;;  %v1068_v34 = vmul.f32 0.5, %v990_v20 }
 0x8ec   :  { %v1064_v22 = vpop.f32.mrf.mxu1 }
 0x8ed   :  { %v1065_v23 = vadd.f32 %v1064_v22, %v5021_v38 }
 0x8ee   :  { %v4278_v27 = vpop.f32.mrf.mxu1 }
 0x8ef   :  { %4647 = vtanh.f32 %v1065_v23  ;;  %v1090_v35 = vmul.f32 0.5, %v1065_v23 }
 0x8f0   :  { %4649 = vtanh.f32 %v1068_v34 }
 0x8f1   :  { %4651 = vtanh.f32 %v1090_v35 }
 0x8f8   :  { %v4646_v28 = vpop.eup %4645 }
 0x8f9   :  { %1075 = vrot.lane.b32.xlu0 %v4646_v28, %s4803_s3 }
 0x8fc   :  { %v4648_v33 = vpop.eup %4647 }
 0x8fd   :  { %1097 = vrot.lane.b32.xlu1 %v4648_v33, %s4803_s3  ;;  %v4650_v36 = vpop.eup %4649 }
 0x8fe   :  { %v1070_v39 = vmul.f32 0.5, %v4650_v36  ;;  %v4652_v37 = vpop.eup %4651 }
 0x8ff   :  { %v1092_v40 = vmul.f32 0.5, %v4652_v37 }
 0x900   :  { %v1071_v43 = vadd.f32 0.5, %v1070_v39 }
 0x901   :  { %v1093_v38 = vadd.f32 0.5, %v1092_v40 }
 0x902   :  { %v1073_v56 = vmul.f32 %v1071_v43, %v5138_v2 }
 0x903   :  { %v1095_v60 = vmul.f32 %v1093_v38, %v5142_v5 }
 0x96b   :  { %v1076_v48 = vpop.permute.xlu0 %1075 }
 0x96c   :  { %v1078_v51 = vmul.f32 %v1076_v48, %v1071_v43 }
 0x96e   :  { %1080 = vrot.lane.b32.xlu0 %v1078_v51, %s4803_s3 }
 0x96f   :  { %v1098_v52 = vpop.permute.xlu1 %1097 }
 0x970   :  { %v1100_v55 = vmul.f32 %v1098_v52, %v1093_v38 }
 0x972   :  { %1102 = vrot.lane.b32.xlu1 %v1100_v55, %s4803_s3 }
 0x9e0   :  { %v1081_v41 = vpop.permute.xlu0 %1080 }
 0x9e1   :  { %v5184_v57 = vadd.f32 %v1081_v41, %v1073_v56 }
 0x9e3   :  { %4653 = vtanh.f32 %v5184_v57 }
 0x9e4   :  { %v1103_v61 = vpop.permute.xlu1 %1102 }
 0x9e5   :  { %v5188_v62 = vadd.f32 %v1103_v61, %v1095_v60 }
 0x9e7   :  { %4655 = vtanh.f32 %v5188_v62 }
 0x9f0   :  { %v4654_v42 = vpop.eup %4653 }
 0x9f1   :  { %1086 = vrot.lane.b32.xlu0 %v4654_v42, %s4803_s3 }
 0x9f4   :  { %v4656_v63 = vpop.eup %4655 }
 0x9f5   :  { %1108 = vrot.lane.b32.xlu1 %v4656_v63, %s4803_s3 }
 0xa63   :  { %v1087_v0 = vpop.permute.xlu0 %1086 }
 0xa64   :  { %v1089_v1 = vmul.f32 %v1087_v0, %v1071_v43 }
 0xa66   :  { %1113 = vrot.lane.b32.xlu0 %v1089_v1, %s4804_s19 }
 0xa67   :  { %v1109_v31 = vpop.permute.xlu1 %1108 }
 0xa68   :  { %v1111_v2 = vmul.f32 %v1109_v31, %v1093_v38 }
 0xa6a   :  { %1188 = vrot.lane.b32.xlu1 %v1111_v2, %s4804_s19 }
 0xad8   :  { %v5195_v3 = vpop.permute.xlu0 %1113 }
 0xad9   :  { %4288 = vmatmul.mubr.msk.f32.vlgmr.msra.gmra.mxu0 %vm342_vm3, %v5195_v3 }
 0xada   :  { %4302 = vmatpush3.msra.mxu0 %v4881_v7  ;;  %4309 = vmatprep.mubr.msk.f32.mxu0 %vm4802_vm2, %v4801_v9 }
 0xadb   :  { %4303 = vmatprep.subr.mxu0 %v4801_v9 }
 0xadc   :  { %v5203_v4 = vpop.permute.xlu1 %1188  ;;  %4304 = vmatpush3.msra.mxu0 %v4901_v12 }
 0xadd   :  { %4299 = vmatmul.mubr.msk.f32.vlgmr.msra.gmra.mxu1 %vm342_vm3, %v5203_v4  ;;  %4305 = vmatprep.subr.mxu0 %v4801_v9 }
 0xade   :  { %4306 = vmatpush3.msra.mxu0 %v4931_v18  ;;  %4313 = vmatpush3.msra.mxu1 %v4906_v13 }
 0xadf   :  { %4307 = vmatprep.subr.mxu0 %v4801_v9  ;;  %4314 = vmatprep.subr.mxu1 %v4801_v9 }
 0xae0   :  { %4308 = vmatpush3.msra.mxu0 %v4961_v24  ;;  %4315 = vmatpush3.msra.mxu1 %v4936_v19 }
 0xae1   :  { %4316 = vmatprep.subr.mxu1 %v4801_v9  ;;  %4320 = vmatprep.mubr.msk.f32.mxu1 %vm4802_vm2, %v4801_v9 }
 0xae2   :  { %4317 = vmatpush3.msra.mxu1 %v4966_v25  ;;  %4323 = vmatprep.subr.mxu0 %v4801_v9 }
 0xae3   :  { %4318 = vmatprep.subr.mxu1 %v4801_v9 }
 0xae4   :  { %4319 = vmatpush3.msra.mxu1 %v4975_v26 }
 0xae5   :  { %4334 = vmatprep.subr.mxu1 %v4801_v9 }
 0xb99   :  { %v1183_v5 = vpop.f32.mrf.mxu0 }
 0xb9a   :  { %v1184_v32 = vadd.f32 %v1183_v5, %v5031_v49 }
 0xb9b   :  { %v4289_v6 = vpop.f32.mrf.mxu0 }
 0xb9c   :  { %4657 = vtanh.f32 %v1184_v32  ;;  %v1262_v20 = vmul.f32 0.5, %v1184_v32 }
 0xb9d   :  { %v1258_v8 = vpop.f32.mrf.mxu1 }
 0xb9e   :  { %v1259_v10 = vadd.f32 %v1258_v8, %v5033_v50 }
 0xb9f   :  { %v4300_v11 = vpop.f32.mrf.mxu1 }
 0xba0   :  { %4659 = vtanh.f32 %v1259_v10  ;;  %v1284_v21 = vmul.f32 0.5, %v1259_v10 }
 0xba1   :  { %4661 = vtanh.f32 %v1262_v20 }
 0xba2   :  { %4663 = vtanh.f32 %v1284_v21 }
 0xba9   :  { %v4658_v14 = vpop.eup %4657 }
 0xbaa   :  { %1269 = vrot.lane.b32.xlu0 %v4658_v14, %s4803_s3 }
 0xbad   :  { %v4660_v17 = vpop.eup %4659 }
 0xbae   :  { %1291 = vrot.lane.b32.xlu1 %v4660_v17, %s4803_s3  ;;  %v4662_v22 = vpop.eup %4661 }
 0xbaf   :  { %v1264_v23 = vmul.f32 0.5, %v4662_v22  ;;  %v4664_v49 = vpop.eup %4663 }
 0xbb0   :  { %v1286_v28 = vmul.f32 0.5, %v4664_v49 }
 0xbb1   :  { %v1265_v27 = vadd.f32 0.5, %v1264_v23 }
 0xbb2   :  { %v1287_v50 = vadd.f32 0.5, %v1286_v28 }
 0xbb3   :  { %v1267_v39 = vmul.f32 %v1265_v27, %v5184_v57 }
 0xbb4   :  { %v1289_v43 = vmul.f32 %v1287_v50, %v5188_v62 }
 0xc1c   :  { %v1270_v33 = vpop.permute.xlu0 %1269 }
 0xc1d   :  { %v1272_v34 = vmul.f32 %v1270_v33, %v1265_v27 }
 0xc1f   :  { %1274 = vrot.lane.b32.xlu0 %v1272_v34, %s4803_s3 }
 0xc20   :  { %v1292_v35 = vpop.permute.xlu1 %1291 }
 0xc21   :  { %v1294_v36 = vmul.f32 %v1292_v35, %v1287_v50 }
 0xc23   :  { %1296 = vrot.lane.b32.xlu1 %v1294_v36, %s4803_s3 }
 0xc91   :  { %v1275_v37 = vpop.permute.xlu0 %1274 }
 0xc92   :  { %v5230_v40 = vadd.f32 %v1275_v37, %v1267_v39 }
 0xc94   :  { %4665 = vtanh.f32 %v5230_v40 }
 0xc95   :  { %v1297_v48 = vpop.permute.xlu1 %1296 }
 0xc96   :  { %v5234_v51 = vadd.f32 %v1297_v48, %v1289_v43 }
 0xc98   :  { %4667 = vtanh.f32 %v5234_v51 }
 0xca1   :  { %v4666_v38 = vpop.eup %4665 }
 0xca2   :  { %1280 = vrot.lane.b32.xlu0 %v4666_v38, %s4803_s3 }
 0xca5   :  { %v4668_v52 = vpop.eup %4667 }
 0xca6   :  { %1302 = vrot.lane.b32.xlu1 %v4668_v52, %s4803_s3 }
 0xd14   :  { %v1281_v55 = vpop.permute.xlu0 %1280 }
 0xd15   :  { %v1283_v56 = vmul.f32 %v1281_v55, %v1265_v27 }
 0xd17   :  { %1307 = vrot.lane.b32.xlu0 %v1283_v56, %s4804_s19 }
 0xd18   :  { %v1303_v41 = vpop.permute.xlu1 %1302 }
 0xd19   :  { %v1305_v57 = vmul.f32 %v1303_v41, %v1287_v50 }
 0xd1b   :  { %1382 = vrot.lane.b32.xlu1 %v1305_v57, %s4804_s19 }
 0xd89   :  { %v5241_v60 = vpop.permute.xlu0 %1307 }
 0xd8a   :  { %4310 = vmatmul.mubr.msk.f32.vlgmr.msra.gmra.mxu0 %vm342_vm3, %v5241_v60 }
 0xd8b   :  { %4324 = vmatpush3.msra.mxu0 %v4881_v7  ;;  %4331 = vmatprep.mubr.msk.f32.mxu0 %vm4802_vm2, %v4801_v9 }
 0xd8c   :  { %4325 = vmatprep.subr.mxu0 %v4801_v9 }
 0xd8d   :  { %v5249_v61 = vpop.permute.xlu1 %1382  ;;  %4326 = vmatpush3.msra.mxu0 %v4901_v12 }
 0xd8e   :  { %4321 = vmatmul.mubr.msk.f32.vlgmr.msra.gmra.mxu1 %vm342_vm3, %v5249_v61  ;;  %4327 = vmatprep.subr.mxu0 %v4801_v9 }
 0xd8f   :  { %4328 = vmatpush3.msra.mxu0 %v4931_v18  ;;  %4335 = vmatpush3.msra.mxu1 %v4906_v13 }
 0xd90   :  { %4329 = vmatprep.subr.mxu0 %v4801_v9  ;;  %4336 = vmatprep.subr.mxu1 %v4801_v9 }
 0xd91   :  { %4330 = vmatpush3.msra.mxu0 %v4961_v24  ;;  %4337 = vmatpush3.msra.mxu1 %v4936_v19 }
 0xd92   :  { %4338 = vmatprep.subr.mxu1 %v4801_v9  ;;  %4342 = vmatprep.mubr.msk.f32.mxu1 %vm4802_vm2, %v4801_v9 }
 0xd93   :  { %4339 = vmatpush3.msra.mxu1 %v4966_v25  ;;  %4345 = vmatprep.subr.mxu0 %v4801_v9 }
 0xd94   :  { %4340 = vmatprep.subr.mxu1 %v4801_v9 }
 0xd95   :  { %4341 = vmatpush3.msra.mxu1 %v4975_v26 }
 0xd96   :  { %4356 = vmatprep.subr.mxu1 %v4801_v9 }
 0xe4a   :  { %v1377_v62 = vpop.f32.mrf.mxu0 }
 0xe4b   :  { %v1378_v42 = vadd.f32 %v1377_v62, %v5027_v45 }
 0xe4c   :  { %v4311_v63 = vpop.f32.mrf.mxu0 }
 0xe4d   :  { %4669 = vtanh.f32 %v1378_v42  ;;  %v1456_v32 = vmul.f32 0.5, %v1378_v42 }
 0xe4e   :  { %v1452_v0 = vpop.f32.mrf.mxu1 }
 0xe4f   :  { %v1453_v1 = vadd.f32 %v1452_v0, %v5029_v46 }
 0xe50   :  { %v4322_v31 = vpop.f32.mrf.mxu1 }
 0xe51   :  { %4671 = vtanh.f32 %v1453_v1  ;;  %v1478_v6 = vmul.f32 0.5, %v1453_v1 }
 0xe52   :  { %4673 = vtanh.f32 %v1456_v32 }
 0xe53   :  { %4675 = vtanh.f32 %v1478_v6  ;;  %v1891_v6 = vld [vmem:[%s5841_s4 + $0x18] sm:$0xff] }
 0xe5a   :  { %v4670_v2 = vpop.eup %4669 }
 0xe5b   :  { %1463 = vrot.lane.b32.xlu0 %v4670_v2, %s4803_s3 }
 0xe5e   :  { %v4672_v5 = vpop.eup %4671 }
 0xe5f   :  { %1485 = vrot.lane.b32.xlu1 %v4672_v5, %s4803_s3  ;;  %v4674_v8 = vpop.eup %4673 }
 0xe60   :  { %v1458_v10 = vmul.f32 0.5, %v4674_v8  ;;  %v4676_v45 = vpop.eup %4675 }
 0xe61   :  { %v1480_v14 = vmul.f32 0.5, %v4676_v45  ;;  %v3915_v45 = vld [vmem:[%s5841_s4 + $0x38] sm:$0xff] }
 0xe62   :  { %v1459_v11 = vadd.f32 0.5, %v1458_v10 }
 0xe63   :  { %v1481_v46 = vadd.f32 0.5, %v1480_v14 }
 0xe64   :  { %v1461_v23 = vmul.f32 %v1459_v11, %v5230_v40 }
 0xe65   :  { %v1483_v28 = vmul.f32 %v1481_v46, %v5234_v51 }
 0xecd   :  { %v1464_v17 = vpop.permute.xlu0 %1463 }
 0xece   :  { %v1466_v20 = vmul.f32 %v1464_v17, %v1459_v11 }
 0xed0   :  { %1468 = vrot.lane.b32.xlu0 %v1466_v20, %s4803_s3 }
 0xed1   :  { %v1486_v21 = vpop.permute.xlu1 %1485 }
 0xed2   :  { %v1488_v22 = vmul.f32 %v1486_v21, %v1481_v46  ;;  %v1890_v21 = vld [vmem:[%s5841_s4 + $0x10] sm:$0xff] }
 0xed4   :  { %1490 = vrot.lane.b32.xlu1 %v1488_v22, %s4803_s3  ;;  %v1889_v22 = vld [vmem:[%s5841_s4 + $0x8] sm:$0xff] }
 0xf42   :  { %v1469_v49 = vpop.permute.xlu0 %1468 }
 0xf43   :  { %v5276_v27 = vadd.f32 %v1469_v49, %v1461_v23  ;;  %v1888_v49 = vld [vmem:[%s5841_s4] sm:$0xff] }
 0xf45   :  { %4677 = vtanh.f32 %v5276_v27 }
 0xf46   :  { %v1491_v33 = vpop.permute.xlu1 %1490 }
 0xf47   :  { %v5280_v34 = vadd.f32 %v1491_v33, %v1483_v28  ;;  %v3912_v28 = vld [vmem:[%s5841_s4 + $0x20] sm:$0xff] }
 0xf49   :  { %4679 = vtanh.f32 %v5280_v34 }
 0xf52   :  { %v4678_v50 = vpop.eup %4677 }
 0xf53   :  { %1474 = vrot.lane.b32.xlu0 %v4678_v50, %s4803_s3 }
 0xf56   :  { %v4680_v35 = vpop.eup %4679 }
 0xf57   :  { %1496 = vrot.lane.b32.xlu1 %v4680_v35, %s4803_s3 }
 0xfc5   :  { %v1475_v36 = vpop.permute.xlu0 %1474 }
 0xfc6   :  { %v1477_v39 = vmul.f32 %v1475_v36, %v1459_v11 }
 0xfc8   :  { %1501 = vrot.lane.b32.xlu0 %v1477_v39, %s4804_s19 }
 0xfc9   :  { %v1497_v37 = vpop.permute.xlu1 %1496 }
 0xfca   :  { %v1499_v40 = vmul.f32 %v1497_v37, %v1481_v46 }
 0xfcc   :  { %1576 = vrot.lane.b32.xlu1 %v1499_v40, %s4804_s19 }
0x103a   :  { %v5287_v43 = vpop.permute.xlu0 %1501 }
0x103b   :  { %4332 = vmatmul.mubr.msk.f32.vlgmr.msra.gmra.mxu0 %vm342_vm3, %v5287_v43 }
0x103c   :  { %4346 = vmatpush3.msra.mxu0 %v4881_v7  ;;  %4353 = vmatprep.mubr.msk.f32.mxu0 %vm4802_vm2, %v4801_v9 }
0x103d   :  { %4347 = vmatprep.subr.mxu0 %v4801_v9 }
0x103e   :  { %v5295_v48 = vpop.permute.xlu1 %1576  ;;  %4348 = vmatpush3.msra.mxu0 %v4901_v12 }
0x103f   :  { %4343 = vmatmul.mubr.msk.f32.vlgmr.msra.gmra.mxu1 %vm342_vm3, %v5295_v48  ;;  %4349 = vmatprep.subr.mxu0 %v4801_v9 }
0x1040   :  { %4350 = vmatpush3.msra.mxu0 %v4931_v18  ;;  %4357 = vmatpush3.msra.mxu1 %v4906_v13 }
0x1041   :  { %4351 = vmatprep.subr.mxu0 %v4801_v9  ;;  %4358 = vmatprep.subr.mxu1 %v4801_v9 }
0x1042   :  { %4352 = vmatpush3.msra.mxu0 %v4961_v24  ;;  %4359 = vmatpush3.msra.mxu1 %v4936_v19 }
0x1043   :  { %4360 = vmatprep.subr.mxu1 %v4801_v9  ;;  %4364 = vmatprep.mubr.msk.f32.mxu1 %vm4802_vm2, %v4801_v9 }
0x1044   :  { %4361 = vmatpush3.msra.mxu1 %v4966_v25  ;;  %4367 = vmatprep.subr.mxu0 %v1891_v6 }
0x1045   :  { %4362 = vmatprep.subr.mxu1 %v4801_v9 }
0x1046   :  { %4363 = vmatpush3.msra.mxu1 %v4975_v26 }
0x1047   :  { %4387 = vmatprep.subr.mxu1 %v3915_v45 }
0x10fb   :  { %v1571_v7 = vpop.f32.mrf.mxu0 }
0x10fc   :  { %v1572_v12 = vadd.f32 %v1571_v7, %v5039_v58 }
0x10fd   :  { %v4333_v13 = vpop.f32.mrf.mxu0 }
0x10fe   :  { %4681 = vtanh.f32 %v1572_v12  ;;  %v1650_v25 = vmul.f32 0.5, %v1572_v12 }
0x10ff   :  { %v1646_v18 = vpop.f32.mrf.mxu1 }
0x1100   :  { %v1647_v24 = vadd.f32 %v1646_v18, %v5041_v59 }
0x1101   :  { %v4344_v19 = vpop.f32.mrf.mxu1 }
0x1102   :  { %4683 = vtanh.f32 %v1647_v24  ;;  %v1672_v52 = vmul.f32 0.5, %v1647_v24  ;;  %v5396_v19 = vld [vmem:[%s5842_s5 + $0x18] sm:$0xff] }
0x1103   :  { %4685 = vtanh.f32 %v1650_v25  ;;  %v5413_v25 = vld [vmem:[%s5842_s5 + $0x30] sm:$0xff] }
0x1104   :  { %4687 = vtanh.f32 %v1672_v52 }
0x110b   :  { %v4682_v51 = vpop.eup %4681 }
0x110c   :  { %1657 = vrot.lane.b32.xlu0 %v4682_v51, %s4803_s3  ;;  %v5401_v51 = vld [vmem:[%s5842_s5 + $0x38] sm:$0xff] }
0x110f   :  { %v4684_v38 = vpop.eup %4683 }
0x1110   :  { %1679 = vrot.lane.b32.xlu1 %v4684_v38, %s4803_s3  ;;  %v4686_v26 = vpop.eup %4685  ;;  %v5406_v38 = vld [vmem:[%s5842_s5 + $0x10] sm:$0xff] }
0x1111   :  { %v1652_v55 = vmul.f32 0.5, %v4686_v26  ;;  %v4688_v58 = vpop.eup %4687 }
0x1112   :  { %v1674_v41 = vmul.f32 0.5, %v4688_v58  ;;  %v5431_v58 = vld [vmem:[%s5842_s5 + $0x28] sm:$0xff] }
0x1113   :  { %v1653_v56 = vadd.f32 0.5, %v1652_v55  ;;  %v5426_v55 = vld [vmem:[%s5842_s5 + $0x8] sm:$0xff] }
0x1114   :  { %v1675_v59 = vadd.f32 0.5, %v1674_v41  ;;  %v5446_v41 = vld [vmem:[%s5842_s5 + $0x20] sm:$0xff] }
0x1115   :  { %v1655_v0 = vmul.f32 %v1653_v56, %v5276_v27  ;;  %v3914_v27 = vld [vmem:[%s5841_s4 + $0x30] sm:$0xff] }
0x1116   :  { %v1677_v2 = vmul.f32 %v1675_v59, %v5280_v34 }
0x117e   :  { %v1658_v57 = vpop.permute.xlu0 %1657 }
0x117f   :  { %v1660_v62 = vmul.f32 %v1658_v57, %v1653_v56 }
0x1181   :  { %1662 = vrot.lane.b32.xlu0 %v1660_v62, %s4803_s3 }
0x1182   :  { %v1680_v42 = vpop.permute.xlu1 %1679 }
0x1183   :  { %v1682_v63 = vmul.f32 %v1680_v42, %v1675_v59 }
0x1185   :  { %1684 = vrot.lane.b32.xlu1 %v1682_v63, %s4803_s3 }
0x11f3   :  { %v1663_v1 = vpop.permute.xlu0 %1662 }
0x11f4   :  { %v5320_v31 = vadd.f32 %v1663_v1, %v1655_v0 }
0x11f6   :  { %4689 = vtanh.f32 %v5320_v31 }
0x11f7   :  { %v1685_v5 = vpop.permute.xlu1 %1684 }
0x11f8   :  { %v5324_v32 = vadd.f32 %v1685_v5, %v1677_v2 }
0x11fa   :  { %4691 = vtanh.f32 %v5324_v32 }
0x1203   :  { %v4690_v8 = vpop.eup %4689 }
0x1204   :  { %1668 = vrot.lane.b32.xlu0 %v4690_v8, %s4803_s3 }
0x1207   :  { %v4692_v10 = vpop.eup %4691 }
0x1208   :  { %1690 = vrot.lane.b32.xlu1 %v4692_v10, %s4803_s3 }
0x1276   :  { %v1669_v11 = vpop.permute.xlu0 %1668 }
0x1277   :  { %v1671_v14 = vmul.f32 %v1669_v11, %v1653_v56  ;;  %v5440_v56 = vld [vmem:[%s5842_s5] sm:$0xff] }
0x1279   :  { %1695 = vrot.lane.b32.xlu0 %v1671_v14, %s4804_s19 }
0x127a   :  { %v1691_v17 = vpop.permute.xlu1 %1690 }
0x127b   :  { %v1693_v20 = vmul.f32 %v1691_v17, %v1675_v59 }
0x127d   :  { %1770 = vrot.lane.b32.xlu1 %v1693_v20, %s4804_s19  ;;  %v5504_v20 = vld [vmem:[%s5843_s6] ss:$0 sm:$0xff] }
0x12eb   :  { %v1696_v46 = vpop.permute.xlu0 %1695 }
0x12ec   :  { %4354 = vmatmul.mubr.msk.f32.vlgmr.msra.gmra.mxu0 %vm342_vm3, %v1696_v46 }
0x12ed   :  { %4368 = vmatpush3.msra.mxu0 %v1891_v6  ;;  %4375 = vmatprep.mubr.msk.f32.mxu0 %vm342_vm3, %v5057_v44  ;;  %v3913_v44 = vld [vmem:[%s5841_s4 + $0x28] sm:$0xff] }
0x12ee   :  { %4369 = vmatprep.subr.mxu0 %v1890_v21 }
0x12ef   :  { %4370 = vmatpush3.msra.mxu0 %v1890_v21  ;;  %v1771_v23 = vpop.permute.xlu1 %1770 }
0x12f0   :  { %4371 = vmatprep.subr.mxu0 %v1889_v22  ;;  %4365 = vmatmul.mubr.msk.f32.vlgmr.msra.gmra.mxu1 %vm342_vm3, %v1771_v23 }
0x12f1   :  { %4372 = vmatpush3.msra.mxu0 %v1889_v22  ;;  %4388 = vmatpush3.msra.mxu1 %v3915_v45 }
0x12f2   :  { %4373 = vmatprep.subr.mxu0 %v1888_v49  ;;  %4389 = vmatprep.subr.mxu1 %v3914_v27 }
0x12f3   :  { %4395 = vmatprep.mubr.msk.f32.mxu1 %vm342_vm3, %v5065_v47  ;;  %4374 = vmatpush3.msra.mxu0 %v1888_v49 }
0x12f4   :  { %4390 = vmatpush3.msra.mxu1 %v3914_v27  ;;  %4376 = vmatmul.mubr.msk.f32.vlgmr.msra.gmra.mxu0 %vm342_vm3, %v5103_v29 }
0x12f5   :  { %4391 = vmatprep.subr.mxu1 %v3913_v44  ;;  %4378 = vmatprep.mubr.msk.f32.mxu0 %vm342_vm3, %v5149_v15 }
0x12f6   :  { %4392 = vmatpush3.msra.mxu1 %v3913_v44  ;;  %4407 = vmatprep.subr.mxu0 %v4801_v9  ;;  %v5516_v44 = vld [vmem:[%s5843_s6 + $0x1] ss:$0 sm:$0xff] }
0x12f7   :  { %4393 = vmatprep.subr.mxu1 %v3912_v28  ;;  %4408 = vmatpush3.msra.mxu0 %v5396_v19 }
0x12f8   :  { %4394 = vmatpush3.msra.mxu1 %v3912_v28  ;;  %4379 = vmatmul.mubr.msk.f32.gmra.mxu0 %vm342_vm3, %v5195_v3 }
0x12f9   :  { %4396 = vmatmul.mubr.msk.f32.vlgmr.msra.gmra.mxu1 %vm342_vm3, %v5111_v30  ;;  %4381 = vmatprep.mubr.msk.f32.mxu0 %vm342_vm3, %v5241_v60 }
0x12fa   :  { %4398 = vmatprep.mubr.msk.f32.mxu1 %vm342_vm3, %v5157_v16  ;;  %4418 = vmatprep.subr.mxu1 %v4801_v9 }
0x12fb   :  { %4419 = vmatpush3.msra.mxu1 %v5401_v51  ;;  %4409 = vmatprep.subr.mxu0 %v4801_v9 }
0x12fc   :  { %4382 = vmatmul.mubr.msk.f32.gmra.mxu0 %vm342_vm3, %v5287_v43  ;;  %4420 = vmatprep.subr.mxu1 %v4801_v9 }
0x12fd   :  { %4399 = vmatmul.mubr.msk.f32.gmra.mxu1 %vm342_vm3, %v5203_v4  ;;  %4384 = vmatprep.mubr.msk.f32.mxu0 %vm342_vm3, %v1696_v46 }
0x12fe   :  { %4401 = vmatprep.mubr.msk.f32.mxu1 %vm342_vm3, %v5249_v61  ;;  %4410 = vmatpush3.msra.mxu0 %v5406_v38 }
0x12ff   :  { %4421 = vmatpush3.msra.mxu1 %v5413_v25  ;;  %4411 = vmatprep.subr.mxu0 %v4801_v9 }
0x1300   :  { %4422 = vmatprep.subr.mxu1 %v4801_v9  ;;  %4412 = vmatpush3.msra.mxu0 %v5426_v55 }
0x1301   :  { %4402 = vmatmul.mubr.msk.f32.gmra.mxu1 %vm342_vm3, %v5295_v48  ;;  %4413 = vmatprep.subr.mxu0 %v4801_v9 }
0x1302   :  { %4404 = vmatprep.mubr.msk.f32.mxu1 %vm342_vm3, %v1771_v23  ;;  %4423 = vmatpush3.msra.mxu1 %v5431_v58 }
0x1303   :  { %4424 = vmatprep.subr.mxu1 %v4801_v9  ;;  %4414 = vmatpush3.msra.mxu0 %v5440_v56 }
0x1304   :  { %4425 = vmatpush3.msra.mxu1 %v5446_v41  ;;  %4429 = vmatprep.subr.mxu0 %v4801_v9 }
0x1305   :  { %4440 = vmatprep.subr.mxu1 %v4801_v9 }
0x13ac   :  { %v1765_v47 = vpop.f32.mrf.mxu0 }
0x13ad   :  { %v1766_v29 = vadd.f32 %v1765_v47, %v5035_v53 }
0x13ae   :  { %v4355_v30 = vpop.f32.mrf.mxu0 }
0x13af   :  { %4693 = vtanh.f32 %v1766_v29  ;;  %v1844_v61 = vmul.f32 0.5, %v1766_v29 }
0x13b0   :  { %v1840_v15 = vpop.f32.mrf.mxu1 }
0x13b1   :  { %v1841_v16 = vadd.f32 %v1840_v15, %v5037_v54 }
0x13b2   :  { %v4366_v3 = vpop.f32.mrf.mxu1 }
0x13b3   :  { %4695 = vtanh.f32 %v1841_v16  ;;  %v1866_v33 = vmul.f32 0.5, %v1841_v16 }
0x13b4   :  { %4697 = vtanh.f32 %v1844_v61  ;;  %v5481_v1 = vpop.f32.mrf.mxu0 }
0x13b5   :  { %4699 = vtanh.f32 %v1866_v33 }
0x13b9   :  { %v5483_v2 = vpop.f32.mrf.mxu1 }
0x13bc   :  { %v4694_v4 = vpop.eup %4693 }
0x13bd   :  { %1851 = vrot.lane.b32.xlu0 %v4694_v4, %s4803_s3 }
0x13c0   :  { %v4696_v60 = vpop.eup %4695 }
0x13c1   :  { %1873 = vrot.lane.b32.xlu1 %v4696_v60, %s4803_s3  ;;  %v4698_v34 = vpop.eup %4697 }
0x13c2   :  { %v1846_v50 = vmul.f32 0.5, %v4698_v34  ;;  %v4700_v53 = vpop.eup %4699 }
0x13c3   :  { %v1868_v36 = vmul.f32 0.5, %v4700_v53 }
0x13c4   :  { %v1847_v35 = vadd.f32 0.5, %v1846_v50 }
0x13c5   :  { %v1869_v54 = vadd.f32 0.5, %v1868_v36 }
0x13c6   :  { %v1849_v48 = vmul.f32 %v1847_v35, %v5320_v31  ;;  %v1970_v31 = vpop.f32.mrf.mxu0 }
0x13c7   :  { %v1871_v13 = vmul.f32 %v1869_v54, %v5324_v32  ;;  %v2093_v32 = vpop.f32.mrf.mxu1  ;;  %v1971_v22 = vadd.f32 %v5504_v20, %v1970_v31 }
0x13c8   :  { %v5485_v5 = vpop.f32.mrf.mxu0  ;;  %v2094_v29 = vadd.f32 %v5516_v44, %v2093_v32 }
0x13c9   :  { %v5489_v8 = vpop.f32.mrf.mxu1 }
0x13ca   :  { %v5487_v6 = vpop.f32.mrf.mxu0 }
0x13cb   :  { %v5493_v45 = vpop.f32.mrf.mxu1 }
0x13cc   :  { %v5491_v10 = vpop.f32.mrf.mxu0 }
0x13cd   :  { %v5497_v14 = vpop.f32.mrf.mxu1 }
0x13ce   :  { %v5495_v11 = vpop.f32.mrf.mxu0 }
0x13cf   :  { %v5506_v46 = vpop.f32.mrf.mxu1 }
0x142f   :  { %v1852_v39 = vpop.permute.xlu0 %1851 }
0x1430   :  { %v1854_v37 = vmul.f32 %v1852_v39, %v1847_v35 }
0x1432   :  { %1856 = vrot.lane.b32.xlu0 %v1854_v37, %s4803_s3 }
0x1433   :  { %v1874_v40 = vpop.permute.xlu1 %1873 }
0x1434   :  { %v1876_v43 = vmul.f32 %v1874_v40, %v1869_v54 }
0x1436   :  { %1878 = vrot.lane.b32.xlu1 %v1876_v43, %s4803_s3 }
0x14a4   :  { %v1857_v7 = vpop.permute.xlu0 %1856 }
0x14a5   :  { %v1859_v12 = vadd.f32 %v1857_v7, %v1849_v48 }
0x14a7   :  { %4701 = vtanh.f32 %v1859_v12 }
0x14a8   :  { %v1879_v18 = vpop.permute.xlu1 %1878 }
0x14a9   :  { %v1881_v24 = vadd.f32 %v1879_v18, %v1871_v13 }
0x14ab   :  { %4703 = vtanh.f32 %v1881_v24 }
0x14b4   :  { %v4702_v52 = vpop.eup %4701 }
0x14b5   :  { %1862 = vrot.lane.b32.xlu0 %v4702_v52, %s4803_s3 }
0x14b8   :  { %v4704_v26 = vpop.eup %4703 }
0x14b9   :  { %1884 = vrot.lane.b32.xlu1 %v4704_v26, %s4803_s3 }
0x1527   :  { %v1863_v57 = vpop.permute.xlu0 %1862 }
0x1528   :  { %v1865_v62 = vmul.f32 %v1863_v57, %v1847_v35 }
0x152a   :  { %1900 = vrot.lane.b32.xlu0 %v1865_v62, %s4804_s19 }
0x152b   :  { %v1885_v59 = vpop.permute.xlu1 %1884 }
0x152c   :  { %v1887_v42 = vmul.f32 %v1885_v59, %v1869_v54 }
0x152e   :  { %2023 = vrot.lane.b32.xlu1 %v1887_v42, %s4804_s19 }
0x159c   :  { %v1901_v63 = vpop.permute.xlu0 %1900 }
0x159d   :  { %4385 = vmatmul.mubr.msk.f32.gmra.mxu0 %vm342_vm3, %v1901_v63 }
0x159e   :  { %4415 = vmatprep.mubr.msk.f32.mxu0 %vm4802_vm2, %v4801_v9 }
0x15a0   :  { %v2024_v0 = vpop.permute.xlu1 %2023 }
0x15a1   :  { %4405 = vmatmul.mubr.msk.f32.gmra.mxu1 %vm342_vm3, %v2024_v0  ;;  %4416 = vmatmul.mubr.f32.vlgmr.msra.gmra.mxu0 %v4801_v9  ;;  %v1976_v0 = vadd.f32 %v5481_v1, %v5504_v20 }
0x15a2   :  { %4426 = vmatprep.mubr.msk.f32.mxu1 %vm4802_vm2, %v4801_v9  ;;  %4430 = vmatpush3.msra.mxu0 %v5396_v19 }
0x15a3   :  { %4431 = vmatprep.subr.mxu0 %v4801_v9  ;;  %4437 = vmatprep.mubr.msk.f32.mxu0 %vm4802_vm2, %v4801_v9 }
0x15a4   :  { %4432 = vmatpush3.msra.mxu0 %v5406_v38 }
0x15a5   :  { %4427 = vmatmul.mubr.f32.vlgmr.msra.gmra.mxu1 %v4801_v9  ;;  %4433 = vmatprep.subr.mxu0 %v4801_v9 }
0x15a6   :  { %4434 = vmatpush3.msra.mxu0 %v5426_v55  ;;  %4441 = vmatpush3.msra.mxu1 %v5401_v51 }
0x15a7   :  { %4435 = vmatprep.subr.mxu0 %v4801_v9  ;;  %4442 = vmatprep.subr.mxu1 %v4801_v9 }
0x15a8   :  { %4436 = vmatpush3.msra.mxu0 %v5440_v56  ;;  %4443 = vmatpush3.msra.mxu1 %v5413_v25 }
0x15a9   :  { %4444 = vmatprep.subr.mxu1 %v4801_v9  ;;  %4448 = vmatprep.mubr.msk.f32.mxu1 %vm4802_vm2, %v4801_v9 }
0x15aa   :  { %4445 = vmatpush3.msra.mxu1 %v5431_v58  ;;  %4451 = vmatprep.subr.mxu0 %v4801_v9 }
0x15ab   :  { %4446 = vmatprep.subr.mxu1 %v4801_v9 }
0x15ac   :  { %4447 = vmatpush3.msra.mxu1 %v5446_v41 }
0x15ad   :  { %4462 = vmatprep.subr.mxu1 %v4801_v9 }
0x165d   :  { %v5499_v17 = vpop.f32.mrf.mxu0 }
0x165f   :  { %v5508_v21 = vpop.f32.mrf.mxu0 }
0x1661   :  { %v5511_v23 = vpop.f32.mrf.mxu1  ;;  %v2207_v49 = vpop.f32.mrf.mxu0 }
0x1662   :  { %v2208_v27 = vadd.f32 %v2207_v49, %v1971_v22  ;;  %v2099_v49 = vadd.f32 %v5483_v2, %v5516_v44 }
0x1663   :  { %v5518_v28 = vpop.f32.mrf.mxu1  ;;  %v4417_v47 = vpop.f32.mrf.mxu0 }
0x1664   :  { %4705 = vtanh.f32 %v2208_v27  ;;  %v2281_v60 = vmul.f32 0.5, %v2208_v27 }
0x1665   :  { %v2277_v30 = vpop.f32.mrf.mxu1 }
0x1666   :  { %v2278_v15 = vadd.f32 %v2277_v30, %v2094_v29 }
0x1667   :  { %v4428_v16 = vpop.f32.mrf.mxu1 }
0x1668   :  { %4707 = vtanh.f32 %v2278_v15  ;;  %v2303_v61 = vmul.f32 0.5, %v2278_v15 }
0x1669   :  { %4709 = vtanh.f32 %v2281_v60 }
0x166a   :  { %4711 = vtanh.f32 %v2303_v61 }
0x1671   :  { %v4706_v3 = vpop.eup %4705 }
0x1672   :  { %2288 = vrot.lane.b32.xlu0 %v4706_v3, %s4803_s3 }
0x1675   :  { %v4708_v4 = vpop.eup %4707 }
0x1676   :  { %2310 = vrot.lane.b32.xlu1 %v4708_v4, %s4803_s3  ;;  %v4710_v33 = vpop.eup %4709 }
0x1677   :  { %v2283_v34 = vmul.f32 0.5, %v4710_v33  ;;  %v4712_v50 = vpop.eup %4711 }
0x1678   :  { %v2305_v35 = vmul.f32 0.5, %v4712_v50 }
0x1679   :  { %v2284_v53 = vadd.f32 0.5, %v2283_v34 }
0x167a   :  { %v2306_v37 = vadd.f32 0.5, %v2305_v35 }
0x167b   :  { %v2286_v43 = vmul.f32 0.0, %v2284_v53 }
0x167c   :  { %v2308_v12 = vmul.f32 0.0, %v2306_v37 }
0x16e4   :  { %v2289_v36 = vpop.permute.xlu0 %2288 }
0x16e5   :  { %v2291_v39 = vmul.f32 %v2289_v36, %v2284_v53 }
0x16e7   :  { %2293 = vrot.lane.b32.xlu0 %v2291_v39, %s4803_s3 }
0x16e8   :  { %v2311_v54 = vpop.permute.xlu1 %2310 }
0x16e9   :  { %v2313_v40 = vmul.f32 %v2311_v54, %v2306_v37 }
0x16eb   :  { %2315 = vrot.lane.b32.xlu1 %v2313_v40, %s4803_s3 }
0x1759   :  { %v2294_v48 = vpop.permute.xlu0 %2293 }
0x175a   :  { %v5525_v7 = vadd.f32 %v2294_v48, %v2286_v43 }
0x175c   :  { %4713 = vtanh.f32 %v5525_v7 }
0x175d   :  { %v2316_v13 = vpop.permute.xlu1 %2315 }
0x175e   :  { %v5528_v18 = vadd.f32 %v2316_v13, %v2308_v12 }
0x1760   :  { %4715 = vtanh.f32 %v5528_v18 }
0x1769   :  { %v4714_v24 = vpop.eup %4713 }
0x176a   :  { %2299 = vrot.lane.b32.xlu0 %v4714_v24, %s4803_s3 }
0x176d   :  { %v4716_v52 = vpop.eup %4715 }
0x176e   :  { %2321 = vrot.lane.b32.xlu1 %v4716_v52, %s4803_s3 }
0x17dc   :  { %v2300_v26 = vpop.permute.xlu0 %2299 }
0x17dd   :  { %v2302_v57 = vmul.f32 %v2300_v26, %v2284_v53 }
0x17df   :  { %2326 = vrot.lane.b32.xlu0 %v2302_v57, %s4804_s19  ;;  %v1981_v57 = vadd.f32 %v5504_v20, %v5487_v6 }
0x17e0   :  { %v2322_v62 = vpop.permute.xlu1 %2321 }
0x17e1   :  { %v2324_v59 = vmul.f32 %v2322_v62, %v2306_v37 }
0x17e3   :  { %2401 = vrot.lane.b32.xlu1 %v2324_v59, %s4804_s19 }
0x1851   :  { %v2327_v42 = vpop.permute.xlu0 %2326 }
0x1852   :  { %4438 = vmatmul.mubr.msk.f32.vlgmr.msra.gmra.mxu0 %vm342_vm3, %v2327_v42 }
0x1853   :  { %4452 = vmatpush3.msra.mxu0 %v5396_v19  ;;  %4459 = vmatprep.mubr.msk.f32.mxu0 %vm4802_vm2, %v4801_v9 }
0x1854   :  { %4453 = vmatprep.subr.mxu0 %v4801_v9 }
0x1855   :  { %v2402_v63 = vpop.permute.xlu1 %2401  ;;  %4454 = vmatpush3.msra.mxu0 %v5406_v38 }
0x1856   :  { %4449 = vmatmul.mubr.msk.f32.vlgmr.msra.gmra.mxu1 %vm342_vm3, %v2402_v63  ;;  %4455 = vmatprep.subr.mxu0 %v4801_v9  ;;  %v2104_v63 = vadd.f32 %v5516_v44, %v5493_v45 }
0x1857   :  { %4456 = vmatpush3.msra.mxu0 %v5426_v55  ;;  %4463 = vmatpush3.msra.mxu1 %v5401_v51 }
0x1858   :  { %4457 = vmatprep.subr.mxu0 %v4801_v9  ;;  %4464 = vmatprep.subr.mxu1 %v4801_v9 }
0x1859   :  { %4458 = vmatpush3.msra.mxu0 %v5440_v56  ;;  %4465 = vmatpush3.msra.mxu1 %v5413_v25 }
0x185a   :  { %4466 = vmatprep.subr.mxu1 %v4801_v9  ;;  %4470 = vmatprep.mubr.msk.f32.mxu1 %vm4802_vm2, %v4801_v9 }
0x185b   :  { %4467 = vmatpush3.msra.mxu1 %v5431_v58  ;;  %4473 = vmatprep.subr.mxu0 %v4801_v9 }
0x185c   :  { %4468 = vmatprep.subr.mxu1 %v4801_v9 }
0x185d   :  { %4469 = vmatpush3.msra.mxu1 %v5446_v41 }
0x185e   :  { %4484 = vmatprep.subr.mxu1 %v4801_v9 }
0x1912   :  { %v2396_v31 = vpop.f32.mrf.mxu0 }
0x1913   :  { %v2397_v32 = vadd.f32 %v2396_v31, %v1976_v0 }
0x1914   :  { %v4439_v22 = vpop.f32.mrf.mxu0 }
0x1915   :  { %4717 = vtanh.f32 %v2397_v32  ;;  %v2475_v16 = vmul.f32 0.5, %v2397_v32 }
0x1916   :  { %v2471_v27 = vpop.f32.mrf.mxu1 }
0x1917   :  { %v2472_v47 = vadd.f32 %v2471_v27, %v2099_v49 }
0x1918   :  { %v4450_v29 = vpop.f32.mrf.mxu1 }
0x1919   :  { %4719 = vtanh.f32 %v2472_v47  ;;  %v2497_v1 = vmul.f32 0.5, %v2472_v47 }
0x191a   :  { %4721 = vtanh.f32 %v2475_v16 }
0x191b   :  { %4723 = vtanh.f32 %v2497_v1 }
0x1922   :  { %v4718_v30 = vpop.eup %4717 }
0x1923   :  { %2482 = vrot.lane.b32.xlu0 %v4718_v30, %s4803_s3 }
0x1926   :  { %v4720_v15 = vpop.eup %4719 }
0x1927   :  { %2504 = vrot.lane.b32.xlu1 %v4720_v15, %s4803_s3  ;;  %v4722_v3 = vpop.eup %4721 }
0x1928   :  { %v2477_v4 = vmul.f32 0.5, %v4722_v3  ;;  %v4724_v60 = vpop.eup %4723 }
0x1929   :  { %v2499_v2 = vmul.f32 0.5, %v4724_v60 }
0x192a   :  { %v2478_v61 = vadd.f32 0.5, %v2477_v4 }
0x192b   :  { %v2500_v50 = vadd.f32 0.5, %v2499_v2 }
0x192c   :  { %v2480_v36 = vmul.f32 %v2478_v61, %v5525_v7 }
0x192d   :  { %v2502_v54 = vmul.f32 %v2500_v50, %v5528_v18 }
0x1995   :  { %v2483_v33 = vpop.permute.xlu0 %2482 }
0x1996   :  { %v2485_v34 = vmul.f32 %v2483_v33, %v2478_v61 }
0x1998   :  { %2487 = vrot.lane.b32.xlu0 %v2485_v34, %s4803_s3 }
0x1999   :  { %v2505_v53 = vpop.permute.xlu1 %2504 }
0x199a   :  { %v2507_v35 = vmul.f32 %v2505_v53, %v2500_v50 }
0x199c   :  { %2509 = vrot.lane.b32.xlu1 %v2507_v35, %s4803_s3 }
0x1a0a   :  { %v2488_v39 = vpop.permute.xlu0 %2487 }
0x1a0b   :  { %v5566_v37 = vadd.f32 %v2488_v39, %v2480_v36 }
0x1a0d   :  { %4725 = vtanh.f32 %v5566_v37 }
0x1a0e   :  { %v2510_v40 = vpop.permute.xlu1 %2509 }
0x1a0f   :  { %v5570_v43 = vadd.f32 %v2510_v40, %v2502_v54 }
0x1a11   :  { %4727 = vtanh.f32 %v5570_v43 }
0x1a1a   :  { %v4726_v48 = vpop.eup %4725 }
0x1a1b   :  { %2493 = vrot.lane.b32.xlu0 %v4726_v48, %s4803_s3 }
0x1a1e   :  { %v4728_v12 = vpop.eup %4727 }
0x1a1f   :  { %2515 = vrot.lane.b32.xlu1 %v4728_v12, %s4803_s3  ;;  %v1986_v12 = vadd.f32 %v5485_v5, %v5504_v20 }
0x1a8d   :  { %v2494_v13 = vpop.permute.xlu0 %2493 }
0x1a8e   :  { %v2496_v7 = vmul.f32 %v2494_v13, %v2478_v61 }
0x1a90   :  { %2520 = vrot.lane.b32.xlu0 %v2496_v7, %s4804_s19 }
0x1a91   :  { %v2516_v24 = vpop.permute.xlu1 %2515 }
0x1a92   :  { %v2518_v52 = vmul.f32 %v2516_v24, %v2500_v50 }
0x1a94   :  { %2595 = vrot.lane.b32.xlu1 %v2518_v52, %s4804_s19  ;;  %v2109_v52 = vadd.f32 %v5489_v8, %v5516_v44 }
0x1b02   :  { %v2521_v18 = vpop.permute.xlu0 %2520 }
0x1b03   :  { %4460 = vmatmul.mubr.msk.f32.vlgmr.msra.gmra.mxu0 %vm342_vm3, %v2521_v18 }
0x1b04   :  { %4474 = vmatpush3.msra.mxu0 %v5396_v19  ;;  %4481 = vmatprep.mubr.msk.f32.mxu0 %vm4802_vm2, %v4801_v9 }
0x1b05   :  { %4475 = vmatprep.subr.mxu0 %v4801_v9 }
0x1b06   :  { %v2596_v26 = vpop.permute.xlu1 %2595  ;;  %4476 = vmatpush3.msra.mxu0 %v5406_v38 }
0x1b07   :  { %4471 = vmatmul.mubr.msk.f32.vlgmr.msra.gmra.mxu1 %vm342_vm3, %v2596_v26  ;;  %4477 = vmatprep.subr.mxu0 %v4801_v9 }
0x1b08   :  { %4478 = vmatpush3.msra.mxu0 %v5426_v55  ;;  %4485 = vmatpush3.msra.mxu1 %v5401_v51 }
0x1b09   :  { %4479 = vmatprep.subr.mxu0 %v4801_v9  ;;  %4486 = vmatprep.subr.mxu1 %v4801_v9 }
0x1b0a   :  { %4480 = vmatpush3.msra.mxu0 %v5440_v56  ;;  %4487 = vmatpush3.msra.mxu1 %v5413_v25 }
0x1b0b   :  { %4488 = vmatprep.subr.mxu1 %v4801_v9  ;;  %4492 = vmatprep.mubr.msk.f32.mxu1 %vm4802_vm2, %v4801_v9 }
0x1b0c   :  { %4489 = vmatpush3.msra.mxu1 %v5431_v58  ;;  %4495 = vmatprep.subr.mxu0 %v4801_v9 }
0x1b0d   :  { %4490 = vmatprep.subr.mxu1 %v4801_v9 }
0x1b0e   :  { %4491 = vmatpush3.msra.mxu1 %v5446_v41 }
0x1b0f   :  { %4506 = vmatprep.subr.mxu1 %v4801_v9 }
0x1bc3   :  { %v2590_v62 = vpop.f32.mrf.mxu0 }
0x1bc4   :  { %v2591_v59 = vadd.f32 %v2590_v62, %v1981_v57 }
0x1bc5   :  { %v4461_v42 = vpop.f32.mrf.mxu0 }
0x1bc6   :  { %4729 = vtanh.f32 %v2591_v59  ;;  %v2669_v27 = vmul.f32 0.5, %v2591_v59 }
0x1bc7   :  { %v2665_v0 = vpop.f32.mrf.mxu1 }
0x1bc8   :  { %v2666_v31 = vadd.f32 %v2665_v0, %v2104_v63 }
0x1bc9   :  { %v4472_v32 = vpop.f32.mrf.mxu1 }
0x1bca   :  { %4731 = vtanh.f32 %v2666_v31  ;;  %v2691_v6 = vmul.f32 0.5, %v2666_v31 }
0x1bcb   :  { %4733 = vtanh.f32 %v2669_v27 }
0x1bcc   :  { %4735 = vtanh.f32 %v2691_v6 }
0x1bd3   :  { %v4730_v22 = vpop.eup %4729 }
0x1bd4   :  { %2676 = vrot.lane.b32.xlu0 %v4730_v22, %s4803_s3 }
0x1bd7   :  { %v4732_v49 = vpop.eup %4731 }
0x1bd8   :  { %2698 = vrot.lane.b32.xlu1 %v4732_v49, %s4803_s3  ;;  %v4734_v47 = vpop.eup %4733 }
0x1bd9   :  { %v2671_v29 = vmul.f32 0.5, %v4734_v47  ;;  %v4736_v30 = vpop.eup %4735 }
0x1bda   :  { %v2693_v45 = vmul.f32 0.5, %v4736_v30 }
0x1bdb   :  { %v2672_v15 = vadd.f32 0.5, %v2671_v29 }
0x1bdc   :  { %v2694_v3 = vadd.f32 0.5, %v2693_v45 }
0x1bdd   :  { %v2674_v61 = vmul.f32 %v2672_v15, %v5566_v37 }
0x1bde   :  { %v2696_v34 = vmul.f32 %v2694_v3, %v5570_v43 }
0x1c46   :  { %v2677_v16 = vpop.permute.xlu0 %2676 }
0x1c47   :  { %v2679_v1 = vmul.f32 %v2677_v16, %v2672_v15 }
0x1c49   :  { %2681 = vrot.lane.b32.xlu0 %v2679_v1, %s4803_s3 }
0x1c4a   :  { %v2699_v4 = vpop.permute.xlu1 %2698 }
0x1c4b   :  { %v2701_v60 = vmul.f32 %v2699_v4, %v2694_v3 }
0x1c4d   :  { %2703 = vrot.lane.b32.xlu1 %v2701_v60, %s4803_s3 }
0x1cbb   :  { %v2682_v2 = vpop.permute.xlu0 %2681 }
0x1cbc   :  { %v5608_v33 = vadd.f32 %v2682_v2, %v2674_v61 }
0x1cbe   :  { %4737 = vtanh.f32 %v5608_v33 }
0x1cbf   :  { %v2704_v50 = vpop.permute.xlu1 %2703 }
0x1cc0   :  { %v5612_v53 = vadd.f32 %v2704_v50, %v2696_v34 }
0x1cc2   :  { %4739 = vtanh.f32 %v5612_v53 }
0x1ccb   :  { %v4738_v35 = vpop.eup %4737 }
0x1ccc   :  { %2687 = vrot.lane.b32.xlu0 %v4738_v35, %s4803_s3 }
0x1ccf   :  { %v4740_v36 = vpop.eup %4739 }
0x1cd0   :  { %2709 = vrot.lane.b32.xlu1 %v4740_v36, %s4803_s3 }
0x1d3e   :  { %v2688_v39 = vpop.permute.xlu0 %2687 }
0x1d3f   :  { %v2690_v37 = vmul.f32 %v2688_v39, %v2672_v15 }
0x1d41   :  { %2714 = vrot.lane.b32.xlu0 %v2690_v37, %s4804_s19  ;;  %v2114_v37 = vadd.f32 %v5516_v44, %v5506_v46 }
0x1d42   :  { %v2710_v54 = vpop.permute.xlu1 %2709 }
0x1d43   :  { %v2712_v40 = vmul.f32 %v2710_v54, %v2694_v3 }
0x1d45   :  { %2789 = vrot.lane.b32.xlu1 %v2712_v40, %s4804_s19 }
0x1db3   :  { %v2715_v43 = vpop.permute.xlu0 %2714 }
0x1db4   :  { %4482 = vmatmul.mubr.msk.f32.vlgmr.msra.gmra.mxu0 %vm342_vm3, %v2715_v43 }
0x1db5   :  { %4496 = vmatpush3.msra.mxu0 %v5396_v19  ;;  %4503 = vmatprep.mubr.msk.f32.mxu0 %vm4802_vm2, %v4801_v9 }
0x1db6   :  { %4497 = vmatprep.subr.mxu0 %v4801_v9 }
0x1db7   :  { %v2790_v48 = vpop.permute.xlu1 %2789  ;;  %4498 = vmatpush3.msra.mxu0 %v5406_v38 }
0x1db8   :  { %4493 = vmatmul.mubr.msk.f32.vlgmr.msra.gmra.mxu1 %vm342_vm3, %v2790_v48  ;;  %4499 = vmatprep.subr.mxu0 %v4801_v9 }
0x1db9   :  { %4500 = vmatpush3.msra.mxu0 %v5426_v55  ;;  %4507 = vmatpush3.msra.mxu1 %v5401_v51 }
0x1dba   :  { %4501 = vmatprep.subr.mxu0 %v4801_v9  ;;  %4508 = vmatprep.subr.mxu1 %v4801_v9 }
0x1dbb   :  { %4502 = vmatpush3.msra.mxu0 %v5440_v56  ;;  %4509 = vmatpush3.msra.mxu1 %v5413_v25 }
0x1dbc   :  { %4510 = vmatprep.subr.mxu1 %v4801_v9  ;;  %4514 = vmatprep.mubr.msk.f32.mxu1 %vm4802_vm2, %v4801_v9 }
0x1dbd   :  { %4511 = vmatpush3.msra.mxu1 %v5431_v58  ;;  %4517 = vmatprep.subr.mxu0 %v4801_v9 }
0x1dbe   :  { %4512 = vmatprep.subr.mxu1 %v4801_v9 }
0x1dbf   :  { %4513 = vmatpush3.msra.mxu1 %v5446_v41 }
0x1dc0   :  { %4528 = vmatprep.subr.mxu1 %v4801_v9 }
0x1e74   :  { %v2784_v13 = vpop.f32.mrf.mxu0 }
0x1e75   :  { %v2785_v7 = vadd.f32 %v2784_v13, %v1986_v12 }
0x1e76   :  { %v4483_v24 = vpop.f32.mrf.mxu0 }
0x1e77   :  { %4741 = vtanh.f32 %v2785_v7  ;;  %v2863_v42 = vmul.f32 0.5, %v2785_v7 }
0x1e78   :  { %v2859_v18 = vpop.f32.mrf.mxu1 }
0x1e79   :  { %v2860_v26 = vadd.f32 %v2859_v18, %v2109_v52 }
0x1e7a   :  { %v4494_v57 = vpop.f32.mrf.mxu1 }
0x1e7b   :  { %4743 = vtanh.f32 %v2860_v26  ;;  %v2885_v5 = vmul.f32 0.5, %v2860_v26 }
0x1e7c   :  { %4745 = vtanh.f32 %v2863_v42 }
0x1e7d   :  { %4747 = vtanh.f32 %v2885_v5 }
0x1e84   :  { %v4742_v62 = vpop.eup %4741 }
0x1e85   :  { %2870 = vrot.lane.b32.xlu0 %v4742_v62, %s4803_s3 }
0x1e88   :  { %v4744_v59 = vpop.eup %4743 }
0x1e89   :  { %2892 = vrot.lane.b32.xlu1 %v4744_v59, %s4803_s3  ;;  %v4746_v63 = vpop.eup %4745 }
0x1e8a   :  { %v2865_v0 = vmul.f32 0.5, %v4746_v63  ;;  %v4748_v31 = vpop.eup %4747 }
0x1e8b   :  { %v2887_v8 = vmul.f32 0.5, %v4748_v31 }
0x1e8c   :  { %v2866_v32 = vadd.f32 0.5, %v2865_v0 }
0x1e8d   :  { %v2888_v27 = vadd.f32 0.5, %v2887_v8 }
0x1e8e   :  { %v2868_v29 = vmul.f32 %v2866_v32, %v5608_v33 }
0x1e8f   :  { %v2890_v45 = vmul.f32 %v2888_v27, %v5612_v53  ;;  %v1991_v53 = vadd.f32 %v5504_v20, %v5495_v11 }
0x1ef7   :  { %v2871_v22 = vpop.permute.xlu0 %2870 }
0x1ef8   :  { %v2873_v49 = vmul.f32 %v2871_v22, %v2866_v32 }
0x1efa   :  { %2875 = vrot.lane.b32.xlu0 %v2873_v49, %s4803_s3 }
0x1efb   :  { %v2893_v6 = vpop.permute.xlu1 %2892 }
0x1efc   :  { %v2895_v47 = vmul.f32 %v2893_v6, %v2888_v27 }
0x1efe   :  { %2897 = vrot.lane.b32.xlu1 %v2895_v47, %s4803_s3 }
0x1f6c   :  { %v2876_v30 = vpop.permute.xlu0 %2875 }
0x1f6d   :  { %v5650_v15 = vadd.f32 %v2876_v30, %v2868_v29 }
0x1f6f   :  { %4749 = vtanh.f32 %v5650_v15 }
0x1f70   :  { %v2898_v16 = vpop.permute.xlu1 %2897 }
0x1f71   :  { %v5654_v1 = vadd.f32 %v2898_v16, %v2890_v45  ;;  %v1996_v45 = vadd.f32 %v5491_v10, %v5504_v20 }
0x1f73   :  { %4751 = vtanh.f32 %v5654_v1 }
0x1f7c   :  { %v4750_v3 = vpop.eup %4749 }
0x1f7d   :  { %2881 = vrot.lane.b32.xlu0 %v4750_v3, %s4803_s3 }
0x1f80   :  { %v4752_v4 = vpop.eup %4751 }
0x1f81   :  { %2903 = vrot.lane.b32.xlu1 %v4752_v4, %s4803_s3  ;;  %v2119_v4 = vadd.f32 %v5497_v14, %v5516_v44 }
0x1fef   :  { %v2882_v60 = vpop.permute.xlu0 %2881 }
0x1ff0   :  { %v2884_v61 = vmul.f32 %v2882_v60, %v2866_v32 }
0x1ff2   :  { %2908 = vrot.lane.b32.xlu0 %v2884_v61, %s4804_s19 }
0x1ff3   :  { %v2904_v2 = vpop.permute.xlu1 %2903 }
0x1ff4   :  { %v2906_v33 = vmul.f32 %v2904_v2, %v2888_v27 }
0x1ff6   :  { %2983 = vrot.lane.b32.xlu1 %v2906_v33, %s4804_s19 }
0x2064   :  { %v2909_v34 = vpop.permute.xlu0 %2908 }
0x2065   :  { %4504 = vmatmul.mubr.msk.f32.vlgmr.msra.gmra.mxu0 %vm342_vm3, %v2909_v34 }
0x2066   :  { %4518 = vmatpush3.msra.mxu0 %v5396_v19  ;;  %4525 = vmatprep.mubr.msk.f32.mxu0 %vm4802_vm2, %v4801_v9 }
0x2067   :  { %4519 = vmatprep.subr.mxu0 %v4801_v9 }
0x2068   :  { %v2984_v50 = vpop.permute.xlu1 %2983  ;;  %4520 = vmatpush3.msra.mxu0 %v5406_v38 }
0x2069   :  { %4515 = vmatmul.mubr.msk.f32.vlgmr.msra.gmra.mxu1 %vm342_vm3, %v2984_v50  ;;  %4521 = vmatprep.subr.mxu0 %v4801_v9 }
0x206a   :  { %4522 = vmatpush3.msra.mxu0 %v5426_v55  ;;  %4529 = vmatpush3.msra.mxu1 %v5401_v51 }
0x206b   :  { %4523 = vmatprep.subr.mxu0 %v4801_v9  ;;  %4530 = vmatprep.subr.mxu1 %v4801_v9 }
0x206c   :  { %4524 = vmatpush3.msra.mxu0 %v5440_v56  ;;  %4531 = vmatpush3.msra.mxu1 %v5413_v25 }
0x206d   :  { %4532 = vmatprep.subr.mxu1 %v4801_v9  ;;  %4536 = vmatprep.mubr.msk.f32.mxu1 %vm4802_vm2, %v4801_v9 }
0x206e   :  { %4533 = vmatpush3.msra.mxu1 %v5431_v58  ;;  %4539 = vmatprep.subr.mxu0 %v4801_v9 }
0x206f   :  { %4534 = vmatprep.subr.mxu1 %v4801_v9 }
0x2070   :  { %4535 = vmatpush3.msra.mxu1 %v5446_v41 }
0x2071   :  { %4550 = vmatprep.subr.mxu1 %v4801_v9 }
0x2125   :  { %v2978_v35 = vpop.f32.mrf.mxu0 }
0x2126   :  { %v2979_v36 = vadd.f32 %v2978_v35, %v1991_v53 }
0x2127   :  { %v4505_v39 = vpop.f32.mrf.mxu0 }
0x2128   :  { %4753 = vtanh.f32 %v2979_v36  ;;  %v3057_v13 = vmul.f32 0.5, %v2979_v36 }
0x2129   :  { %v3053_v54 = vpop.f32.mrf.mxu1 }
0x212a   :  { %v3054_v40 = vadd.f32 %v3053_v54, %v2114_v37 }
0x212b   :  { %v4516_v43 = vpop.f32.mrf.mxu1 }
0x212c   :  { %4755 = vtanh.f32 %v3054_v40  ;;  %v3079_v11 = vmul.f32 0.5, %v3054_v40 }
0x212d   :  { %4757 = vtanh.f32 %v3057_v13 }
0x212e   :  { %4759 = vtanh.f32 %v3079_v11 }
0x2135   :  { %v4754_v48 = vpop.eup %4753 }
0x2136   :  { %3064 = vrot.lane.b32.xlu0 %v4754_v48, %s4803_s3 }
0x2139   :  { %v4756_v12 = vpop.eup %4755 }
0x213a   :  { %3086 = vrot.lane.b32.xlu1 %v4756_v12, %s4803_s3  ;;  %v4758_v7 = vpop.eup %4757 }
0x213b   :  { %v3059_v24 = vmul.f32 0.5, %v4758_v7  ;;  %v4760_v52 = vpop.eup %4759 }
0x213c   :  { %v3081_v46 = vmul.f32 0.5, %v4760_v52 }
0x213d   :  { %v3060_v18 = vadd.f32 0.5, %v3059_v24 }
0x213e   :  { %v3082_v62 = vadd.f32 0.5, %v3081_v46 }
0x213f   :  { %v3062_v5 = vmul.f32 %v3060_v18, %v5650_v15 }
0x2140   :  { %v3084_v31 = vmul.f32 %v3082_v62, %v5654_v1 }
0x21a8   :  { %v3065_v26 = vpop.permute.xlu0 %3064 }
0x21a9   :  { %v3067_v57 = vmul.f32 %v3065_v26, %v3060_v18 }
0x21ab   :  { %3069 = vrot.lane.b32.xlu0 %v3067_v57, %s4803_s3 }
0x21ac   :  { %v3087_v59 = vpop.permute.xlu1 %3086 }
0x21ad   :  { %v3089_v42 = vmul.f32 %v3087_v59, %v3082_v62 }
0x21af   :  { %3091 = vrot.lane.b32.xlu1 %v3089_v42, %s4803_s3 }
0x221d   :  { %v3070_v63 = vpop.permute.xlu0 %3069 }
0x221e   :  { %v5692_v0 = vadd.f32 %v3070_v63, %v3062_v5 }
0x2220   :  { %4761 = vtanh.f32 %v5692_v0 }
0x2221   :  { %v3092_v32 = vpop.permute.xlu1 %3091 }
0x2222   :  { %v5696_v8 = vadd.f32 %v3092_v32, %v3084_v31 }
0x2224   :  { %4763 = vtanh.f32 %v5696_v8 }
0x222d   :  { %v4762_v22 = vpop.eup %4761 }
0x222e   :  { %3075 = vrot.lane.b32.xlu0 %v4762_v22, %s4803_s3 }
0x2231   :  { %v4764_v49 = vpop.eup %4763 }
0x2232   :  { %3097 = vrot.lane.b32.xlu1 %v4764_v49, %s4803_s3 }
0x22a0   :  { %v3076_v27 = vpop.permute.xlu0 %3075 }
0x22a1   :  { %v3078_v6 = vmul.f32 %v3076_v27, %v3060_v18 }
0x22a3   :  { %3102 = vrot.lane.b32.xlu0 %v3078_v6, %s4804_s19 }
0x22a4   :  { %v3098_v47 = vpop.permute.xlu1 %3097 }
0x22a5   :  { %v3100_v29 = vmul.f32 %v3098_v47, %v3082_v62 }
0x22a7   :  { %3177 = vrot.lane.b32.xlu1 %v3100_v29, %s4804_s19 }
0x2315   :  { %v3103_v30 = vpop.permute.xlu0 %3102 }
0x2316   :  { %4526 = vmatmul.mubr.msk.f32.vlgmr.msra.gmra.mxu0 %vm342_vm3, %v3103_v30 }
0x2317   :  { %4540 = vmatpush3.msra.mxu0 %v5396_v19  ;;  %4547 = vmatprep.mubr.msk.f32.mxu0 %vm4802_vm2, %v4801_v9 }
0x2318   :  { %4541 = vmatprep.subr.mxu0 %v4801_v9 }
0x2319   :  { %v3178_v15 = vpop.permute.xlu1 %3177  ;;  %4542 = vmatpush3.msra.mxu0 %v5406_v38 }
0x231a   :  { %4537 = vmatmul.mubr.msk.f32.vlgmr.msra.gmra.mxu1 %vm342_vm3, %v3178_v15  ;;  %4543 = vmatprep.subr.mxu0 %v4801_v9 }
0x231b   :  { %4544 = vmatpush3.msra.mxu0 %v5426_v55  ;;  %4551 = vmatpush3.msra.mxu1 %v5401_v51 }
0x231c   :  { %4545 = vmatprep.subr.mxu0 %v4801_v9  ;;  %4552 = vmatprep.subr.mxu1 %v4801_v9 }
0x231d   :  { %4546 = vmatpush3.msra.mxu0 %v5440_v56  ;;  %4553 = vmatpush3.msra.mxu1 %v5413_v25 }
0x231e   :  { %4554 = vmatprep.subr.mxu1 %v4801_v9  ;;  %4558 = vmatprep.mubr.msk.f32.mxu1 %vm4802_vm2, %v4801_v9 }
0x231f   :  { %4555 = vmatpush3.msra.mxu1 %v5431_v58  ;;  %4561 = vmatprep.subr.mxu0 %v4801_v9 }
0x2320   :  { %4556 = vmatprep.subr.mxu1 %v4801_v9 }
0x2321   :  { %4557 = vmatpush3.msra.mxu1 %v5446_v41 }
0x2322   :  { %4572 = vmatprep.subr.mxu1 %v4801_v9 }
0x23d6   :  { %v3172_v16 = vpop.f32.mrf.mxu0 }
0x23d7   :  { %v3173_v1 = vadd.f32 %v3172_v16, %v1996_v45 }
0x23d8   :  { %v4527_v3 = vpop.f32.mrf.mxu0 }
0x23d9   :  { %4765 = vtanh.f32 %v3173_v1  ;;  %v3251_v50 = vmul.f32 0.5, %v3173_v1 }
0x23da   :  { %v3247_v60 = vpop.f32.mrf.mxu1 }
0x23db   :  { %v3248_v61 = vadd.f32 %v3247_v60, %v2119_v4 }
0x23dc   :  { %v4538_v2 = vpop.f32.mrf.mxu1 }
0x23dd   :  { %4767 = vtanh.f32 %v3248_v61  ;;  %v3273_v10 = vmul.f32 0.5, %v3248_v61 }
0x23de   :  { %4769 = vtanh.f32 %v3251_v50 }
0x23df   :  { %4771 = vtanh.f32 %v3273_v10 }
0x23e6   :  { %v4766_v33 = vpop.eup %4765 }
0x23e7   :  { %3258 = vrot.lane.b32.xlu0 %v4766_v33, %s4803_s3 }
0x23ea   :  { %v4768_v34 = vpop.eup %4767 }
0x23eb   :  { %3280 = vrot.lane.b32.xlu1 %v4768_v34, %s4803_s3  ;;  %v4770_v53 = vpop.eup %4769 }
0x23ec   :  { %v3253_v35 = vmul.f32 0.5, %v4770_v53  ;;  %v4772_v36 = vpop.eup %4771 }
0x23ed   :  { %v3275_v14 = vmul.f32 0.5, %v4772_v36 }
0x23ee   :  { %v3254_v39 = vadd.f32 0.5, %v3253_v35  ;;  %v2006_v35 = vadd.f32 %v5499_v17, %v5504_v20 }
0x23ef   :  { %v3276_v40 = vadd.f32 0.5, %v3275_v14 }
0x23f0   :  { %v3256_v12 = vmul.f32 %v3254_v39, %v5692_v0 }
0x23f1   :  { %v3278_v7 = vmul.f32 %v3276_v40, %v5696_v8 }
0x2459   :  { %v3259_v37 = vpop.permute.xlu0 %3258 }
0x245a   :  { %v3261_v54 = vmul.f32 %v3259_v37, %v3254_v39  ;;  %v2129_v37 = vadd.f32 %v5511_v23, %v5516_v44 }
0x245c   :  { %3263 = vrot.lane.b32.xlu0 %v3261_v54, %s4803_s3 }
0x245d   :  { %v3281_v43 = vpop.permute.xlu1 %3280 }
0x245e   :  { %v3283_v48 = vmul.f32 %v3281_v43, %v3276_v40 }
0x2460   :  { %3285 = vrot.lane.b32.xlu1 %v3283_v48, %s4803_s3 }
0x24ce   :  { %v3264_v13 = vpop.permute.xlu0 %3263 }
0x24cf   :  { %v5734_v11 = vadd.f32 %v3264_v13, %v3256_v12 }
0x24d1   :  { %4773 = vtanh.f32 %v5734_v11 }
0x24d2   :  { %v3286_v24 = vpop.permute.xlu1 %3285 }
0x24d3   :  { %v5738_v52 = vadd.f32 %v3286_v24, %v3278_v7 }
0x24d5   :  { %4775 = vtanh.f32 %v5738_v52 }
0x24de   :  { %v4774_v18 = vpop.eup %4773 }
0x24df   :  { %3269 = vrot.lane.b32.xlu0 %v4774_v18, %s4803_s3 }
0x24e2   :  { %v4776_v46 = vpop.eup %4775 }
0x24e3   :  { %3291 = vrot.lane.b32.xlu1 %v4776_v46, %s4803_s3 }
0x2551   :  { %v3270_v26 = vpop.permute.xlu0 %3269 }
0x2552   :  { %v3272_v57 = vmul.f32 %v3270_v26, %v3254_v39 }
0x2554   :  { %3296 = vrot.lane.b32.xlu0 %v3272_v57, %s4804_s19 }
0x2555   :  { %v3292_v62 = vpop.permute.xlu1 %3291 }
0x2556   :  { %v3294_v59 = vmul.f32 %v3292_v62, %v3276_v40 }
0x2558   :  { %3371 = vrot.lane.b32.xlu1 %v3294_v59, %s4804_s19 }
0x25c6   :  { %v3297_v42 = vpop.permute.xlu0 %3296 }
0x25c7   :  { %4548 = vmatmul.mubr.msk.f32.vlgmr.msra.gmra.mxu0 %vm342_vm3, %v3297_v42 }
0x25c8   :  { %4562 = vmatpush3.msra.mxu0 %v5396_v19  ;;  %4569 = vmatprep.mubr.msk.f32.mxu0 %vm4802_vm2, %v4801_v9  ;;  %v2001_v19 = vadd.f32 %v5504_v20, %v5508_v21 }
0x25c9   :  { %4563 = vmatprep.subr.mxu0 %v4801_v9 }
0x25ca   :  { %v3372_v5 = vpop.permute.xlu1 %3371  ;;  %4564 = vmatpush3.msra.mxu0 %v5406_v38 }
0x25cb   :  { %4559 = vmatmul.mubr.msk.f32.vlgmr.msra.gmra.mxu1 %vm342_vm3, %v3372_v5  ;;  %4565 = vmatprep.subr.mxu0 %v4801_v9 }
0x25cc   :  { %4566 = vmatpush3.msra.mxu0 %v5426_v55  ;;  %4573 = vmatpush3.msra.mxu1 %v5401_v51  ;;  %v2124_v55 = vadd.f32 %v5516_v44, %v5518_v28 }
0x25cd   :  { %4567 = vmatprep.subr.mxu0 %v4801_v9  ;;  %4574 = vmatprep.subr.mxu1 %v4801_v9 }
0x25ce   :  { %4568 = vmatpush3.msra.mxu0 %v5440_v56  ;;  %4575 = vmatpush3.msra.mxu1 %v5413_v25 }
0x25cf   :  { %4576 = vmatprep.subr.mxu1 %v4801_v9  ;;  %4580 = vmatprep.mubr.msk.f32.mxu1 %vm4802_vm2, %v4801_v9 }
0x25d0   :  { %4577 = vmatpush3.msra.mxu1 %v5431_v58  ;;  %4583 = vmatprep.subr.mxu0 %v4801_v9 }
0x25d1   :  { %4578 = vmatprep.subr.mxu1 %v4801_v9 }
0x25d2   :  { %4579 = vmatpush3.msra.mxu1 %v5446_v41 }
0x25d3   :  { %4594 = vmatprep.subr.mxu1 %v4801_v9 }
0x2687   :  { %v3366_v51 = vpop.f32.mrf.mxu0 }
0x2688   :  { %v3367_v38 = vadd.f32 %v3366_v51, %v2001_v19  ;;  %v3686_v51 = vld [vmem:[%s5844_s7 + $0x18] sm:$0xff] }
0x2689   :  { %v4549_v25 = vpop.f32.mrf.mxu0 }
0x268a   :  { %4777 = vtanh.f32 %v3367_v38  ;;  %v3445_v31 = vmul.f32 0.5, %v3367_v38  ;;  %v3685_v38 = vld [vmem:[%s5844_s7 + $0x10] sm:$0xff]  ;;  %v3947_v25 = vld [vmem:[%s5844_s7 + $0x38] sm:$0xff] }
0x268b   :  { %v3441_v56 = vpop.f32.mrf.mxu1 }
0x268c   :  { %v3442_v58 = vadd.f32 %v3441_v56, %v2124_v55  ;;  %v3946_v55 = vld [vmem:[%s5844_s7 + $0x30] sm:$0xff]  ;;  %v3684_v56 = vld [vmem:[%s5844_s7 + $0x8] sm:$0xff] }
0x268d   :  { %v4560_v63 = vpop.f32.mrf.mxu1 }
0x268e   :  { %4779 = vtanh.f32 %v3442_v58  ;;  %v3467_v21 = vmul.f32 0.5, %v3442_v58  ;;  %v3683_v58 = vld [vmem:[%s5844_s7] sm:$0xff] }
0x268f   :  { %4781 = vtanh.f32 %v3445_v31  ;;  %v3944_v31 = vld [vmem:[%s5844_s7 + $0x20] sm:$0xff] }
0x2690   :  { %4783 = vtanh.f32 %v3467_v21 }
0x2697   :  { %v4778_v0 = vpop.eup %4777 }
0x2698   :  { %3452 = vrot.lane.b32.xlu0 %v4778_v0, %s4803_s3 }
0x269b   :  { %v4780_v41 = vpop.eup %4779 }
0x269c   :  { %3474 = vrot.lane.b32.xlu1 %v4780_v41, %s4803_s3  ;;  %v4782_v32 = vpop.eup %4781  ;;  %v3945_v41 = vld [vmem:[%s5844_s7 + $0x28] sm:$0xff] }
0x269d   :  { %v3447_v8 = vmul.f32 0.5, %v4782_v32  ;;  %v4784_v22 = vpop.eup %4783 }
0x269e   :  { %v3469_v28 = vmul.f32 0.5, %v4784_v22 }
0x269f   :  { %v3448_v49 = vadd.f32 0.5, %v3447_v8 }
0x26a0   :  { %v3470_v47 = vadd.f32 0.5, %v3469_v28 }
0x26a1   :  { %v3450_v15 = vmul.f32 %v3448_v49, %v5734_v11 }
0x26a2   :  { %v3472_v1 = vmul.f32 %v3470_v47, %v5738_v52 }
0x270a   :  { %v3453_v27 = vpop.permute.xlu0 %3452 }
0x270b   :  { %v3455_v6 = vmul.f32 %v3453_v27, %v3448_v49 }
0x270d   :  { %3457 = vrot.lane.b32.xlu0 %v3455_v6, %s4803_s3 }
0x270e   :  { %v3475_v29 = vpop.permute.xlu1 %3474 }
0x270f   :  { %v3477_v30 = vmul.f32 %v3475_v29, %v3470_v47 }
0x2711   :  { %3479 = vrot.lane.b32.xlu1 %v3477_v30, %s4803_s3 }
0x277f   :  { %v3458_v45 = vpop.permute.xlu0 %3457 }
0x2780   :  { %v3460_v16 = vadd.f32 %v3458_v45, %v3450_v15 }
0x2782   :  { %4785 = vtanh.f32 %v3460_v16 }
0x2783   :  { %v3480_v3 = vpop.permute.xlu1 %3479 }
0x2784   :  { %v3482_v4 = vadd.f32 %v3480_v3, %v3472_v1 }
0x2786   :  { %4787 = vtanh.f32 %v3482_v4 }
0x278f   :  { %v4786_v60 = vpop.eup %4785 }
0x2790   :  { %3463 = vrot.lane.b32.xlu0 %v4786_v60, %s4803_s3 }
0x2793   :  { %v4788_v61 = vpop.eup %4787 }
0x2794   :  { %3485 = vrot.lane.b32.xlu1 %v4788_v61, %s4803_s3 }
0x2802   :  { %v3464_v2 = vpop.permute.xlu0 %3463 }
0x2803   :  { %v3466_v33 = vmul.f32 %v3464_v2, %v3448_v49 }
0x2805   :  { %3490 = vrot.lane.b32.xlu0 %v3466_v33, %s4804_s19 }
0x2806   :  { %v3486_v34 = vpop.permute.xlu1 %3485 }
0x2807   :  { %v3488_v50 = vmul.f32 %v3486_v34, %v3470_v47 }
0x2809   :  { %3565 = vrot.lane.b32.xlu1 %v3488_v50, %s4804_s19 }
0x2877   :  { %v3491_v10 = vpop.permute.xlu0 %3490 }
0x2878   :  { %4570 = vmatmul.mubr.msk.f32.vlgmr.msra.gmra.mxu0 %vm342_vm3, %v3491_v10 }
0x2879   :  { %4591 = vmatprep.mubr.msk.f32.mxu0 %vm4802_vm2, %v4801_v9  ;;  %4584 = vmatpush3.msra.mxu0 %v3947_v25 }
0x287a   :  { %4585 = vmatprep.subr.mxu0 %v4801_v9 }
0x287b   :  { %v3566_v53 = vpop.permute.xlu1 %3565  ;;  %4586 = vmatpush3.msra.mxu0 %v3946_v55 }
0x287c   :  { %4581 = vmatmul.mubr.msk.f32.vlgmr.msra.gmra.mxu1 %vm342_vm3, %v3566_v53  ;;  %4587 = vmatprep.subr.mxu0 %v4801_v9 }
0x287d   :  { %4602 = vmatprep.mubr.msk.f32.mxu1 %vm4802_vm2, %v4801_v9  ;;  %4595 = vmatpush3.msra.mxu1 %v3686_v51 }
0x287e   :  { %4596 = vmatprep.subr.mxu1 %v4801_v9  ;;  %4588 = vmatpush3.msra.mxu0 %v3945_v41 }
0x287f   :  { %4597 = vmatpush3.msra.mxu1 %v3685_v38  ;;  %4589 = vmatprep.subr.mxu0 %v4801_v9 }
0x2880   :  { %4598 = vmatprep.subr.mxu1 %v4801_v9  ;;  %4590 = vmatpush3.msra.mxu0 %v3944_v31 }
0x2881   :  { %4599 = vmatpush3.msra.mxu1 %v3684_v56 }
0x2882   :  { %4600 = vmatprep.subr.mxu1 %v4801_v9  ;;  %v3950_v9 = vld [vmem:[%s5845_s8] ss:$0 sm:$0xff] }
0x2883   :  { %4601 = vmatpush3.msra.mxu1 %v3683_v58 }
0x2938   :  { %v3560_v36 = vpop.f32.mrf.mxu0 }
0x2939   :  { %v3561_v39 = vadd.f32 %v3560_v36, %v2006_v35 }
0x293a   :  { %v4571_v14 = vpop.f32.mrf.mxu0 }
0x293b   :  { %4789 = vtanh.f32 %v3561_v39  ;;  %v3639_v13 = vmul.f32 0.5, %v3561_v39 }
0x293c   :  { %v3635_v54 = vpop.f32.mrf.mxu1 }
0x293d   :  { %v3636_v40 = vadd.f32 %v3635_v54, %v2129_v37 }
0x293e   :  { %v4582_v43 = vpop.f32.mrf.mxu1 }
0x293f   :  { %4791 = vtanh.f32 %v3636_v40  ;;  %v3661_v17 = vmul.f32 0.5, %v3636_v40 }
0x2940   :  { %4793 = vtanh.f32 %v3639_v13 }
0x2941   :  { %4795 = vtanh.f32 %v3661_v17 }
0x2948   :  { %v4790_v48 = vpop.eup %4789 }
0x2949   :  { %3646 = vrot.lane.b32.xlu0 %v4790_v48, %s4803_s3 }
0x294c   :  { %v4792_v12 = vpop.eup %4791 }
0x294d   :  { %3668 = vrot.lane.b32.xlu1 %v4792_v12, %s4803_s3  ;;  %v4794_v20 = vpop.eup %4793 }
0x294e   :  { %v3641_v11 = vmul.f32 0.5, %v4794_v20  ;;  %v4796_v7 = vpop.eup %4795 }
0x294f   :  { %v3663_v23 = vmul.f32 0.5, %v4796_v7 }
0x2950   :  { %v3642_v24 = vadd.f32 0.5, %v3641_v11 }
0x2951   :  { %v3664_v18 = vadd.f32 0.5, %v3663_v23 }
0x2952   :  { %v3644_v57 = vmul.f32 %v3642_v24, %v3460_v16 }
0x2953   :  { %v3666_v42 = vmul.f32 %v3664_v18, %v3482_v4 }
0x29bb   :  { %v3647_v44 = vpop.permute.xlu0 %3646 }
0x29bc   :  { %v3649_v52 = vmul.f32 %v3647_v44, %v3642_v24 }
0x29be   :  { %3651 = vrot.lane.b32.xlu0 %v3649_v52, %s4803_s3 }
0x29bf   :  { %v3669_v46 = vpop.permute.xlu1 %3668 }
0x29c0   :  { %v3671_v26 = vmul.f32 %v3669_v46, %v3664_v18 }
0x29c2   :  { %3673 = vrot.lane.b32.xlu1 %v3671_v26, %s4803_s3 }
0x2a30   :  { %v3652_v62 = vpop.permute.xlu0 %3651 }
0x2a31   :  { %v3654_v59 = vadd.f32 %v3652_v62, %v3644_v57 }
0x2a33   :  { %4797 = vtanh.f32 %v3654_v59 }
0x2a34   :  { %v3674_v5 = vpop.permute.xlu1 %3673 }
0x2a35   :  { %v3676_v19 = vadd.f32 %v3674_v5, %v3666_v42 }
0x2a37   :  { %4799 = vtanh.f32 %v3676_v19 }
0x2a40   :  { %v4798_v63 = vpop.eup %4797 }
0x2a41   :  { %3657 = vrot.lane.b32.xlu0 %v4798_v63, %s4803_s3 }
0x2a44   :  { %v4800_v0 = vpop.eup %4799 }
0x2a45   :  { %3679 = vrot.lane.b32.xlu1 %v4800_v0, %s4803_s3 }
0x2ab3   :  { %v3658_v21 = vpop.permute.xlu0 %3657 }
0x2ab4   :  { %v3660_v32 = vmul.f32 %v3658_v21, %v3642_v24 }
0x2ab6   :  { %3768 = vrot.lane.b32.xlu1 %v3660_v32, %s4804_s19 }
0x2ab7   :  { %v3680_v8 = vpop.permute.xlu1 %3679 }
0x2ab8   :  { %v3682_v22 = vmul.f32 %v3680_v8, %v3664_v18 }
0x2aba   :  { %3693 = vrot.lane.b32.xlu0 %v3682_v22, %s4804_s19 }
0x2b28   :  { %v3769_v49 = vpop.permute.xlu1 %3768 }
0x2b29   :  { %4603 = vmatmul.mubr.msk.f32.vlgmr.msra.gmra.mxu1 %vm342_vm3, %v3769_v49 }
0x2b2c   :  { %v3694_v28 = vpop.permute.xlu0 %3693 }
0x2b2d   :  { %4592 = vmatmul.mubr.msk.f32.vlgmr.msra.gmra.mxu0 %vm342_vm3, %v3694_v28 }
0x2be9   :  { %v3838_v27 = vpop.f32.mrf.mxu1 }
0x2beb   :  { %v4604_v6 = vpop.f32.mrf.mxu1 }
0x2bed   :  { %v3763_v47 = vpop.f32.mrf.mxu0 }
0x2bee   :  { %v3839_v29 = vadd.f32 %v3838_v27, %v3763_v47 }
0x2bef   :  { %v4593_v30 = vpop.f32.mrf.mxu0 }
0x2bf0   :  { %v3849_v15 = vadd.f32 %v3950_v9, %v3839_v29 }
0x2bf2   :  { %3850 = vst [vmem:[%s5846_s9] sm:$0xff] %v3849_v15 }

</bundles_post_ra>
